<compile_context>
chip_gen: v7x
topology: tpu7x:2x2x1
jax: 0.10.0
libtpu: 0.0.40
codegen_flags: <defaults>
</compile_context>

<pallas_src>
import jax
import jax.numpy as jnp
from jax import lax
from jax.experimental import pallas as pl
from jax.experimental.pallas import tpu as pltpu

# Left halo offset on the W (sublane) axis of the VMEM scratches.  16 keeps
# the interior staging store aligned to the bf16 (16, 128) sublane tile.
_PADL = 16


def _zero_halo(ref, H, W):
    """Zero only the halo cells the 3x3 taps actually read:
    top/bottom rows plus the single column on each side of the interior."""
    Wp = ref.shape[1]
    C = ref.shape[2]
    zrow = jnp.zeros((1, Wp, C), ref.dtype)
    ref[0:1, :, :] = zrow                               # top halo row
    ref[H + 1:H + 2, :, :] = zrow                       # bottom halo row
    zcol = jnp.zeros((H + 2, 1, C), ref.dtype)
    ref[:, _PADL - 1:_PADL, :] = zcol                   # left halo column
    ref[:, _PADL + W:_PADL + W + 1, :] = zcol           # right halo column


def _conv3x3_acc(src_ref, w_ref, H, W, Cout):
    """3x3 same-conv as 9 MXU matmuls with f32 accumulation.

    kw (column shift) is hoisted to the outer loop: each conv loads only 3
    shifted (H+2, W, Cin) slabs (one sublane realign each); the 3 kh taps per
    slab are leading-axis value slices (no relayout).

    src_ref: (H+2, W + 2*_PADL, Cin) bf16 scratch; interior at rows [1, H+1),
             cols [_PADL, _PADL+W); a zeroed 1-px halo surrounds it.
    w_ref  : (9, Cin, Cout) bf16, tap-major flattened 3x3 kernel (t = kh*3+kw).
    """
    Cin = src_ref.shape[2]
    acc = jnp.zeros((H * W, Cout), jnp.float32)
    for kw in range(3):
        col0 = _PADL - 1 + kw
        slab = src_ref[:, col0:col0 + W, :]             # (H+2, W, Cin) bf16
        for kh in range(3):
            patch = slab[kh:kh + H]                     # (H, W, Cin), cheap slice
            acc = acc + jnp.dot(patch.reshape(H * W, Cin),
                                w_ref[kh * 3 + kw],
                                preferred_element_type=jnp.float32)
    return acc


def basic_block_kernel(x_ref, w1_ref, s1_ref, b1_ref, w2_ref, s2_ref, b2_ref,
                       out_ref, x_pad, mid_pad):
    """Fused BasicBlock for one image (grid axis = batch).

    x_ref    : (1, H, W, Cin)  bf16 input tile (also the identity shortcut)
    w1_ref   : (9, Cin, Cmid)  bf16 conv1 weight (tap-major)
    s1/b1    : (1, Cmid)       f32 folded bn1 scale / bias
    w2_ref   : (9, Cmid, Cout) bf16 conv2 weight (tap-major)
    s2/b2    : (1, Cout)       f32 folded bn2 scale / bias
    out_ref  : (1, H, W, Cout) f32
    x_pad    : VMEM (H+2, W+2*_PADL, Cin)  bf16 - halo-padded conv1 input
    mid_pad  : VMEM (H+2, W+2*_PADL, Cmid) bf16 - halo-padded conv2 input
    """
    H = out_ref.shape[1]
    W = out_ref.shape[2]
    Cout = out_ref.shape[3]
    Cmid = w1_ref.shape[2]

    # ---- stage conv1 input (bf16) into the halo scratch --------------------
    # Minimal halo zero every step (see header: per-TC scratch + parallel axis
    # makes a program_id==0 gate unsafe on 2-TC chips); the interior store
    # below never touches the halo cells.
    _zero_halo(x_pad, H, W)
    x_pad[1:1 + H, _PADL:_PADL + W, :] = x_ref[0]        # aligned, unmasked

    # ---- conv1 + bn1 + relu (f32 epilogue) ---------------------------------
    acc1 = _conv3x3_acc(x_pad, w1_ref, H, W, Cmid)       # (H*W, Cmid) f32
    y1 = jnp.maximum(acc1 * s1_ref[...] + b1_ref[...], 0.0)

    # ---- stage conv2 input --------------------------------------------------
    _zero_halo(mid_pad, H, W)
    mid_pad[1:1 + H, _PADL:_PADL + W, :] = (
        y1.astype(jnp.bfloat16).reshape(H, W, Cmid))

    # ---- conv2 + bn2 + residual add + relu ----------------------------------
    acc2 = _conv3x3_acc(mid_pad, w2_ref, H, W, Cout)     # (H*W, Cout) f32
    y2 = acc2 * s2_ref[...] + b2_ref[...]
    # Re-read the input block for the shortcut (nothing kept live across both
    # convs; a VMEM re-load is nearly free).
    shortcut = x_ref[0].astype(jnp.float32).reshape(H * W, Cout)
    out_ref[...] = jnp.maximum(y2 + shortcut, 0.0).reshape(1, H, W, Cout)


def fold_bn(gamma, beta, mean, var, eps=1e-5):
    scale = gamma / jnp.sqrt(var + eps)
    bias = beta - mean * scale
    return scale, bias


def basic_block_forward(x_nhwc, params):
    """NHWC-native fused BasicBlock forward.  x_nhwc: (N, H, W, Cin)."""
    w1, g1, be1, m1, v1, w2, g2, be2, m2, v2 = params
    N, H, W, Cin = x_nhwc.shape
    Cmid = w1.shape[3]
    Cout = w2.shape[3]
    assert Cin == Cout, "identity shortcut requires Cin == Cout (stride 1)"
    assert W % 16 == 0, "W must be a multiple of 16 (bf16 sublane tile)"

    s1, b1 = fold_bn(g1, be1, m1, v1)
    s2, b2 = fold_bn(g2, be2, m2, v2)
    s1 = s1.reshape(1, Cmid).astype(jnp.float32)
    b1 = b1.reshape(1, Cmid).astype(jnp.float32)
    s2 = s2.reshape(1, Cout).astype(jnp.float32)
    b2 = b2.reshape(1, Cout).astype(jnp.float32)

    # Tap-major flattened weights, bf16 for the MXU (accumulation stays f32).
    w1f = w1.reshape(9, Cin, Cmid).astype(jnp.bfloat16)
    w2f = w2.reshape(9, Cmid, Cout).astype(jnp.bfloat16)

    # bf16 activation DMA: halves activation HBM traffic into the kernel.
    x = x_nhwc.astype(jnp.bfloat16)

    Wp = W + 2 * _PADL
    out_nhwc = pl.pallas_call(
        basic_block_kernel,
        out_shape=jax.ShapeDtypeStruct((N, H, W, Cout), jnp.float32),
        grid_spec=pltpu.PrefetchScalarGridSpec(
            num_scalar_prefetch=0,
            grid=(N,),
            in_specs=[
                pl.BlockSpec((1, H, W, Cin), lambda n: (n, 0, 0, 0)),
                pl.BlockSpec((9, Cin, Cmid), lambda n: (0, 0, 0)),
                pl.BlockSpec((1, Cmid), lambda n: (0, 0)),
                pl.BlockSpec((1, Cmid), lambda n: (0, 0)),
                pl.BlockSpec((9, Cmid, Cout), lambda n: (0, 0, 0)),
                pl.BlockSpec((1, Cout), lambda n: (0, 0)),
                pl.BlockSpec((1, Cout), lambda n: (0, 0)),
            ],
            out_specs=pl.BlockSpec((1, H, W, Cout), lambda n: (n, 0, 0, 0)),
            scratch_shapes=[
                pltpu.VMEM((H + 2, Wp, Cin), jnp.bfloat16),
                pltpu.VMEM((H + 2, Wp, Cmid), jnp.bfloat16),
            ],
        ),
        compiler_params=pltpu.CompilerParams(
            dimension_semantics=("parallel",)),
    )(x, w1f, s1, b1, w2f, s2, b2)

    return out_nhwc


def basic_block_forward_nchw(x_nchw, params):
    """PyTorch-layout adapter (pays two HBM relayouts; prefer the NHWC entry)."""
    x = jnp.transpose(x_nchw, (0, 2, 3, 1))
    out = basic_block_forward(x, params)
    return jnp.transpose(out, (0, 3, 1, 2))


def basic_block_reference(x_nhwc, params):
    """Pure-JAX f32 NHWC reference (same math) for correctness checking."""
    w1, g1, be1, m1, v1, w2, g2, be2, m2, v2 = params
    s1, b1 = fold_bn(g1, be1, m1, v1)
    s2, b2 = fold_bn(g2, be2, m2, v2)

    dn = lax.conv_dimension_numbers(x_nhwc.shape, w1.shape,
                                    ('NHWC', 'HWIO', 'NHWC'))
    y = lax.conv_general_dilated(x_nhwc, w1, (1, 1), 'SAME',
                                 dimension_numbers=dn)
    y = jnp.maximum(y * s1 + b1, 0.0)
    y = lax.conv_general_dilated(y, w2, (1, 1), 'SAME', dimension_numbers=dn)
    y = y * s2 + b2
    return jnp.maximum(y + x_nhwc, 0.0)


if __name__ == "__main__":
    # Small shapes consistent with BasicBlock(inplanes=4, planes=4, stride=1).
    N, H, W, Cin = 2, 16, 16, 4
    planes = 4           # expansion=1 -> Cout == Cin, identity shortcut works
    Cmid, Cout = planes, planes

    key = jax.random.PRNGKey(0)
    ks = jax.random.split(key, 11)

    # Channels-last input (NHWC) -- the kernel entry point is NHWC-native so
    # no layout transposes are paid around the pallas_call.
    x = jax.random.normal(ks[0], (N, H, W, Cin), jnp.float32)

    # conv weights (HWIO), deterministic init
    w1 = 0.1 * jax.random.normal(ks[1], (3, 3, Cin, Cmid), jnp.float32)
    w2 = 0.1 * jax.random.normal(ks[2], (3, 3, Cmid, Cout), jnp.float32)

    # bn1 / bn2 params (eval-mode running stats)
    g1 = 1.0 + 0.1 * jax.random.normal(ks[3], (Cmid,), jnp.float32)
    be1 = 0.1 * jax.random.normal(ks[4], (Cmid,), jnp.float32)
    m1 = 0.05 * jax.random.normal(ks[5], (Cmid,), jnp.float32)
    v1 = 1.0 + 0.1 * jax.random.uniform(ks[6], (Cmid,), jnp.float32)
    g2 = 1.0 + 0.1 * jax.random.normal(ks[7], (Cout,), jnp.float32)
    be2 = 0.1 * jax.random.normal(ks[8], (Cout,), jnp.float32)
    m2 = 0.05 * jax.random.normal(ks[9], (Cout,), jnp.float32)
    v2 = 1.0 + 0.1 * jax.random.uniform(ks[10], (Cout,), jnp.float32)

    params = (w1, g1, be1, m1, v1, w2, g2, be2, m2, v2)

    out = jax.block_until_ready(basic_block_forward(x, params))
    ref = jax.block_until_ready(basic_block_reference(x, params))

    assert out.shape == (N, H, W, Cout)
    max_err = float(jnp.max(jnp.abs(out - ref)))
    # bf16 activation DMA + bf16 MXU operands with f32 accumulation.
    assert jnp.allclose(out, ref, atol=5e-2, rtol=5e-2), max_err

    print("KERNEL_OK")
</pallas_src>

<mosaic_0001>
module attributes {stable_mosaic.version = 11 : i64} {
  func.func @basic_block_kernel(%arg0: i32, %arg1: memref<1x16x16x4xbf16, #tpu.memory_space<vmem>>, %arg2: memref<9x4x4xbf16, #tpu.memory_space<vmem>>, %arg3: memref<1x4xf32, #tpu.memory_space<vmem>>, %arg4: memref<1x4xf32, #tpu.memory_space<vmem>>, %arg5: memref<9x4x4xbf16, #tpu.memory_space<vmem>>, %arg6: memref<1x4xf32, #tpu.memory_space<vmem>>, %arg7: memref<1x4xf32, #tpu.memory_space<vmem>>, %arg8: memref<1x16x16x4xf32, #tpu.memory_space<vmem>>, %arg9: memref<18x48x4xbf16, #tpu.memory_space<vmem>>, %arg10: memref<18x48x4xbf16, #tpu.memory_space<vmem>>) attributes {dimension_semantics = [#tpu.dimension_semantics<parallel>], iteration_bounds = array<i64: 2>, scalar_prefetch = 0 : i64, scratch_operands = 2 : i64, tpu.core_type = #tpu.core_type<tc>, window_params = [{transform_indices = @transform_0, window_bounds = array<i64: 1, 16, 16, 4>}, {pipeline_mode = #tpu.pipeline_mode<synchronous>, transform_indices = @transform_1, window_bounds = array<i64: 9, 4, 4>}, {pipeline_mode = #tpu.pipeline_mode<synchronous>, transform_indices = @transform_2, window_bounds = array<i64: 1, 4>}, {pipeline_mode = #tpu.pipeline_mode<synchronous>, transform_indices = @transform_3, window_bounds = array<i64: 1, 4>}, {pipeline_mode = #tpu.pipeline_mode<synchronous>, transform_indices = @transform_4, window_bounds = array<i64: 9, 4, 4>}, {pipeline_mode = #tpu.pipeline_mode<synchronous>, transform_indices = @transform_5, window_bounds = array<i64: 1, 4>}, {pipeline_mode = #tpu.pipeline_mode<synchronous>, transform_indices = @transform_6, window_bounds = array<i64: 1, 4>}, {transform_indices = @transform_7, window_bounds = array<i64: 1, 16, 16, 4>}]} {
    %cst = arith.constant 0.000000e+00 : bf16
    %0 = vector.broadcast %cst : bf16 to vector<1x48x4xbf16>
    %c0 = arith.constant 0 : index
    %c0_0 = arith.constant 0 : index
    %c0_1 = arith.constant 0 : index
    %1 = vector.load %arg9[%c0, %c0_0, %c0_1] : memref<18x48x4xbf16, #tpu.memory_space<vmem>>, vector<1x48x4xbf16>
    tpu.vector_store %arg9[%c0, %c0_0, %c0_1], %0 {strides = array<i32>} : memref<18x48x4xbf16, #tpu.memory_space<vmem>>, vector<1x48x4xbf16>,
    %c17 = arith.constant 17 : index
    %c0_2 = arith.constant 0 : index
    %c0_3 = arith.constant 0 : index
    %2 = vector.load %arg9[%c17, %c0_2, %c0_3] : memref<18x48x4xbf16, #tpu.memory_space<vmem>>, vector<1x48x4xbf16>
    tpu.vector_store %arg9[%c17, %c0_2, %c0_3], %0 {strides = array<i32>} : memref<18x48x4xbf16, #tpu.memory_space<vmem>>, vector<1x48x4xbf16>,
    %cst_4 = arith.constant 0.000000e+00 : bf16
    %3 = vector.broadcast %cst_4 : bf16 to vector<18x1x4xbf16>
    %c0_5 = arith.constant 0 : index
    %c15 = arith.constant 15 : index
    %c0_6 = arith.constant 0 : index
    %4 = vector.load %arg9[%c0_5, %c15, %c0_6] : memref<18x48x4xbf16, #tpu.memory_space<vmem>>, vector<18x1x4xbf16>
    tpu.vector_store %arg9[%c0_5, %c15, %c0_6], %3 {strides = array<i32>} : memref<18x48x4xbf16, #tpu.memory_space<vmem>>, vector<18x1x4xbf16>,
    %c0_7 = arith.constant 0 : index
    %c32 = arith.constant 32 : index
    %c0_8 = arith.constant 0 : index
    %5 = vector.load %arg9[%c0_7, %c32, %c0_8] : memref<18x48x4xbf16, #tpu.memory_space<vmem>>, vector<18x1x4xbf16>
    tpu.vector_store %arg9[%c0_7, %c32, %c0_8], %3 {strides = array<i32>} : memref<18x48x4xbf16, #tpu.memory_space<vmem>>, vector<18x1x4xbf16>,
    %c0_9 = arith.constant 0 : index
    %c0_10 = arith.constant 0 : index
    %c0_11 = arith.constant 0 : index
    %c0_12 = arith.constant 0 : index
    %6 = vector.load %arg1[%c0_9, %c0_10, %c0_11, %c0_12] : memref<1x16x16x4xbf16, #tpu.memory_space<vmem>>, vector<1x16x16x4xbf16>
    %7 = vector.shape_cast %6 : vector<1x16x16x4xbf16> to vector<16x16x4xbf16>
    %c1 = arith.constant 1 : index
    %c16 = arith.constant 16 : index
    %c0_13 = arith.constant 0 : index
    %8 = vector.load %arg9[%c1, %c16, %c0_13] : memref<18x48x4xbf16, #tpu.memory_space<vmem>>, vector<16x16x4xbf16>
    tpu.vector_store %arg9[%c1, %c16, %c0_13], %7 {strides = array<i32>} : memref<18x48x4xbf16, #tpu.memory_space<vmem>>, vector<16x16x4xbf16>,
    %cst_14 = arith.constant 0.000000e+00 : f32
    %9 = vector.broadcast %cst_14 : f32 to vector<256x4xf32>
    %c0_15 = arith.constant 0 : index
    %c15_16 = arith.constant 15 : index
    %c0_17 = arith.constant 0 : index
    %10 = vector.load %arg9[%c0_15, %c15_16, %c0_17] : memref<18x48x4xbf16, #tpu.memory_space<vmem>>, vector<18x16x4xbf16>
    %11 = vector.extract_strided_slice %10 {offsets = [0, 0, 0], sizes = [16, 16, 4], strides = [1, 1, 1]} : vector<18x16x4xbf16> to vector<16x16x4xbf16>
    %12 = vector.shape_cast %11 : vector<16x16x4xbf16> to vector<256x4xbf16>
    %c0_18 = arith.constant 0 : index
    %c0_19 = arith.constant 0 : index
    %c0_20 = arith.constant 0 : index
    %13 = vector.load %arg2[%c0_18, %c0_19, %c0_20] : memref<9x4x4xbf16, #tpu.memory_space<vmem>>, vector<1x4x4xbf16>
    %14 = vector.shape_cast %13 : vector<1x4x4xbf16> to vector<4x4xbf16>
    %cst_21 = arith.constant dense<0.000000e+00> : vector<256x4xf32>
    %15 = tpu.matmul %12, %14, %cst_21 {dimension_numbers = #tpu.dot_dimension_numbers<[1], [0], [0], [1], [0, 0, 1, 1], [], []>} : vector<256x4xbf16>, vector<4x4xbf16>, vector<256x4xf32> -> vector<256x4xf32>
    %16 = arith.addf %9, %15 : vector<256x4xf32>
    %17 = vector.extract_strided_slice %10 {offsets = [1, 0, 0], sizes = [16, 16, 4], strides = [1, 1, 1]} : vector<18x16x4xbf16> to vector<16x16x4xbf16>
    %18 = vector.shape_cast %17 : vector<16x16x4xbf16> to vector<256x4xbf16>
    %c3 = arith.constant 3 : index
    %c0_22 = arith.constant 0 : index
    %c0_23 = arith.constant 0 : index
    %19 = vector.load %arg2[%c3, %c0_22, %c0_23] : memref<9x4x4xbf16, #tpu.memory_space<vmem>>, vector<1x4x4xbf16>
    %20 = vector.shape_cast %19 : vector<1x4x4xbf16> to vector<4x4xbf16>
    %cst_24 = arith.constant dense<0.000000e+00> : vector<256x4xf32>
    %21 = tpu.matmul %18, %20, %cst_24 {dimension_numbers = #tpu.dot_dimension_numbers<[1], [0], [0], [1], [0, 0, 1, 1], [], []>} : vector<256x4xbf16>, vector<4x4xbf16>, vector<256x4xf32> -> vector<256x4xf32>
    %22 = arith.addf %16, %21 : vector<256x4xf32>
    %23 = vector.extract_strided_slice %10 {offsets = [2, 0, 0], sizes = [16, 16, 4], strides = [1, 1, 1]} : vector<18x16x4xbf16> to vector<16x16x4xbf16>
    %24 = vector.shape_cast %23 : vector<16x16x4xbf16> to vector<256x4xbf16>
    %c6 = arith.constant 6 : index
    %c0_25 = arith.constant 0 : index
    %c0_26 = arith.constant 0 : index
    %25 = vector.load %arg2[%c6, %c0_25, %c0_26] : memref<9x4x4xbf16, #tpu.memory_space<vmem>>, vector<1x4x4xbf16>
    %26 = vector.shape_cast %25 : vector<1x4x4xbf16> to vector<4x4xbf16>
    %cst_27 = arith.constant dense<0.000000e+00> : vector<256x4xf32>
    %27 = tpu.matmul %24, %26, %cst_27 {dimension_numbers = #tpu.dot_dimension_numbers<[1], [0], [0], [1], [0, 0, 1, 1], [], []>} : vector<256x4xbf16>, vector<4x4xbf16>, vector<256x4xf32> -> vector<256x4xf32>
    %28 = arith.addf %22, %27 : vector<256x4xf32>
    %c0_28 = arith.constant 0 : index
    %c16_29 = arith.constant 16 : index
    %c0_30 = arith.constant 0 : index
    %29 = vector.load %arg9[%c0_28, %c16_29, %c0_30] : memref<18x48x4xbf16, #tpu.memory_space<vmem>>, vector<18x16x4xbf16>
    %30 = vector.extract_strided_slice %29 {offsets = [0, 0, 0], sizes = [16, 16, 4], strides = [1, 1, 1]} : vector<18x16x4xbf16> to vector<16x16x4xbf16>
    %31 = vector.shape_cast %30 : vector<16x16x4xbf16> to vector<256x4xbf16>
    %c1_31 = arith.constant 1 : index
    %c0_32 = arith.constant 0 : index
    %c0_33 = arith.constant 0 : index
    %32 = vector.load %arg2[%c1_31, %c0_32, %c0_33] : memref<9x4x4xbf16, #tpu.memory_space<vmem>>, vector<1x4x4xbf16>
    %33 = vector.shape_cast %32 : vector<1x4x4xbf16> to vector<4x4xbf16>
    %cst_34 = arith.constant dense<0.000000e+00> : vector<256x4xf32>
    %34 = tpu.matmul %31, %33, %cst_34 {dimension_numbers = #tpu.dot_dimension_numbers<[1], [0], [0], [1], [0, 0, 1, 1], [], []>} : vector<256x4xbf16>, vector<4x4xbf16>, vector<256x4xf32> -> vector<256x4xf32>
    %35 = arith.addf %28, %34 : vector<256x4xf32>
    %36 = vector.extract_strided_slice %29 {offsets = [1, 0, 0], sizes = [16, 16, 4], strides = [1, 1, 1]} : vector<18x16x4xbf16> to vector<16x16x4xbf16>
    %37 = vector.shape_cast %36 : vector<16x16x4xbf16> to vector<256x4xbf16>
    %c4 = arith.constant 4 : index
    %c0_35 = arith.constant 0 : index
    %c0_36 = arith.constant 0 : index
    %38 = vector.load %arg2[%c4, %c0_35, %c0_36] : memref<9x4x4xbf16, #tpu.memory_space<vmem>>, vector<1x4x4xbf16>
    %39 = vector.shape_cast %38 : vector<1x4x4xbf16> to vector<4x4xbf16>
    %cst_37 = arith.constant dense<0.000000e+00> : vector<256x4xf32>
    %40 = tpu.matmul %37, %39, %cst_37 {dimension_numbers = #tpu.dot_dimension_numbers<[1], [0], [0], [1], [0, 0, 1, 1], [], []>} : vector<256x4xbf16>, vector<4x4xbf16>, vector<256x4xf32> -> vector<256x4xf32>
    %41 = arith.addf %35, %40 : vector<256x4xf32>
    %42 = vector.extract_strided_slice %29 {offsets = [2, 0, 0], sizes = [16, 16, 4], strides = [1, 1, 1]} : vector<18x16x4xbf16> to vector<16x16x4xbf16>
    %43 = vector.shape_cast %42 : vector<16x16x4xbf16> to vector<256x4xbf16>
    %c7 = arith.constant 7 : index
    %c0_38 = arith.constant 0 : index
    %c0_39 = arith.constant 0 : index
    %44 = vector.load %arg2[%c7, %c0_38, %c0_39] : memref<9x4x4xbf16, #tpu.memory_space<vmem>>, vector<1x4x4xbf16>
    %45 = vector.shape_cast %44 : vector<1x4x4xbf16> to vector<4x4xbf16>
    %cst_40 = arith.constant dense<0.000000e+00> : vector<256x4xf32>
    %46 = tpu.matmul %43, %45, %cst_40 {dimension_numbers = #tpu.dot_dimension_numbers<[1], [0], [0], [1], [0, 0, 1, 1], [], []>} : vector<256x4xbf16>, vector<4x4xbf16>, vector<256x4xf32> -> vector<256x4xf32>
    %47 = arith.addf %41, %46 : vector<256x4xf32>
    %c0_41 = arith.constant 0 : index
    %c17_42 = arith.constant 17 : index
    %c0_43 = arith.constant 0 : index
    %48 = vector.load %arg9[%c0_41, %c17_42, %c0_43] : memref<18x48x4xbf16, #tpu.memory_space<vmem>>, vector<18x16x4xbf16>
    %49 = vector.extract_strided_slice %48 {offsets = [0, 0, 0], sizes = [16, 16, 4], strides = [1, 1, 1]} : vector<18x16x4xbf16> to vector<16x16x4xbf16>
    %50 = vector.shape_cast %49 : vector<16x16x4xbf16> to vector<256x4xbf16>
    %c2 = arith.constant 2 : index
    %c0_44 = arith.constant 0 : index
    %c0_45 = arith.constant 0 : index
    %51 = vector.load %arg2[%c2, %c0_44, %c0_45] : memref<9x4x4xbf16, #tpu.memory_space<vmem>>, vector<1x4x4xbf16>
    %52 = vector.shape_cast %51 : vector<1x4x4xbf16> to vector<4x4xbf16>
    %cst_46 = arith.constant dense<0.000000e+00> : vector<256x4xf32>
    %53 = tpu.matmul %50, %52, %cst_46 {dimension_numbers = #tpu.dot_dimension_numbers<[1], [0], [0], [1], [0, 0, 1, 1], [], []>} : vector<256x4xbf16>, vector<4x4xbf16>, vector<256x4xf32> -> vector<256x4xf32>
    %54 = arith.addf %47, %53 : vector<256x4xf32>
    %55 = vector.extract_strided_slice %48 {offsets = [1, 0, 0], sizes = [16, 16, 4], strides = [1, 1, 1]} : vector<18x16x4xbf16> to vector<16x16x4xbf16>
    %56 = vector.shape_cast %55 : vector<16x16x4xbf16> to vector<256x4xbf16>
    %c5 = arith.constant 5 : index
    %c0_47 = arith.constant 0 : index
    %c0_48 = arith.constant 0 : index
    %57 = vector.load %arg2[%c5, %c0_47, %c0_48] : memref<9x4x4xbf16, #tpu.memory_space<vmem>>, vector<1x4x4xbf16>
    %58 = vector.shape_cast %57 : vector<1x4x4xbf16> to vector<4x4xbf16>
    %cst_49 = arith.constant dense<0.000000e+00> : vector<256x4xf32>
    %59 = tpu.matmul %56, %58, %cst_49 {dimension_numbers = #tpu.dot_dimension_numbers<[1], [0], [0], [1], [0, 0, 1, 1], [], []>} : vector<256x4xbf16>, vector<4x4xbf16>, vector<256x4xf32> -> vector<256x4xf32>
    %60 = arith.addf %54, %59 : vector<256x4xf32>
    %61 = vector.extract_strided_slice %48 {offsets = [2, 0, 0], sizes = [16, 16, 4], strides = [1, 1, 1]} : vector<18x16x4xbf16> to vector<16x16x4xbf16>
    %62 = vector.shape_cast %61 : vector<16x16x4xbf16> to vector<256x4xbf16>
    %c8 = arith.constant 8 : index
    %c0_50 = arith.constant 0 : index
    %c0_51 = arith.constant 0 : index
    %63 = vector.load %arg2[%c8, %c0_50, %c0_51] : memref<9x4x4xbf16, #tpu.memory_space<vmem>>, vector<1x4x4xbf16>
    %64 = vector.shape_cast %63 : vector<1x4x4xbf16> to vector<4x4xbf16>
    %cst_52 = arith.constant dense<0.000000e+00> : vector<256x4xf32>
    %65 = tpu.matmul %62, %64, %cst_52 {dimension_numbers = #tpu.dot_dimension_numbers<[1], [0], [0], [1], [0, 0, 1, 1], [], []>} : vector<256x4xbf16>, vector<4x4xbf16>, vector<256x4xf32> -> vector<256x4xf32>
    %66 = arith.addf %60, %65 : vector<256x4xf32>
    %c0_53 = arith.constant 0 : index
    %c0_54 = arith.constant 0 : index
    %67 = vector.load %arg3[%c0_53, %c0_54] : memref<1x4xf32, #tpu.memory_space<vmem>>, vector<1x4xf32>
    %68 = vector.broadcast %67 : vector<1x4xf32> to vector<256x4xf32>
    %69 = arith.mulf %66, %68 : vector<256x4xf32>
    %c0_55 = arith.constant 0 : index
    %c0_56 = arith.constant 0 : index
    %70 = vector.load %arg4[%c0_55, %c0_56] : memref<1x4xf32, #tpu.memory_space<vmem>>, vector<1x4xf32>
    %71 = vector.broadcast %70 : vector<1x4xf32> to vector<256x4xf32>
    %72 = arith.addf %69, %71 : vector<256x4xf32>
    %cst_57 = arith.constant 0.000000e+00 : f32
    %73 = vector.broadcast %cst_57 : f32 to vector<256x4xf32>
    %74 = arith.maximumf %72, %73 : vector<256x4xf32>
    %cst_58 = arith.constant 0.000000e+00 : bf16
    %75 = vector.broadcast %cst_58 : bf16 to vector<1x48x4xbf16>
    %c0_59 = arith.constant 0 : index
    %c0_60 = arith.constant 0 : index
    %c0_61 = arith.constant 0 : index
    %76 = vector.load %arg10[%c0_59, %c0_60, %c0_61] : memref<18x48x4xbf16, #tpu.memory_space<vmem>>, vector<1x48x4xbf16>
    tpu.vector_store %arg10[%c0_59, %c0_60, %c0_61], %75 {strides = array<i32>} : memref<18x48x4xbf16, #tpu.memory_space<vmem>>, vector<1x48x4xbf16>,
    %c17_62 = arith.constant 17 : index
    %c0_63 = arith.constant 0 : index
    %c0_64 = arith.constant 0 : index
    %77 = vector.load %arg10[%c17_62, %c0_63, %c0_64] : memref<18x48x4xbf16, #tpu.memory_space<vmem>>, vector<1x48x4xbf16>
    tpu.vector_store %arg10[%c17_62, %c0_63, %c0_64], %75 {strides = array<i32>} : memref<18x48x4xbf16, #tpu.memory_space<vmem>>, vector<1x48x4xbf16>,
    %cst_65 = arith.constant 0.000000e+00 : bf16
    %78 = vector.broadcast %cst_65 : bf16 to vector<18x1x4xbf16>
    %c0_66 = arith.constant 0 : index
    %c15_67 = arith.constant 15 : index
    %c0_68 = arith.constant 0 : index
    %79 = vector.load %arg10[%c0_66, %c15_67, %c0_68] : memref<18x48x4xbf16, #tpu.memory_space<vmem>>, vector<18x1x4xbf16>
    tpu.vector_store %arg10[%c0_66, %c15_67, %c0_68], %78 {strides = array<i32>} : memref<18x48x4xbf16, #tpu.memory_space<vmem>>, vector<18x1x4xbf16>,
    %c0_69 = arith.constant 0 : index
    %c32_70 = arith.constant 32 : index
    %c0_71 = arith.constant 0 : index
    %80 = vector.load %arg10[%c0_69, %c32_70, %c0_71] : memref<18x48x4xbf16, #tpu.memory_space<vmem>>, vector<18x1x4xbf16>
    tpu.vector_store %arg10[%c0_69, %c32_70, %c0_71], %78 {strides = array<i32>} : memref<18x48x4xbf16, #tpu.memory_space<vmem>>, vector<18x1x4xbf16>,
    %81 = arith.truncf %74 : vector<256x4xf32> to vector<256x4xbf16>
    %82 = vector.shape_cast %81 : vector<256x4xbf16> to vector<16x16x4xbf16>
    %c1_72 = arith.constant 1 : index
    %c16_73 = arith.constant 16 : index
    %c0_74 = arith.constant 0 : index
    %83 = vector.load %arg10[%c1_72, %c16_73, %c0_74] : memref<18x48x4xbf16, #tpu.memory_space<vmem>>, vector<16x16x4xbf16>
    tpu.vector_store %arg10[%c1_72, %c16_73, %c0_74], %82 {strides = array<i32>} : memref<18x48x4xbf16, #tpu.memory_space<vmem>>, vector<16x16x4xbf16>,
    %cst_75 = arith.constant 0.000000e+00 : f32
    %84 = vector.broadcast %cst_75 : f32 to vector<256x4xf32>
    %c0_76 = arith.constant 0 : index
    %c15_77 = arith.constant 15 : index
    %c0_78 = arith.constant 0 : index
    %85 = vector.load %arg10[%c0_76, %c15_77, %c0_78] : memref<18x48x4xbf16, #tpu.memory_space<vmem>>, vector<18x16x4xbf16>
    %86 = vector.extract_strided_slice %85 {offsets = [0, 0, 0], sizes = [16, 16, 4], strides = [1, 1, 1]} : vector<18x16x4xbf16> to vector<16x16x4xbf16>
    %87 = vector.shape_cast %86 : vector<16x16x4xbf16> to vector<256x4xbf16>
    %c0_79 = arith.constant 0 : index
    %c0_80 = arith.constant 0 : index
    %c0_81 = arith.constant 0 : index
    %88 = vector.load %arg5[%c0_79, %c0_80, %c0_81] : memref<9x4x4xbf16, #tpu.memory_space<vmem>>, vector<1x4x4xbf16>
    %89 = vector.shape_cast %88 : vector<1x4x4xbf16> to vector<4x4xbf16>
    %cst_82 = arith.constant dense<0.000000e+00> : vector<256x4xf32>
    %90 = tpu.matmul %87, %89, %cst_82 {dimension_numbers = #tpu.dot_dimension_numbers<[1], [0], [0], [1], [0, 0, 1, 1], [], []>} : vector<256x4xbf16>, vector<4x4xbf16>, vector<256x4xf32> -> vector<256x4xf32>
    %91 = arith.addf %84, %90 : vector<256x4xf32>
    %92 = vector.extract_strided_slice %85 {offsets = [1, 0, 0], sizes = [16, 16, 4], strides = [1, 1, 1]} : vector<18x16x4xbf16> to vector<16x16x4xbf16>
    %93 = vector.shape_cast %92 : vector<16x16x4xbf16> to vector<256x4xbf16>
    %c3_83 = arith.constant 3 : index
    %c0_84 = arith.constant 0 : index
    %c0_85 = arith.constant 0 : index
    %94 = vector.load %arg5[%c3_83, %c0_84, %c0_85] : memref<9x4x4xbf16, #tpu.memory_space<vmem>>, vector<1x4x4xbf16>
    %95 = vector.shape_cast %94 : vector<1x4x4xbf16> to vector<4x4xbf16>
    %cst_86 = arith.constant dense<0.000000e+00> : vector<256x4xf32>
    %96 = tpu.matmul %93, %95, %cst_86 {dimension_numbers = #tpu.dot_dimension_numbers<[1], [0], [0], [1], [0, 0, 1, 1], [], []>} : vector<256x4xbf16>, vector<4x4xbf16>, vector<256x4xf32> -> vector<256x4xf32>
    %97 = arith.addf %91, %96 : vector<256x4xf32>
    %98 = vector.extract_strided_slice %85 {offsets = [2, 0, 0], sizes = [16, 16, 4], strides = [1, 1, 1]} : vector<18x16x4xbf16> to vector<16x16x4xbf16>
    %99 = vector.shape_cast %98 : vector<16x16x4xbf16> to vector<256x4xbf16>
    %c6_87 = arith.constant 6 : index
    %c0_88 = arith.constant 0 : index
    %c0_89 = arith.constant 0 : index
    %100 = vector.load %arg5[%c6_87, %c0_88, %c0_89] : memref<9x4x4xbf16, #tpu.memory_space<vmem>>, vector<1x4x4xbf16>
    %101 = vector.shape_cast %100 : vector<1x4x4xbf16> to vector<4x4xbf16>
    %cst_90 = arith.constant dense<0.000000e+00> : vector<256x4xf32>
    %102 = tpu.matmul %99, %101, %cst_90 {dimension_numbers = #tpu.dot_dimension_numbers<[1], [0], [0], [1], [0, 0, 1, 1], [], []>} : vector<256x4xbf16>, vector<4x4xbf16>, vector<256x4xf32> -> vector<256x4xf32>
    %103 = arith.addf %97, %102 : vector<256x4xf32>
    %c0_91 = arith.constant 0 : index
    %c16_92 = arith.constant 16 : index
    %c0_93 = arith.constant 0 : index
    %104 = vector.load %arg10[%c0_91, %c16_92, %c0_93] : memref<18x48x4xbf16, #tpu.memory_space<vmem>>, vector<18x16x4xbf16>
    %105 = vector.extract_strided_slice %104 {offsets = [0, 0, 0], sizes = [16, 16, 4], strides = [1, 1, 1]} : vector<18x16x4xbf16> to vector<16x16x4xbf16>
    %106 = vector.shape_cast %105 : vector<16x16x4xbf16> to vector<256x4xbf16>
    %c1_94 = arith.constant 1 : index
    %c0_95 = arith.constant 0 : index
    %c0_96 = arith.constant 0 : index
    %107 = vector.load %arg5[%c1_94, %c0_95, %c0_96] : memref<9x4x4xbf16, #tpu.memory_space<vmem>>, vector<1x4x4xbf16>
    %108 = vector.shape_cast %107 : vector<1x4x4xbf16> to vector<4x4xbf16>
    %cst_97 = arith.constant dense<0.000000e+00> : vector<256x4xf32>
    %109 = tpu.matmul %106, %108, %cst_97 {dimension_numbers = #tpu.dot_dimension_numbers<[1], [0], [0], [1], [0, 0, 1, 1], [], []>} : vector<256x4xbf16>, vector<4x4xbf16>, vector<256x4xf32> -> vector<256x4xf32>
    %110 = arith.addf %103, %109 : vector<256x4xf32>
    %111 = vector.extract_strided_slice %104 {offsets = [1, 0, 0], sizes = [16, 16, 4], strides = [1, 1, 1]} : vector<18x16x4xbf16> to vector<16x16x4xbf16>
    %112 = vector.shape_cast %111 : vector<16x16x4xbf16> to vector<256x4xbf16>
    %c4_98 = arith.constant 4 : index
    %c0_99 = arith.constant 0 : index
    %c0_100 = arith.constant 0 : index
    %113 = vector.load %arg5[%c4_98, %c0_99, %c0_100] : memref<9x4x4xbf16, #tpu.memory_space<vmem>>, vector<1x4x4xbf16>
    %114 = vector.shape_cast %113 : vector<1x4x4xbf16> to vector<4x4xbf16>
    %cst_101 = arith.constant dense<0.000000e+00> : vector<256x4xf32>
    %115 = tpu.matmul %112, %114, %cst_101 {dimension_numbers = #tpu.dot_dimension_numbers<[1], [0], [0], [1], [0, 0, 1, 1], [], []>} : vector<256x4xbf16>, vector<4x4xbf16>, vector<256x4xf32> -> vector<256x4xf32>
    %116 = arith.addf %110, %115 : vector<256x4xf32>
    %117 = vector.extract_strided_slice %104 {offsets = [2, 0, 0], sizes = [16, 16, 4], strides = [1, 1, 1]} : vector<18x16x4xbf16> to vector<16x16x4xbf16>
    %118 = vector.shape_cast %117 : vector<16x16x4xbf16> to vector<256x4xbf16>
    %c7_102 = arith.constant 7 : index
    %c0_103 = arith.constant 0 : index
    %c0_104 = arith.constant 0 : index
    %119 = vector.load %arg5[%c7_102, %c0_103, %c0_104] : memref<9x4x4xbf16, #tpu.memory_space<vmem>>, vector<1x4x4xbf16>
    %120 = vector.shape_cast %119 : vector<1x4x4xbf16> to vector<4x4xbf16>
    %cst_105 = arith.constant dense<0.000000e+00> : vector<256x4xf32>
    %121 = tpu.matmul %118, %120, %cst_105 {dimension_numbers = #tpu.dot_dimension_numbers<[1], [0], [0], [1], [0, 0, 1, 1], [], []>} : vector<256x4xbf16>, vector<4x4xbf16>, vector<256x4xf32> -> vector<256x4xf32>
    %122 = arith.addf %116, %121 : vector<256x4xf32>
    %c0_106 = arith.constant 0 : index
    %c17_107 = arith.constant 17 : index
    %c0_108 = arith.constant 0 : index
    %123 = vector.load %arg10[%c0_106, %c17_107, %c0_108] : memref<18x48x4xbf16, #tpu.memory_space<vmem>>, vector<18x16x4xbf16>
    %124 = vector.extract_strided_slice %123 {offsets = [0, 0, 0], sizes = [16, 16, 4], strides = [1, 1, 1]} : vector<18x16x4xbf16> to vector<16x16x4xbf16>
    %125 = vector.shape_cast %124 : vector<16x16x4xbf16> to vector<256x4xbf16>
    %c2_109 = arith.constant 2 : index
    %c0_110 = arith.constant 0 : index
    %c0_111 = arith.constant 0 : index
    %126 = vector.load %arg5[%c2_109, %c0_110, %c0_111] : memref<9x4x4xbf16, #tpu.memory_space<vmem>>, vector<1x4x4xbf16>
    %127 = vector.shape_cast %126 : vector<1x4x4xbf16> to vector<4x4xbf16>
    %cst_112 = arith.constant dense<0.000000e+00> : vector<256x4xf32>
    %128 = tpu.matmul %125, %127, %cst_112 {dimension_numbers = #tpu.dot_dimension_numbers<[1], [0], [0], [1], [0, 0, 1, 1], [], []>} : vector<256x4xbf16>, vector<4x4xbf16>, vector<256x4xf32> -> vector<256x4xf32>
    %129 = arith.addf %122, %128 : vector<256x4xf32>
    %130 = vector.extract_strided_slice %123 {offsets = [1, 0, 0], sizes = [16, 16, 4], strides = [1, 1, 1]} : vector<18x16x4xbf16> to vector<16x16x4xbf16>
    %131 = vector.shape_cast %130 : vector<16x16x4xbf16> to vector<256x4xbf16>
    %c5_113 = arith.constant 5 : index
    %c0_114 = arith.constant 0 : index
    %c0_115 = arith.constant 0 : index
    %132 = vector.load %arg5[%c5_113, %c0_114, %c0_115] : memref<9x4x4xbf16, #tpu.memory_space<vmem>>, vector<1x4x4xbf16>
    %133 = vector.shape_cast %132 : vector<1x4x4xbf16> to vector<4x4xbf16>
    %cst_116 = arith.constant dense<0.000000e+00> : vector<256x4xf32>
    %134 = tpu.matmul %131, %133, %cst_116 {dimension_numbers = #tpu.dot_dimension_numbers<[1], [0], [0], [1], [0, 0, 1, 1], [], []>} : vector<256x4xbf16>, vector<4x4xbf16>, vector<256x4xf32> -> vector<256x4xf32>
    %135 = arith.addf %129, %134 : vector<256x4xf32>
    %136 = vector.extract_strided_slice %123 {offsets = [2, 0, 0], sizes = [16, 16, 4], strides = [1, 1, 1]} : vector<18x16x4xbf16> to vector<16x16x4xbf16>
    %137 = vector.shape_cast %136 : vector<16x16x4xbf16> to vector<256x4xbf16>
    %c8_117 = arith.constant 8 : index
    %c0_118 = arith.constant 0 : index
    %c0_119 = arith.constant 0 : index
    %138 = vector.load %arg5[%c8_117, %c0_118, %c0_119] : memref<9x4x4xbf16, #tpu.memory_space<vmem>>, vector<1x4x4xbf16>
    %139 = vector.shape_cast %138 : vector<1x4x4xbf16> to vector<4x4xbf16>
    %cst_120 = arith.constant dense<0.000000e+00> : vector<256x4xf32>
    %140 = tpu.matmul %137, %139, %cst_120 {dimension_numbers = #tpu.dot_dimension_numbers<[1], [0], [0], [1], [0, 0, 1, 1], [], []>} : vector<256x4xbf16>, vector<4x4xbf16>, vector<256x4xf32> -> vector<256x4xf32>
    %141 = arith.addf %135, %140 : vector<256x4xf32>
    %c0_121 = arith.constant 0 : index
    %c0_122 = arith.constant 0 : index
    %142 = vector.load %arg6[%c0_121, %c0_122] : memref<1x4xf32, #tpu.memory_space<vmem>>, vector<1x4xf32>
    %143 = vector.broadcast %142 : vector<1x4xf32> to vector<256x4xf32>
    %144 = arith.mulf %141, %143 : vector<256x4xf32>
    %c0_123 = arith.constant 0 : index
    %c0_124 = arith.constant 0 : index
    %145 = vector.load %arg7[%c0_123, %c0_124] : memref<1x4xf32, #tpu.memory_space<vmem>>, vector<1x4xf32>
    %146 = vector.broadcast %145 : vector<1x4xf32> to vector<256x4xf32>
    %147 = arith.addf %144, %146 : vector<256x4xf32>
    %c0_125 = arith.constant 0 : index
    %c0_126 = arith.constant 0 : index
    %c0_127 = arith.constant 0 : index
    %c0_128 = arith.constant 0 : index
    %148 = vector.load %arg1[%c0_125, %c0_126, %c0_127, %c0_128] : memref<1x16x16x4xbf16, #tpu.memory_space<vmem>>, vector<1x16x16x4xbf16>
    %149 = vector.shape_cast %148 : vector<1x16x16x4xbf16> to vector<16x16x4xbf16>
    %150 = arith.extf %149 : vector<16x16x4xbf16> to vector<16x16x4xf32>
    %151 = vector.shape_cast %150 : vector<16x16x4xf32> to vector<256x4xf32>
    %152 = arith.addf %147, %151 : vector<256x4xf32>
    %cst_129 = arith.constant 0.000000e+00 : f32
    %153 = vector.broadcast %cst_129 : f32 to vector<256x4xf32>
    %154 = arith.maximumf %152, %153 : vector<256x4xf32>
    %155 = vector.shape_cast %154 : vector<256x4xf32> to vector<1x16x16x4xf32>
    %c0_130 = arith.constant 0 : index
    %c0_131 = arith.constant 0 : index
    %c0_132 = arith.constant 0 : index
    %c0_133 = arith.constant 0 : index
    %156 = vector.load %arg8[%c0_130, %c0_131, %c0_132, %c0_133] : memref<1x16x16x4xf32, #tpu.memory_space<vmem>>, vector<1x16x16x4xf32>
    tpu.vector_store %arg8[%c0_130, %c0_131, %c0_132, %c0_133], %155 {strides = array<i32>} : memref<1x16x16x4xf32, #tpu.memory_space<vmem>>, vector<1x16x16x4xf32>,
    return
  }
  func.func @transform_0(%arg0: i32) -> (i32, i32, i32, i32) {
    %c0_i32 = arith.constant 0 : i32
    %c0_i32_0 = arith.constant 0 : i32
    %c0_i32_1 = arith.constant 0 : i32
    %c0_i32_2 = arith.constant 0 : i32
    return %arg0, %c0_i32, %c0_i32_0, %c0_i32_1 : i32, i32, i32, i32
  }
  func.func @transform_1(%arg0: i32) -> (i32, i32, i32) {
    %c0_i32 = arith.constant 0 : i32
    %c0_i32_0 = arith.constant 0 : i32
    %c0_i32_1 = arith.constant 0 : i32
    %c0_i32_2 = arith.constant 0 : i32
    return %c0_i32, %c0_i32_0, %c0_i32_1 : i32, i32, i32
  }
  func.func @transform_2(%arg0: i32) -> (i32, i32) {
    %c0_i32 = arith.constant 0 : i32
    %c0_i32_0 = arith.constant 0 : i32
    %c0_i32_1 = arith.constant 0 : i32
    return %c0_i32, %c0_i32_0 : i32, i32
  }
  func.func @transform_3(%arg0: i32) -> (i32, i32) {
    %c0_i32 = arith.constant 0 : i32
    %c0_i32_0 = arith.constant 0 : i32
    %c0_i32_1 = arith.constant 0 : i32
    return %c0_i32, %c0_i32_0 : i32, i32
  }
  func.func @transform_4(%arg0: i32) -> (i32, i32, i32) {
    %c0_i32 = arith.constant 0 : i32
    %c0_i32_0 = arith.constant 0 : i32
    %c0_i32_1 = arith.constant 0 : i32
    %c0_i32_2 = arith.constant 0 : i32
    return %c0_i32, %c0_i32_0, %c0_i32_1 : i32, i32, i32
  }
  func.func @transform_5(%arg0: i32) -> (i32, i32) {
    %c0_i32 = arith.constant 0 : i32
    %c0_i32_0 = arith.constant 0 : i32
    %c0_i32_1 = arith.constant 0 : i32
    return %c0_i32, %c0_i32_0 : i32, i32
  }
  func.func @transform_6(%arg0: i32) -> (i32, i32) {
    %c0_i32 = arith.constant 0 : i32
    %c0_i32_0 = arith.constant 0 : i32
    %c0_i32_1 = arith.constant 0 : i32
    return %c0_i32, %c0_i32_0 : i32, i32
  }
  func.func @transform_7(%arg0: i32) -> (i32, i32, i32, i32) {
    %c0_i32 = arith.constant 0 : i32
    %c0_i32_0 = arith.constant 0 : i32
    %c0_i32_1 = arith.constant 0 : i32
    %c0_i32_2 = arith.constant 0 : i32
    return %arg0, %c0_i32, %c0_i32_0, %c0_i32_1 : i32, i32, i32, i32
  }
}

</mosaic_0001>

<bundles_post_ra>
// kernel: tpu_custom_call.1
= control target key start
LH: loop header
LB: loop body
LE: loop exit
PB: predicated region body
PF: predicated region fallthrough
CT: control target
= control target key end

     0   :  { %s7768_s24 = smov 0   ;;  %s9374_s0 = inlined_call_operand.vmem [shape: bf16[2,16,16,4], index: 0, kind: input, shape index: {}]   ;;  %s9375_s1 = inlined_call_operand.vmem [shape: bf16[9,4,4], index: 1, kind: input, shape index: {}]   ;;  %s9376_s2 = inlined_call_operand.vmem [shape: f32[1,4], index: 2, kind: input, shape index: {}]   ;;  %s9377_s3 = inlined_call_operand.vmem [shape: f32[1,4], index: 3, kind: input, shape index: {}]   ;;  %s9378_s4 = inlined_call_operand.vmem [shape: bf16[9,4,4], index: 4, kind: input, shape index: {}]   ;;  %s9379_s5 = inlined_call_operand.vmem [shape: f32[1,4], index: 5, kind: input, shape index: {}]   ;;  %s9380_s6 = inlined_call_operand.vmem [shape: f32[1,4], index: 6, kind: input, shape index: {}]   ;;  %s9381_s7 = inlined_call_operand.vmem [shape: f32[2,16,16,4], index: 7, kind: output, shape index: {}]  }
   0x1 LB: > { %s5830_s25 = sadd.s32 4294967295, %s7725_s24   ;;  %p5834_p0 = scmp.ge.s32.totalorder %s7725_s24, 1  ;;  %s7725_s24 = sphi %s7768_s24, %s17_s24  }
   0x2   : > { %p237_p1 = scmp.lt.s32.totalorder %s7725_s24, 3 }
   0x4   : > { %p238_p2 = pnand %p5834_p0, %p237_p1 }
   0x6   : > { %241 = sbr.rel (%p238_p2) target bundleno = 1583 (0x62f), region = 48 }
   0xd   : > { %v5855_v0 = vld [vmem:[%s9375_s1 + $0x6] sm:$0x3]  ;;  %vm838_vm0 = vcmask 1041408   ;;  %p269_p3 = scmp.lt.s32.totalorder %s5830_s25, 1  ;;  %vm280_vm1 = vcmask 31744   ;;  %vm288_vm2 = vcmask 31751  }
   0xe   : > { %7676 = vmatprep.subr.msk.bf16.mxu0 %vm838_vm0, %v5855_v0  ;;  %v840_v1 = vsel %vm838_vm0, %v5855_v0, 0  ;;  %vm289_vm3 = vsmask.f32 7966  ;;  %v294_v2 = vld [vmem:[#allocation2 + $0x18] sm:$0x80]  ;;  %v7727_v5 = vmov 0  }
   0xf   : > { %6553 = vmatpush3.bf16.msra.mxu0 %v840_v1  ;;  %s9433_s25 = smov (!%p269_p3, %s5830_s25), 1  ;;  %vm7783_vm4 = vmand %vm288_vm2, %vm289_vm3  ;;  %v775_v4 = vld [vmem:[%s9375_s1] sm:$0x3]  ;;  %281 = vst.msk [vmem:[#allocation2] sm:$0xff] %vm280_vm1, %v7727_v5  ;;  %v297_v7 = vld [vmem:[#allocation2 + $0x30] sm:$0x80] }
  0x10   : > { %282 = vst.msk [vmem:[#allocation2 + $0x8] sm:$0xff] %vm280_vm1, %v7727_v5  ;;  %283 = vst.msk [vmem:[#allocation2 + $0x10] sm:$0xff] %vm280_vm1, %v7727_v5  ;;  %v295_v6 = vsel %vm7783_vm4, 0, %v294_v2  ;;  %7677 = vmatprep.subr.msk.bf16.mxu0 %vm838_vm0, %v775_v4  ;;  %v300_v8 = vld [vmem:[#allocation2 + $0x48] sm:$0x80]  ;;  %s6165_s30 = sshll.u32 %s9433_s25, 7 }
  0x11   : > { %285 = vst.msk [vmem:[#allocation2 + $0x198] sm:$0xff] %vm280_vm1, %v7727_v5  ;;  %286 = vst.msk [vmem:[#allocation2 + $0x1a0] sm:$0xff] %vm280_vm1, %v7727_v5  ;;  %v298_v9 = vsel %vm7783_vm4, 0, %v297_v7  ;;  %v301_v10 = vsel %vm7783_vm4, 0, %v300_v8  ;;  %v303_v11 = vld [vmem:[#allocation2 + $0x60] sm:$0x80]  ;;  %s7813_s10 = scalar_lea.vmem %s9374_s0, %s6165_s30 }
  0x12   : > { %287 = vst.msk [vmem:[#allocation2 + $0x1a8] sm:$0xff] %vm280_vm1, %v7727_v5  ;;  %3024 = vst.msk [vmem:[#allocation3] sm:$0xff] %vm280_vm1, %v7727_v5  ;;  %v304_v12 = vsel %vm7783_vm4, 0, %v303_v11  ;;  %v306_v13 = vld [vmem:[#allocation2 + $0x78] sm:$0x80]  ;;  %v7703_v15 = vld [vmem:[%s7813_s10] sm:$0xff]  }
  0x13   : > { %3025 = vst.msk [vmem:[#allocation3 + $0x8] sm:$0xff] %vm280_vm1, %v7727_v5  ;;  %3026 = vst.msk [vmem:[#allocation3 + $0x10] sm:$0xff] %vm280_vm1, %v7727_v5  ;;  %v309_v14 = vld [vmem:[#allocation2 + $0x90] sm:$0x80]  ;;  %v307_v16 = vsel %vm7783_vm4, 0, %v306_v13  ;;  %v7704_v17 = vld [vmem:[%s7813_s10 + $0x8] sm:$0xff]  }
  0x14   : > { %3028 = vst.msk [vmem:[#allocation3 + $0x198] sm:$0xff] %vm280_vm1, %v7727_v5  ;;  %3029 = vst.msk [vmem:[#allocation3 + $0x1a0] sm:$0xff] %vm280_vm1, %v7727_v5  ;;  %v310_v18 = vsel %vm7783_vm4, 0, %v309_v14  ;;  %v7705_v19 = vld [vmem:[%s7813_s10 + $0x10] sm:$0xff]   ;;  %v7706_v20 = vld [vmem:[%s7813_s10 + $0x18] sm:$0xff]   ;;  %v1007_v35 = vsel %vm838_vm0, %v775_v4, 0 }
  0x15   : > { %3030 = vst.msk [vmem:[#allocation3 + $0x1a8] sm:$0xff] %vm280_vm1, %v7727_v5  ;;  %296 = vst [vmem:[#allocation2 + $0x18] sm:$0x80] %v295_v6  ;;  %v7707_v21 = vld [vmem:[%s7813_s10 + $0x20] sm:$0xff]   ;;  %v7708_v26 = vld [vmem:[%s7813_s10 + $0x28] sm:$0xff]   ;;  %vm345_vm6 = vcmask 24576  }
  0x16   : > { %299 = vst [vmem:[#allocation2 + $0x30] sm:$0x80] %v298_v9  ;;  %302 = vst [vmem:[#allocation2 + $0x48] sm:$0x80] %v301_v10  ;;  %v312_v29 = vld [vmem:[#allocation2 + $0xa8] sm:$0x80] }
  0x17   : > { %305 = vst [vmem:[#allocation2 + $0x60] sm:$0x80] %v304_v12  ;;  %308 = vst [vmem:[#allocation2 + $0x78] sm:$0x80] %v307_v16  ;;  %v313_v31 = vsel %vm7783_vm4, 0, %v312_v29  ;;  %v7709_v32 = vld [vmem:[%s7813_s10 + $0x30] sm:$0xff]  }
  0x18   : > { %531 = vst.msk [vmem:[#allocation2 + $0x20] sm:$0xff] %vm280_vm1, %v7703_v15  ;;  %311 = vst [vmem:[#allocation2 + $0x90] sm:$0x80] %v310_v18  ;;  %vm346_vm5 = vsmask.f32 256  ;;  %v7710_v41 = vld [vmem:[%s7813_s10 + $0x38] sm:$0xff]  }
  0x19   : > { %532 = vst.msk [vmem:[#allocation2 + $0x38] sm:$0xff] %vm280_vm1, %v7704_v17  ;;  %533 = vst.msk [vmem:[#allocation2 + $0x50] sm:$0xff] %vm280_vm1, %v7705_v19  ;;  %v7711_v51 = vld [vmem:[%s7813_s10 + $0x40] sm:$0xff]   ;;  %v7712_v61 = vld [vmem:[%s7813_s10 + $0x48] sm:$0xff]   ;;  %vm2049_vm8 = vsmask.f32 7424 }
  0x1a   : > { %534 = vst.msk [vmem:[#allocation2 + $0x68] sm:$0xff] %vm280_vm1, %v7706_v20  ;;  %535 = vst.msk [vmem:[#allocation2 + $0x80] sm:$0xff] %vm280_vm1, %v7707_v21  ;;  %v315_v60 = vld [vmem:[#allocation2 + $0xc0] sm:$0x80]  ;;  %v7713_v2 = vld [vmem:[%s7813_s10 + $0x50] sm:$0xff]   ;;  %s6166_s11 = sshll.u32 %s9433_s25, 8 }
  0x1b   : > { %536 = vst.msk [vmem:[#allocation2 + $0x98] sm:$0xff] %vm280_vm1, %v7708_v26  ;;  %314 = vst [vmem:[#allocation2 + $0xa8] sm:$0x80] %v313_v31  ;;  %v316_v1 = vsel %vm7783_vm4, 0, %v315_v60  ;;  %v318_v11 = vld [vmem:[#allocation2 + $0xd8] sm:$0x80]  ;;  %s9234_s14 = scalar_lea.vmem %s9381_s7, %s6166_s11 }
  0x1c   : > { %v549_v22 = vld [vmem:[#allocation2 + $0x18] sm:$0x80]  ;;  %537 = vst.msk [vmem:[#allocation2 + $0xb0] sm:$0xff] %vm280_vm1, %v7709_v32  ;;  %538 = vst.msk [vmem:[#allocation2 + $0xc8] sm:$0xff] %vm280_vm1, %v7710_v41  ;;  %v319_v18 = vsel %vm7783_vm4, 0, %v318_v11  ;;  %v7715_v26 = vld [vmem:[%s7813_s10 + $0x60] sm:$0xff]  }
  0x1d   : > { %v596_v23 = vshrl.u32 %v549_v22, 16  ;;  %v551_v24 = vld [vmem:[#allocation2 + $0x30] sm:$0x80]  ;;  %v553_v25 = vld [vmem:[#allocation2 + $0x48] sm:$0x80]  ;;  %539 = vst.msk [vmem:[#allocation2 + $0xe0] sm:$0xff] %vm280_vm1, %v7711_v51  ;;  %vm8207_vm7 = vmand %vm345_vm6, %vm346_vm5 }
  0x1e   : > { %v608_v27 = vshrl.u32 %v551_v24, 16  ;;  %v7832_v28 = vld [vmem:[#allocation2 + $0x60] sm:$0x80]  ;;  %v620_v30 = vshrl.u32 %v553_v25, 16  ;;  %v557_v40 = vld [vmem:[#allocation2 + $0x78] sm:$0x80] }
  0x1f   : > { %v7838_v33 = vld [vmem:[#allocation2 + $0x20] sm:$0xff]  ;;  %v598_v34 = vrot.slane %v596_v23, 7  ;;  %v632_v36 = vshrl.u32 %v7832_v28, 16  ;;  %v644_v55 = vshrl.u32 %v557_v40, 16  ;;  %v559_v8 = vld [vmem:[#allocation2 + $0x90] sm:$0x80] }
  0x20   : > { %v600_v37 = vshrl.u32 %v7838_v33, 16  ;;  %v603_v38 = vshll.u32 %v7838_v33, 16  ;;  %v7844_v39 = vld [vmem:[#allocation2 + $0x38] sm:$0xff]  ;;  %v610_v42 = vrot.slane %v608_v27, 7  ;;  %v7850_v45 = vld [vmem:[#allocation2 + $0x50] sm:$0xff]  ;;  %v622_v47 = vrot.slane %v620_v30, 7 }
  0x21   : > { %v612_v43 = vshrl.u32 %v7844_v39, 16  ;;  %v615_v44 = vshll.u32 %v7844_v39, 16  ;;  %v624_v48 = vshrl.u32 %v7850_v45, 16  ;;  %v627_v49 = vshll.u32 %v7850_v45, 16  ;;  %v7856_v50 = vld [vmem:[#allocation2 + $0x68] sm:$0xff]  ;;  %v7863_v54 = vld [vmem:[#allocation2 + $0x80] sm:$0xff] }
  0x22   : > { %v602_v46 = vrot.slane %v600_v37, 7  ;;  %v636_v53 = vshrl.u32 %v7856_v50, 16  ;;  %v639_v58 = vshll.u32 %v7856_v50, 16  ;;  %v648_v59 = vshrl.u32 %v7863_v54, 16  ;;  %v7877_v0 = vld [vmem:[#allocation2 + $0x98] sm:$0xff]  ;;  %540 = vst.msk [vmem:[#allocation2 + $0xf8] sm:$0xff] %vm280_vm1, %v7712_v61 }
  0x23   : > { %v614_v52 = vrot.slane %v612_v43, 7  ;;  %v626_v57 = vrot.slane %v624_v48, 7  ;;  %v651_v7 = vshll.u32 %v7863_v54, 16  ;;  %317 = vst [vmem:[#allocation2 + $0xc0] sm:$0x80] %v316_v1  ;;  %v7896_v10 = vld [vmem:[#allocation2 + $0xb0] sm:$0xff] }
  0x24   : > { %v605_v56 = vor.u32 %v603_v38, %v602_v46  ;;  %v638_v63 = vrot.slane %v636_v53, 7  ;;  %v650_v6 = vrot.slane %v648_v59, 7  ;;  %541 = vst.msk [vmem:[#allocation2 + $0x110] sm:$0xff] %vm280_vm1, %v7713_v2  ;;  %v7714_v12 = vld [vmem:[%s7813_s10 + $0x58] sm:$0xff]   ;;  %v660_v14 = vshrl.u32 %v7877_v0, 16  ;;  %v7925_v31 = vld [vmem:[#allocation2 + $0xc8] sm:$0xff] }
  0x25   : > { %v617_v62 = vor.u32 %v615_v44, %v614_v52  ;;  %v629_v5 = vor.u32 %v627_v49, %v626_v57  ;;  %v634_v15 = vrot.slane %v632_v36, 7  ;;  %v561_v17 = vld [vmem:[#allocation2 + $0xa8] sm:$0x80]  ;;  %v321_v19 = vld [vmem:[#allocation2 + $0xf0] sm:$0x80]  ;;  %542 = vst.msk [vmem:[#allocation2 + $0x128] sm:$0xff] %vm280_vm1, %v7714_v12 }
  0x26   : > { %v7883_v4 = vsel %vm346_vm5, %v598_v34, %v605_v56  ;;  %v641_v16 = vor.u32 %v639_v58, %v638_v63  ;;  %v646_v20 = vrot.slane %v644_v55, 7  ;;  %v653_v21 = vor.u32 %v651_v7, %v650_v6  ;;  %320 = vst [vmem:[#allocation2 + $0xd8] sm:$0x80] %v319_v18  ;;  %v324_v25 = vld [vmem:[#allocation2 + $0x108] sm:$0x80]  ;;  %543 = vst.msk [vmem:[#allocation2 + $0x140] sm:$0xff] %vm280_vm1, %v7715_v26 }
  0x27   : > { %6554 = vmatprep.mubr.msk.bf16.mxu0 %vm280_vm1, %v7883_v4  ;;  %v7894_v9 = vsel %vm346_vm5, %v610_v42, %v617_v62  ;;  %v7903_v13 = vsel %vm346_vm5, %v622_v47, %v629_v5  ;;  %v9396_v22 = vshrl.u32 %v7896_v10, 16  ;;  %v656_v23 = vshrl.u32 %v559_v8, 16  ;;  %v7716_v34 = vld [vmem:[%s7813_s10 + $0x68] sm:$0xff]   ;;  %v7937_v41 = vld [vmem:[#allocation2 + $0xe0] sm:$0xff]  ;;  %v7717_v46 = vld [vmem:[%s7813_s10 + $0x70] sm:$0xff]  }
  0x28   : > { %6555 = vmatmul.mubr.msk.bf16.vlgmr.msra.gmra.mrb[0].mxu0 %vm280_vm1, %v7894_v9  ;;  %v322_v24 = vsel %vm7783_vm4, 0, %v321_v19  ;;  %v662_v27 = vrot.slane %v660_v14, 7  ;;  %v663_v28 = vshll.u32 %v7877_v0, 16  ;;  %v7923_v29 = vsel %vm346_vm5, %v634_v15, %v641_v16  ;;  %v327_v42 = vld [vmem:[#allocation2 + $0x120] sm:$0x80]  ;;  %544 = vst.msk [vmem:[#allocation2 + $0x158] sm:$0xff] %vm280_vm1, %v7716_v34 }
  0x29   : > { %6587 = vmatpush3.bf16.msra.mxu0 %v1007_v35  ;;  %6558 = vmatprep.mubr.msk.bf16.mxu0 %vm280_vm1, %v7903_v13  ;;  %323 = vst [vmem:[#allocation2 + $0xf0] sm:$0x80] %v322_v24  ;;  %v668_v30 = vshrl.u32 %v561_v17, 16  ;;  %v325_v32 = vsel %vm7783_vm4, 0, %v324_v25  ;;  %v7932_v35 = vsel %vm346_vm5, %v646_v20, %v653_v21  ;;  %v674_v36 = vrot.slane %v9396_v22, 7  ;;  %545 = vst.msk [vmem:[#allocation2 + $0x170] sm:$0xff] %vm280_vm1, %v7717_v46 }
  0x2a   : > { %v675_v40 = vshll.u32 %v7896_v10, 16  ;;  %326 = vst [vmem:[#allocation2 + $0x108] sm:$0x80] %v325_v32  ;;  %v658_v47 = vrot.slane %v656_v23, 7  ;;  %v665_v51 = vor.u32 %v663_v28, %v662_v27  ;;  %v328_v52 = vsel %vm7783_vm4, 0, %v327_v42  ;;  %v7718_v55 = vld [vmem:[%s7813_s10 + $0x78] sm:$0xff]  }
  0x2b   : > { %v670_v56 = vrot.slane %v668_v30, 7  ;;  %v9394_v57 = vshrl.u32 %v7925_v31, 16  ;;  %v9389_v60 = vshrl.u32 %v7937_v41, 16  ;;  %329 = vst [vmem:[#allocation2 + $0x120] sm:$0x80] %v328_v52  ;;  %546 = vst.msk [vmem:[#allocation2 + $0x188] sm:$0xff] %vm280_vm1, %v7718_v55 }
  0x2c   : > { %v677_v61 = vor.u32 %v675_v40, %v674_v36  ;;  %v563_v62 = vld [vmem:[#allocation2 + $0xc0] sm:$0x80]  ;;  %v330_v63 = vld [vmem:[#allocation2 + $0x138] sm:$0x80]  ;;  %v7959_v5 = vsel %vm346_vm5, %v658_v47, %v665_v51  ;;  %v687_v6 = vshll.u32 %v7925_v31, 16  ;;  %v9393_v15 = vshll.u32 %v7937_v41, 16 }
  0x2d   : > { %v565_v1 = vld [vmem:[#allocation2 + $0xd8] sm:$0x80]  ;;  %v331_v2 = vsel %vm7783_vm4, 0, %v330_v63  ;;  %v333_v8 = vld [vmem:[#allocation2 + $0x150] sm:$0x80]  ;;  %v680_v11 = vshrl.u32 %v563_v62, 16 }
  0x2e   : > { %332 = vst [vmem:[#allocation2 + $0x138] sm:$0x80] %v331_v2  ;;  %v686_v12 = vrot.slane %v9394_v57, 7  ;;  %v7965_v16 = vld [vmem:[#allocation2 + $0xf8] sm:$0xff]  ;;  %v334_v17 = vsel %vm7783_vm4, 0, %v333_v8  ;;  %v7970_v18 = vsel %vm346_vm5, %v670_v56, %v677_v61  ;;  %v692_v19 = vshrl.u32 %v565_v1, 16 }
  0x2f   : > { %v698_v20 = vrot.slane %v9389_v60, 7  ;;  %335 = vst [vmem:[#allocation2 + $0x150] sm:$0x80] %v334_v17  ;;  %v7974_v21 = vld [vmem:[#allocation2 + $0x110] sm:$0xff]  ;;  %v336_v23 = vld [vmem:[#allocation2 + $0x168] sm:$0x80] }
  0x30   : > { %6559 = vmatmul.mubr.msk.bf16.gmra.mrb[4].mxu0 %vm280_vm1, %v7923_v29  ;;  %v9386_v24 = vshrl.u32 %v7965_v16, 16  ;;  %v682_v25 = vrot.slane %v680_v11, 7  ;;  %v689_v26 = vor.u32 %v687_v6, %v686_v12  ;;  %v567_v27 = vld [vmem:[#allocation2 + $0xf0] sm:$0x80]  ;;  %v337_v30 = vsel %vm7783_vm4, 0, %v336_v23  ;;  %v8009_v12 = vld [vmem:[#allocation2 + $0x128] sm:$0xff] }
  0x31   : > { %6562 = vmatprep.mubr.msk.bf16.mxu0 %vm280_vm1, %v7932_v35  ;;  %v694_v32 = vrot.slane %v692_v19, 7  ;;  %v701_v34 = vor.u32 %v9393_v15, %v698_v20  ;;  %v9384_v36 = vshrl.u32 %v7974_v21, 16  ;;  %338 = vst [vmem:[#allocation2 + $0x168] sm:$0x80] %v337_v30  ;;  %v339_v42 = vld [vmem:[#allocation2 + $0x180] sm:$0x80] }
  0x32   : > { %v569_v46 = vld [vmem:[#allocation2 + $0x108] sm:$0x80]  ;;  %v340_v47 = vsel %vm7783_vm4, 0, %v339_v42  ;;  %v9392_v51 = vshll.u32 %v7965_v16, 16  ;;  %v291_v52 = vld [vmem:[#allocation2] sm:$0x80]  ;;  %v7992_v55 = vsel %vm346_vm5, %v682_v25, %v689_v26 }
  0x33   : > { %341 = vst [vmem:[#allocation2 + $0x180] sm:$0x80] %v340_v47  ;;  %v704_v56 = vshrl.u32 %v567_v27, 16  ;;  %v710_v61 = vrot.slane %v9386_v24, 7  ;;  %v292_v62 = vsel %vm7783_vm4, 0, %v291_v52  ;;  %v8004_v1 = vsel %vm346_vm5, %v694_v32, %v701_v34  ;;  %v8013_v17 = vld [vmem:[#allocation2 + $0x140] sm:$0xff] }
  0x34   : > { %v8001_v63 = vld [vmem:[%s9375_s1 + $0xc] sm:$0x3]  ;;  %v716_v2 = vshrl.u32 %v569_v46, 16  ;;  %v722_v8 = vrot.slane %v9384_v36, 7  ;;  %v9385_v11 = vshll.u32 %v7974_v21, 16  ;;  %v9383_v23 = vshrl.u32 %v8009_v12, 16 }
  0x35   : > { %293 = vst [vmem:[#allocation2] sm:$0x80] %v292_v62  ;;  %7678 = vmatprep.subr.msk.bf16.mxu0 %vm838_vm0, %v8001_v63  ;;  %v706_v19 = vrot.slane %v704_v56, 7  ;;  %v713_v20 = vor.u32 %v9392_v51, %v710_v61  ;;  %v571_v27 = vld [vmem:[#allocation2 + $0x120] sm:$0x80]  ;;  %v9382_v30 = vshrl.u32 %v8013_v17, 16 }
  0x36   : > { %v718_v25 = vrot.slane %v716_v2, 7  ;;  %v725_v26 = vor.u32 %v9385_v11, %v722_v8  ;;  %v573_v32 = vld [vmem:[#allocation2 + $0x138] sm:$0x80]  ;;  %v728_v42 = vshrl.u32 %v571_v27, 16  ;;  %v734_v46 = vrot.slane %v9383_v23, 7  ;;  %v8039_v8 = vld [vmem:[#allocation2 + $0x170] sm:$0xff] }
  0x37   : > { %v8026_v34 = vsel %vm346_vm5, %v706_v19, %v713_v20  ;;  %v9388_v47 = vshll.u32 %v8009_v12, 16  ;;  %v740_v56 = vshrl.u32 %v573_v32, 16  ;;  %v746_v61 = vrot.slane %v9382_v30, 7  ;;  %v8037_v2 = vld [vmem:[#allocation2 + $0x158] sm:$0xff]  ;;  %v575_v32 = vld [vmem:[#allocation2 + $0x150] sm:$0x80] }
  0x38   : > { %6563 = vmatmul.mubr.msk.bf16.gmra.mrb[8].mxu0 %vm280_vm1, %v7959_v5  ;;  %v8032_v52 = vsel %vm346_vm5, %v718_v25, %v725_v26  ;;  %v9387_v62 = vshll.u32 %v8013_v17, 16  ;;  %v730_v19 = vrot.slane %v728_v42, 7  ;;  %v9391_v25 = vshrl.u32 %v8037_v2, 16  ;;  %v577_v23 = vld [vmem:[#allocation2 + $0x168] sm:$0x80] }
  0x39   : > { %6566 = vmatprep.mubr.msk.bf16.mxu0 %vm280_vm1, %v7970_v18  ;;  %v737_v20 = vor.u32 %v9388_v47, %v734_v46  ;;  %v742_v26 = vrot.slane %v740_v56, 7  ;;  %v9390_v30 = vshrl.u32 %v8039_v8, 16  ;;  %v752_v11 = vshrl.u32 %v575_v32, 16  ;;  %v8063_v47 = vld [vmem:[#allocation2 + $0x188] sm:$0xff] }
  0x3a   : > { %v749_v27 = vor.u32 %v9387_v62, %v746_v61  ;;  %v758_v42 = vrot.slane %v9391_v25, 7  ;;  %v9395_v24 = vshll.u32 %v8037_v2, 16  ;;  %v764_v56 = vshrl.u32 %v577_v23, 16  ;;  %v8065_v60 = vld [vmem:[#allocation2 + $0x8] sm:$0xff] }
  0x3b   : > { %v8052_v36 = vsel %vm346_vm5, %v730_v19, %v737_v20  ;;  %v770_v61 = vrot.slane %v9390_v30, 7  ;;  %v9397_v62 = vshll.u32 %v8039_v8, 16  ;;  %v754_v19 = vrot.slane %v752_v11, 7  ;;  %v579_v30 = vld [vmem:[#allocation2 + $0x180] sm:$0x80] }
  0x3c   : > { %v8058_v46 = vsel %vm346_vm5, %v742_v26, %v749_v27  ;;  %v761_v20 = vor.u32 %v9395_v24, %v758_v42  ;;  %v781_v23 = vshrl.u32 %v8063_v47, 16  ;;  %v342_v26 = vld [vmem:[#allocation2 + $0x198] sm:$0x80]  ;;  %v766_v27 = vrot.slane %v764_v56, 7  ;;  %v547_v15 = vld [vmem:[#allocation2] sm:$0x80] }
  0x3d   : > { %v773_v32 = vor.u32 %v9397_v62, %v770_v61  ;;  %v588_v25 = vshrl.u32 %v8065_v60, 16  ;;  %v343_v51 = vsel %vm7783_vm4, 0, %v342_v26  ;;  %v777_v57 = vshrl.u32 %v579_v30, 16 }
  0x3e   : > { %344 = vst [vmem:[#allocation2 + $0x198] sm:$0x80] %v343_v51  ;;  %v762_v11 = vsel %vm346_vm5, %v754_v19, %v761_v20  ;;  %v783_v42 = vrot.slane %v781_v23, 7  ;;  %v784_v24 = vshll.u32 %v8063_v47, 16  ;;  %v584_v22 = vshrl.u32 %v547_v15, 16 }
  0x3f   : > { %v774_v56 = vsel %vm346_vm5, %v766_v27, %v773_v32  ;;  %v590_v61 = vrot.slane %v588_v25, 7  ;;  %v591_v62 = vshll.u32 %v8065_v60, 16  ;;  %v779_v51 = vrot.slane %v777_v57, 7  ;;  %v5905_v57 = vld [vmem:[%s9375_s1 + $0x2] sm:$0x3] }
  0x40   : > { %6567 = vmatmul.mubr.msk.bf16.gmra.mrb[12].mxu0 %vm280_vm1, %v7992_v55  ;;  %v786_v30 = vor.u32 %v784_v24, %v783_v42  ;;  %v586_v19 = vrot.slane %v584_v22, 7  ;;  %v1188_v27 = vsel %vm838_vm0, %v8001_v63, 0  ;;  %v5922_v22 = vld [vmem:[%s9375_s1 + $0x8] sm:$0x3] }
  0x41   : > { %6570 = vmatprep.mubr.msk.bf16.mxu0 %vm280_vm1, %v8004_v1  ;;  %v593_v20 = vor.u32 %v591_v62, %v590_v61 }
  0x42   : > { %v787_v26 = vsel %vm346_vm5, %v779_v51, %v786_v30  ;;  %v357_v51 = vld [vmem:[#allocation2 + $0x58] sm:$0x1] }
  0x43   : > { %v594_v15 = vsel %vm346_vm5, %v586_v19, %v593_v20  ;;  %v358_v30 = vsel %vm8207_vm7, 0, %v357_v51  ;;  %v5956_v20 = vld [vmem:[%s9375_s1 + $0x4] sm:$0x3]  ;;  %v390_v51 = vld [vmem:[#allocation2 + $0x160] sm:$0x1] }
  0x44   : > { %359 = vst [vmem:[#allocation2 + $0x58] sm:$0x1] %v358_v30  ;;  %v391_v30 = vsel %vm8207_vm7, 0, %v390_v51 }
  0x45   : > { %392 = vst [vmem:[#allocation2 + $0x160] sm:$0x1] %v391_v30 }
  0x48   : > { %6571 = vmatmul.mubr.msk.bf16.gmra.mrb[16].mxu0 %vm280_vm1, %v8026_v34 }
  0x49   : > { %6574 = vmatprep.mubr.msk.bf16.mxu0 %vm280_vm1, %v8032_v52 }
  0x50   : > { %6575 = vmatmul.mubr.msk.bf16.gmra.mrb[20].mxu0 %vm280_vm1, %v8052_v36 }
  0x51   : > { %6578 = vmatprep.mubr.msk.bf16.mxu0 %vm280_vm1, %v8058_v46 }
  0x58   : > { %6579 = vmatmul.mubr.msk.bf16.gmra.mrb[24].mxu0 %vm280_vm1, %v762_v11 }
  0x59   : > { %6582 = vmatprep.mubr.msk.bf16.mxu0 %vm280_vm1, %v774_v56 }
  0x60   : > { %6583 = vmatmul.mubr.msk.bf16.gmra.mrb[28].mxu0 %vm280_vm1, %v787_v26 }
  0x61   : > { %6588 = vmatprep.mubr.msk.bf16.mxu0 %vm280_vm1, %v594_v15 }
  0x68   : > { %6589 = vmatmul.mubr.msk.bf16.vlgmr.msra.gmra.mrb[0].mxu0 %vm280_vm1, %v7883_v4  ;;  %v1418_v4 = vsel %vm838_vm0, %v5905_v57, 0 }
  0x69   : > { %6621 = vmatpush3.bf16.msra.mxu0 %v1188_v27  ;;  %6592 = vmatprep.mubr.msk.bf16.mxu0 %vm280_vm1, %v7894_v9  ;;  %v363_v27 = vld [vmem:[#allocation2 + $0x88] sm:$0x1] }
  0x6a   : > { %7679 = vmatprep.subr.msk.bf16.mxu0 %vm838_vm0, %v5905_v57  ;;  %v364_v57 = vsel %vm8207_vm7, 0, %v363_v27  ;;  %v5973_v27 = vld [vmem:[%s9375_s1 + $0xa] sm:$0x3] }
  0x6b   : > { %365 = vst [vmem:[#allocation2 + $0x88] sm:$0x1] %v364_v57  ;;  %v2506_v51 = vsel %vm838_vm0, %v5973_v27, 0 }
  0x70   : > { %6593 = vmatmul.mubr.msk.bf16.gmra.mrb[4].mxu0 %vm280_vm1, %v7903_v13 }
  0x71   : > { %6596 = vmatprep.mubr.msk.bf16.mxu0 %vm280_vm1, %v7923_v29 }
  0x78   : > { %6597 = vmatmul.mubr.msk.bf16.gmra.mrb[8].mxu0 %vm280_vm1, %v7932_v35 }
  0x79   : > { %6600 = vmatprep.mubr.msk.bf16.mxu0 %vm280_vm1, %v7959_v5 }
  0x80   : > { %6601 = vmatmul.mubr.msk.bf16.gmra.mrb[12].mxu0 %vm280_vm1, %v7970_v18 }
  0x81   : > { %6604 = vmatprep.mubr.msk.bf16.mxu0 %vm280_vm1, %v7992_v55 }
  0x88   : > { %6605 = vmatmul.mubr.msk.bf16.gmra.mrb[16].mxu0 %vm280_vm1, %v8004_v1 }
  0x89   : > { %6608 = vmatprep.mubr.msk.bf16.mxu0 %vm280_vm1, %v8026_v34 }
  0x90   : > { %6609 = vmatmul.mubr.msk.bf16.gmra.mrb[20].mxu0 %vm280_vm1, %v8032_v52 }
  0x91   : > { %6612 = vmatprep.mubr.msk.bf16.mxu0 %vm280_vm1, %v8052_v36 }
  0x98   : > { %6613 = vmatmul.mubr.msk.bf16.gmra.mrb[24].mxu0 %vm280_vm1, %v8058_v46 }
  0x99   : > { %6616 = vmatprep.mubr.msk.bf16.mxu0 %vm280_vm1, %v762_v11 }
  0xa0   : > { %6617 = vmatmul.mubr.msk.bf16.gmra.mrb[28].mxu0 %vm280_vm1, %v774_v56 }
  0xa1   : > { %6622 = vmatprep.mubr.msk.bf16.mxu0 %vm280_vm1, %v7894_v9  ;;  %v8158_v9 = vld [vmem:[#allocation2 + $0x1a0] sm:$0xff] }
  0xa8   : > { %6623 = vmatmul.mubr.msk.bf16.vlgmr.msra.gmra.mrb[0].mxu0 %vm280_vm1, %v7903_v13  ;;  %v1175_v13 = vshrl.u32 %v8158_v9, 16 }
  0xa9   : > { %6655 = vmatpush3.bf16.msra.mxu0 %v1418_v4  ;;  %6626 = vmatprep.mubr.msk.bf16.mxu0 %vm280_vm1, %v7923_v29  ;;  %v581_v29 = vld [vmem:[#allocation2 + $0x198] sm:$0x80]  ;;  %v366_v4 = vld [vmem:[#allocation2 + $0xa0] sm:$0x1] }
  0xaa   : > { %7680 = vmatprep.subr.msk.bf16.mxu0 %vm838_vm0, %v5922_v22 }
  0xb0   : > { %6627 = vmatmul.mubr.msk.bf16.gmra.mrb[4].mxu0 %vm280_vm1, %v7932_v35  ;;  %v1171_v35 = vshrl.u32 %v581_v29, 16  ;;  %v369_v29 = vld [vmem:[#allocation2 + $0xb8] sm:$0x1] }
  0xb1   : > { %6630 = vmatprep.mubr.msk.bf16.mxu0 %vm280_vm1, %v7959_v5  ;;  %v1177_v5 = vrot.slane %v1175_v13, 7 }
  0xb8   : > { %6631 = vmatmul.mubr.msk.bf16.gmra.mrb[8].mxu0 %vm280_vm1, %v7970_v18  ;;  %v1178_v18 = vshll.u32 %v8158_v9, 16 }
  0xb9   : > { %6634 = vmatprep.mubr.msk.bf16.mxu0 %vm280_vm1, %v7992_v55 }
  0xba   : > { %v1180_v55 = vor.u32 %v1178_v18, %v1177_v5  ;;  %v372_v5 = vld [vmem:[#allocation2 + $0xd0] sm:$0x1] }
  0xc0   : > { %6635 = vmatmul.mubr.msk.bf16.gmra.mrb[12].mxu0 %vm280_vm1, %v8004_v1  ;;  %v1618_v1 = vsel %vm838_vm0, %v5922_v22, 0  ;;  %v367_v22 = vsel %vm8207_vm7, 0, %v366_v4 }
  0xc1   : > { %6638 = vmatprep.mubr.msk.bf16.mxu0 %vm280_vm1, %v8026_v34  ;;  %v5939_v34 = vld [vmem:[%s9375_s1 + $0xe] sm:$0x3]  ;;  %368 = vst [vmem:[#allocation2 + $0xa0] sm:$0x1] %v367_v22  ;;  %v2055_v22 = vrot.slane %v591_v62, 1 }
  0xc2   : > { %v1818_v19 = vsel %vm838_vm0, %v5939_v34, 0 }
  0xc8   : > { %6639 = vmatmul.mubr.msk.bf16.gmra.mrb[16].mxu0 %vm280_vm1, %v8032_v52 }
  0xc9   : > { %6642 = vmatprep.mubr.msk.bf16.mxu0 %vm280_vm1, %v8052_v36  ;;  %v1173_v36 = vrot.slane %v1171_v35, 7  ;;  %v370_v35 = vsel %vm8207_vm7, 0, %v369_v29 }
  0xca   : > { %371 = vst [vmem:[#allocation2 + $0xb8] sm:$0x1] %v370_v35  ;;  %v2056_v35 = vor.u32 %v2055_v22, %v588_v25 }
  0xcb   : > { %v1181_v63 = vsel %vm346_vm5, %v1173_v36, %v1180_v55  ;;  %v373_v36 = vsel %vm8207_vm7, 0, %v372_v5  ;;  %v375_v55 = vld [vmem:[#allocation2 + $0xe8] sm:$0x1] }
  0xcc   : > { %374 = vst [vmem:[#allocation2 + $0xd0] sm:$0x1] %v373_v36 }
  0xd0   : > { %6643 = vmatmul.mubr.msk.bf16.gmra.mrb[20].mxu0 %vm280_vm1, %v8058_v46  ;;  %v348_v46 = vld [vmem:[#allocation2 + $0x10] sm:$0x1] }
  0xd1   : > { %6646 = vmatprep.mubr.msk.bf16.mxu0 %vm280_vm1, %v762_v11  ;;  %v349_v32 = vsel %vm8207_vm7, 0, %v348_v46  ;;  %v351_v11 = vld [vmem:[#allocation2 + $0x28] sm:$0x1]  ;;  %v381_v46 = vld [vmem:[#allocation2 + $0x118] sm:$0x1] }
  0xd2   : > { %350 = vst [vmem:[#allocation2 + $0x10] sm:$0x1] %v349_v32  ;;  %v352_v42 = vsel %vm8207_vm7, 0, %v351_v11  ;;  %v382_v32 = vsel %vm8207_vm7, 0, %v381_v46  ;;  %v384_v11 = vld [vmem:[#allocation2 + $0x130] sm:$0x1] }
  0xd3   : > { %353 = vst [vmem:[#allocation2 + $0x28] sm:$0x1] %v352_v42  ;;  %383 = vst [vmem:[#allocation2 + $0x118] sm:$0x1] %v382_v32  ;;  %v385_v42 = vsel %vm8207_vm7, 0, %v384_v11 }
  0xd4   : > { %386 = vst [vmem:[#allocation2 + $0x130] sm:$0x1] %v385_v42  ;;  %v2020_v11 = vld [vmem:[#allocation2 + $0x58] sm:$0x1] }
  0xd8   : > { %6647 = vmatmul.mubr.msk.bf16.gmra.mrb[24].mxu0 %vm280_vm1, %v774_v56  ;;  %v354_v56 = vld [vmem:[#allocation2 + $0x40] sm:$0x1] }
  0xd9   : > { %6650 = vmatprep.mubr.msk.bf16.mxu0 %vm280_vm1, %v787_v26  ;;  %v355_v61 = vsel %vm8207_vm7, 0, %v354_v56  ;;  %v360_v26 = vld [vmem:[#allocation2 + $0x70] sm:$0x1]  ;;  %v387_v56 = vld [vmem:[#allocation2 + $0x148] sm:$0x1] }
  0xda   : > { %356 = vst [vmem:[#allocation2 + $0x40] sm:$0x1] %v355_v61  ;;  %v361_v15 = vsel %vm8207_vm7, 0, %v360_v26  ;;  %v388_v61 = vsel %vm8207_vm7, 0, %v387_v56  ;;  %v2014_v4 = vld [vmem:[#allocation2 + $0x10] sm:$0x1] }
  0xdb   : > { %362 = vst [vmem:[#allocation2 + $0x70] sm:$0x1] %v361_v15  ;;  %389 = vst [vmem:[#allocation2 + $0x148] sm:$0x1] %v388_v61  ;;  %v2293_v15 = vsel %vm838_vm0, %v5956_v20, 0  ;;  %v2058_v29 = vshll.u32 %v2014_v4, 16 }
  0xdc   : > { %v2016_v36 = vld [vmem:[#allocation2 + $0x28] sm:$0x1]  ;;  %v2094_v61 = vshll.u32 %v2020_v11, 16 }
  0xdd   : > { %v2060_v5 = vrot.slane %v2058_v29, 1  ;;  %v2028_v29 = vld [vmem:[#allocation2 + $0xb8] sm:$0x1] }
  0xdf   : > { %v2061_v62 = vsel %vm2049_vm8, %v2056_v35, %v2060_v5  ;;  %v2030_v35 = vld [vmem:[#allocation2 + $0xd0] sm:$0x1] }
  0xe0   : > { %6651 = vmatmul.mubr.msk.bf16.gmra.mrb[28].mxu0 %vm280_vm1, %v1181_v63  ;;  %v376_v63 = vsel %vm8207_vm7, 0, %v375_v55 }
  0xe1   : > { %6656 = vmatprep.mubr.msk.bf16.mxu0 %vm280_vm1, %v8065_v60  ;;  %377 = vst [vmem:[#allocation2 + $0xe8] sm:$0x1] %v376_v63  ;;  %v2018_v55 = vld [vmem:[#allocation2 + $0x40] sm:$0x1]  ;;  %v2067_v63 = vrot.slane %v603_v38, 1 }
  0xe2   : > { %v2082_v46 = vshll.u32 %v2018_v55, 16  ;;  %v2022_v42 = vld [vmem:[#allocation2 + $0x70] sm:$0x1] }
  0xe3   : > { %v2068_v60 = vor.u32 %v2067_v63, %v600_v37  ;;  %v2106_v37 = vshll.u32 %v2022_v42, 16 }
  0xe4   : > { %v2084_v38 = vrot.slane %v2082_v46, 1 }
  0xe8   : > { %6657 = vmatmul.mubr.msk.bf16.vlgmr.msra.gmra.mrb[0].mxu0 %vm280_vm1, %v7838_v33 }
  0xe9   : > { %6689 = vmatpush3.bf16.msra.mxu0 %v1618_v1  ;;  %6660 = vmatprep.mubr.msk.bf16.mxu0 %vm280_vm1, %v7844_v39  ;;  %v378_v1 = vld [vmem:[#allocation2 + $0x100] sm:$0x1] }
  0xea   : > { %7681 = vmatprep.subr.msk.bf16.mxu0 %vm838_vm0, %v5939_v34  ;;  %v379_v34 = vsel %vm8207_vm7, 0, %v378_v1  ;;  %v2070_v1 = vshll.u32 %v2016_v36, 16  ;;  %v2142_v36 = vshll.u32 %v2028_v29, 16  ;;  %v2040_v29 = vld [vmem:[#allocation2 + $0x148] sm:$0x1] }
  0xeb   : > { %380 = vst [vmem:[#allocation2 + $0x100] sm:$0x1] %v379_v34  ;;  %v2079_v34 = vrot.slane %v615_v44, 1  ;;  %v2091_v44 = vrot.slane %v627_v49, 1  ;;  %v2096_v49 = vrot.slane %v2094_v61, 1 }
  0xec   : > { %v2072_v25 = vrot.slane %v2070_v1, 1  ;;  %v2144_v63 = vrot.slane %v2142_v36, 1  ;;  %v9412_v36 = vshll.u32 %v8013_v17, 16 }
  0xed   : > { %v2080_v32 = vor.u32 %v2079_v34, %v612_v43  ;;  %v2092_v43 = vor.u32 %v2091_v44, %v624_v48  ;;  %v2127_v48 = vrot.slane %v663_v28, 1  ;;  %v2139_v28 = vrot.slane %v675_v40, 1  ;;  %v2032_v34 = vld [vmem:[#allocation2 + $0xe8] sm:$0x1] }
  0xee   : > { %v8338_v56 = vsel %vm2049_vm8, %v2068_v60, %v2072_v25  ;;  %v9403_v40 = vshrl.u32 %v7925_v31, 16 }
  0xef   : > { %v8344_v30 = vsel %vm2049_vm8, %v2080_v32, %v2084_v38  ;;  %v2166_v32 = vshll.u32 %v2032_v34, 16  ;;  %v9415_v34 = vshrl.u32 %v8037_v2, 16 }
  0xf0   : > { %6661 = vmatmul.mubr.msk.bf16.gmra.mrb[4].mxu0 %vm280_vm1, %v7850_v45 }
  0xf1   : > { %6664 = vmatprep.mubr.msk.bf16.mxu0 %vm280_vm1, %v7856_v50  ;;  %v2168_v61 = vrot.slane %v2166_v32, 1 }
  0xf2   : > { %v2034_v46 = vld [vmem:[#allocation2 + $0x100] sm:$0x1] }
  0xf3   : > { %v2178_v42 = vshll.u32 %v2034_v46, 16 }
  0xf8   : > { %6665 = vmatmul.mubr.msk.bf16.gmra.mrb[8].mxu0 %vm280_vm1, %v7863_v54 }
  0xf9   : > { %6668 = vmatprep.mubr.msk.bf16.mxu0 %vm280_vm1, %v7877_v0 }
 0x100   : > { %6669 = vmatmul.mubr.msk.bf16.gmra.mrb[12].mxu0 %vm280_vm1, %v7896_v10 }
 0x101   : > { %6672 = vmatprep.mubr.msk.bf16.mxu0 %vm280_vm1, %v7925_v31 }
 0x108   : > { %6673 = vmatmul.mubr.msk.bf16.gmra.mrb[16].mxu0 %vm280_vm1, %v7937_v41 }
 0x109   : > { %6676 = vmatprep.mubr.msk.bf16.mxu0 %vm280_vm1, %v7965_v16 }
 0x110   : > { %6677 = vmatmul.mubr.msk.bf16.gmra.mrb[20].mxu0 %vm280_vm1, %v7974_v21 }
 0x111   : > { %6680 = vmatprep.mubr.msk.bf16.mxu0 %vm280_vm1, %v8009_v12 }
 0x118   : > { %6681 = vmatmul.mubr.msk.bf16.gmra.mrb[24].mxu0 %vm280_vm1, %v8013_v17 }
 0x119   : > { %6684 = vmatprep.mubr.msk.bf16.mxu0 %vm280_vm1, %v8037_v2 }
 0x120   : > { %6685 = vmatmul.mubr.msk.bf16.gmra.mrb[28].mxu0 %vm280_vm1, %v8039_v8 }
 0x121   : > { %6690 = vmatprep.mubr.msk.bf16.mxu0 %vm280_vm1, %v7838_v33  ;;  %v2103_v33 = vrot.slane %v639_v58, 1 }
 0x123   : > { %v2104_v58 = vor.u32 %v2103_v33, %v636_v53 }
 0x128   : > { %6691 = vmatmul.mubr.msk.bf16.vlgmr.msra.gmra.mrb[0].mxu0 %vm280_vm1, %v7844_v39 }
 0x129   : > { %6723 = vmatpush3.bf16.msra.mxu0 %v1818_v19  ;;  %6694 = vmatprep.mubr.msk.bf16.mxu0 %vm280_vm1, %v7850_v45  ;;  %v393_v19 = vld [vmem:[#allocation2 + $0x178] sm:$0x1] }
 0x12a   : > { %7682 = vmatprep.subr.msk.bf16.mxu0 %vm838_vm0, %v5956_v20  ;;  %v394_v26 = vsel %vm8207_vm7, 0, %v393_v19  ;;  %v396_v20 = vld [vmem:[#allocation2 + $0x190] sm:$0x1]  ;;  %v2108_v19 = vrot.slane %v2106_v37, 1  ;;  %v2180_v37 = vrot.slane %v2178_v42, 1 }
 0x12b   : > { %395 = vst [vmem:[#allocation2 + $0x178] sm:$0x1] %v394_v26  ;;  %v397_v57 = vsel %vm8207_vm7, 0, %v396_v20  ;;  %v2024_v26 = vld [vmem:[#allocation2 + $0x88] sm:$0x1]  ;;  %v2115_v20 = vrot.slane %v651_v7, 1  ;;  %v2128_v7 = vor.u32 %v2127_v48, %v660_v14 }
 0x12c   : > { %398 = vst [vmem:[#allocation2 + $0x190] sm:$0x1] %v397_v57  ;;  %v2118_v57 = vshll.u32 %v2024_v26, 16 }
 0x12d   : > { %v2116_v53 = vor.u32 %v2115_v20, %v648_v59  ;;  %v2154_v59 = vshll.u32 %v2030_v35, 16  ;;  %v2042_v35 = vld [vmem:[#allocation2 + $0x160] sm:$0x1] }
 0x12e   : > { %v2120_v4 = vrot.slane %v2118_v57, 1 }
 0x130   : > { %6695 = vmatmul.mubr.msk.bf16.gmra.mrb[4].mxu0 %vm280_vm1, %v7856_v50  ;;  %v8382_v5 = vsel %vm2049_vm8, %v2116_v53, %v2120_v4  ;;  %v9411_v4 = vshrl.u32 %v8009_v12, 16 }
 0x131   : > { %6698 = vmatprep.mubr.msk.bf16.mxu0 %vm280_vm1, %v7863_v54 }
 0x138   : > { %6699 = vmatmul.mubr.msk.bf16.gmra.mrb[8].mxu0 %vm280_vm1, %v7877_v0 }
 0x139   : > { %6702 = vmatprep.mubr.msk.bf16.mxu0 %vm280_vm1, %v7896_v10 }
 0x140   : > { %6703 = vmatmul.mubr.msk.bf16.gmra.mrb[12].mxu0 %vm280_vm1, %v7925_v31 }
 0x141   : > { %6706 = vmatprep.mubr.msk.bf16.mxu0 %vm280_vm1, %v7937_v41 }
 0x148   : > { %6707 = vmatmul.mubr.msk.bf16.gmra.mrb[16].mxu0 %vm280_vm1, %v7965_v16 }
 0x149   : > { %6710 = vmatprep.mubr.msk.bf16.mxu0 %vm280_vm1, %v7974_v21 }
 0x150   : > { %6711 = vmatmul.mubr.msk.bf16.gmra.mrb[20].mxu0 %vm280_vm1, %v8009_v12 }
 0x151   : > { %6714 = vmatprep.mubr.msk.bf16.mxu0 %vm280_vm1, %v8013_v17 }
 0x158   : > { %6715 = vmatmul.mubr.msk.bf16.gmra.mrb[24].mxu0 %vm280_vm1, %v8037_v2 }
 0x159   : > { %6718 = vmatprep.mubr.msk.bf16.mxu0 %vm280_vm1, %v8039_v8 }
 0x160   : > { %6719 = vmatmul.mubr.msk.bf16.gmra.mrb[28].mxu0 %vm280_vm1, %v8063_v47 }
 0x161   : > { %6724 = vmatprep.mubr.msk.bf16.mxu0 %vm280_vm1, %v7844_v39  ;;  %v8351_v39 = vld [vmem:[%s9375_s1 + $0x10] sm:$0x3] }
 0x168   : > { %6725 = vmatmul.mubr.msk.bf16.vlgmr.msra.gmra.mrb[0].mxu0 %vm280_vm1, %v7850_v45  ;;  %v8369_v45 = vsel %vm2049_vm8, %v2104_v58, %v2108_v19  ;;  %v9408_v19 = vshll.u32 %v7974_v21, 16 }
 0x169   : > { %6757 = vmatpush3.bf16.msra.mxu0 %v2293_v15  ;;  %6728 = vmatprep.mubr.msk.bf16.mxu0 %vm280_vm1, %v7856_v50  ;;  %v2026_v15 = vld [vmem:[#allocation2 + $0xa0] sm:$0x1] }
 0x16a   : > { %7683 = vmatprep.subr.msk.bf16.mxu0 %vm838_vm0, %v5973_v27  ;;  %v8364_v27 = vsel %vm2049_vm8, %v2092_v43, %v2096_v49  ;;  %v2130_v50 = vshll.u32 %v2026_v15, 16  ;;  %v2036_v43 = vld [vmem:[#allocation2 + $0x118] sm:$0x1]  ;;  %v2038_v49 = vld [vmem:[#allocation2 + $0x130] sm:$0x1]  ;;  %v2187_v26 = vrot.slane %v9408_v19, 1 }
 0x16b   : > { %v2190_v15 = vshll.u32 %v2036_v43, 16  ;;  %v2202_v48 = vshll.u32 %v2038_v49, 16 }
 0x16c   : > { %v2132_v22 = vrot.slane %v2130_v50, 1 }
 0x16d   : > { %v2192_v53 = vrot.slane %v2190_v15, 1  ;;  %v3040_v15 = vld [vmem:[#allocation3 + $0x48] sm:$0x80] }
 0x16e   : > { %v8387_v55 = vsel %vm2049_vm8, %v2128_v7, %v2132_v22  ;;  %v2204_v22 = vrot.slane %v2202_v48, 1  ;;  %v3094_v48 = vld [vmem:[#allocation3 + $0x58] sm:$0x1] }
 0x170   : > { %6729 = vmatmul.mubr.msk.bf16.gmra.mrb[4].mxu0 %vm280_vm1, %v7863_v54  ;;  %v2151_v54 = vrot.slane %v687_v6, 1  ;;  %v9404_v6 = vshll.u32 %v7937_v41, 16 }
 0x171   : > { %6732 = vmatprep.mubr.msk.bf16.mxu0 %vm280_vm1, %v7877_v0  ;;  %v9402_v0 = vshrl.u32 %v7896_v10, 16 }
 0x172   : > { %v2152_v1 = vor.u32 %v2151_v54, %v9403_v40  ;;  %v2163_v25 = vrot.slane %v9404_v6, 1  ;;  %v2211_v54 = vrot.slane %v9412_v36, 1 }
 0x173   : > { %v2140_v14 = vor.u32 %v2139_v28, %v9402_v0 }
 0x175   : > { %v8400_v60 = vsel %vm2049_vm8, %v2140_v14, %v2144_v63  ;;  %v9413_v14 = vshll.u32 %v8037_v2, 16 }
 0x177   : > { %v2223_v63 = vrot.slane %v9413_v14, 1  ;;  %v3052_v14 = vld [vmem:[#allocation3 + $0xa8] sm:$0x80] }
 0x178   : > { %6733 = vmatmul.mubr.msk.bf16.gmra.mrb[8].mxu0 %vm280_vm1, %v7896_v10  ;;  %v9405_v10 = vshll.u32 %v7965_v16, 16 }
 0x179   : > { %6736 = vmatprep.mubr.msk.bf16.mxu0 %vm280_vm1, %v7925_v31  ;;  %v9406_v31 = vshrl.u32 %v7937_v41, 16  ;;  %v2224_v46 = vor.u32 %v2223_v63, %v9415_v34  ;;  %v3053_v63 = vsel %vm7783_vm4, 0, %v3052_v14  ;;  %v3061_v34 = vld [vmem:[#allocation3 + $0xf0] sm:$0x80] }
 0x17a   : > { %v2175_v11 = vrot.slane %v9405_v10, 1  ;;  %3054 = vst [vmem:[#allocation3 + $0xa8] sm:$0x80] %v3053_v63 }
 0x17b   : > { %v2164_v44 = vor.u32 %v2163_v25, %v9406_v31  ;;  %v2044_v25 = vld [vmem:[#allocation2 + $0x178] sm:$0x1] }
 0x17c   : > { %v2238_v31 = vshll.u32 %v2044_v25, 16 }
 0x17d   : > { %v8418_v58 = vsel %vm2049_vm8, %v2164_v44, %v2168_v61 }
 0x17e   : > { %v2240_v61 = vrot.slane %v2238_v31, 1  ;;  %v3067_v31 = vld [vmem:[#allocation3 + $0x120] sm:$0x80] }
 0x180   : > { %6737 = vmatmul.mubr.msk.bf16.gmra.mrb[12].mxu0 %vm280_vm1, %v7937_v41  ;;  %v9409_v41 = vshll.u32 %v8009_v12, 16 }
 0x181   : > { %6740 = vmatprep.mubr.msk.bf16.mxu0 %vm280_vm1, %v7965_v16 }
 0x182   : > { %v2199_v57 = vrot.slane %v9409_v41, 1 }
 0x184   : > { %v2200_v7 = vor.u32 %v2199_v57, %v9411_v4  ;;  %v3041_v57 = vsel %vm7783_vm4, 0, %v3040_v15  ;;  %v3049_v4 = vld [vmem:[#allocation3 + $0x90] sm:$0x80] }
 0x185   : > { %3042 = vst [vmem:[#allocation3 + $0x48] sm:$0x80] %v3041_v57 }
 0x186   : > { %v2205_v0 = vsel %vm2049_vm8, %v2200_v7, %v2204_v22  ;;  %v3046_v7 = vld [vmem:[#allocation3 + $0x78] sm:$0x80]  ;;  %v3050_v22 = vsel %vm7783_vm4, 0, %v3049_v4 }
 0x187   : > { %3051 = vst [vmem:[#allocation3 + $0x90] sm:$0x80] %v3050_v22 }
 0x188   : > { %6741 = vmatmul.mubr.msk.bf16.gmra.mrb[16].mxu0 %vm280_vm1, %v7974_v21 }
 0x189   : > { %6744 = vmatprep.mubr.msk.bf16.mxu0 %vm280_vm1, %v8009_v12  ;;  %v9414_v12 = vshrl.u32 %v8013_v17, 16 }
 0x18b   : > { %v2212_v40 = vor.u32 %v2211_v54, %v9414_v12  ;;  %v3109_v12 = vld [vmem:[#allocation3 + $0xd0] sm:$0x1] }
 0x190   : > { %6745 = vmatmul.mubr.msk.bf16.gmra.mrb[20].mxu0 %vm280_vm1, %v8013_v17 }
 0x191   : > { %6748 = vmatprep.mubr.msk.bf16.mxu0 %vm280_vm1, %v8037_v2  ;;  %v9417_v2 = vshrl.u32 %v8039_v8, 16 }
 0x198   : > { %6749 = vmatmul.mubr.msk.bf16.gmra.mrb[24].mxu0 %vm280_vm1, %v8039_v8 }
 0x199   : > { %6752 = vmatprep.mubr.msk.bf16.mxu0 %vm280_vm1, %v8063_v47  ;;  %v2706_v47 = vrot.slane %v1178_v18, 1  ;;  %v3088_v18 = vld [vmem:[#allocation3 + $0x28] sm:$0x1] }
 0x1a0   : > { %6753 = vmatmul.mubr.msk.bf16.gmra.mrb[28].mxu0 %vm280_vm1, %v8158_v9  ;;  %v3089_v9 = vsel %vm8207_vm7, 0, %v3088_v18 }
 0x1a1   : > { %6758 = vmatprep.mubr.msk.bf16.mxu0 %vm280_vm1, %v2061_v62  ;;  %v2156_v62 = vrot.slane %v2154_v59, 1  ;;  %v2214_v59 = vshll.u32 %v2040_v29, 16  ;;  %3090 = vst [vmem:[#allocation3 + $0x28] sm:$0x1] %v3089_v9  ;;  %v3047_v29 = vsel %vm7783_vm4, 0, %v3046_v7 }
 0x1a2   : > { %3048 = vst [vmem:[#allocation3 + $0x78] sm:$0x80] %v3047_v29  ;;  %v8603_v9 = vld [vmem:[%s9376_s2] ss:$0 sm:$0xff] }
 0x1a3   : > { %v8405_v38 = vsel %vm2049_vm8, %v2152_v1, %v2156_v62  ;;  %v2216_v1 = vrot.slane %v2214_v59, 1  ;;  %v399_v62 = vld [vmem:[#allocation2 + $0x1a8] sm:$0x1]  ;;  %v3055_v59 = vld [vmem:[#allocation3 + $0xc0] sm:$0x80] }
 0x1a4   : > { %v400_v32 = vsel %vm8207_vm7, 0, %v399_v62 }
 0x1a5   : > { %401 = vst [vmem:[#allocation2 + $0x1a8] sm:$0x1] %v400_v32  ;;  %v2217_v10 = vsel %vm2049_vm8, %v2212_v40, %v2216_v1  ;;  %v3106_v40 = vld [vmem:[#allocation3 + $0xb8] sm:$0x1]  ;;  %v3110_v1 = vsel %vm8207_vm7, 0, %v3109_v12 }
 0x1a6   : > { %v3107_v62 = vsel %vm8207_vm7, 0, %v3106_v40  ;;  %3111 = vst [vmem:[#allocation3 + $0xd0] sm:$0x1] %v3110_v1  ;;  %v3115_v32 = vld [vmem:[#allocation3 + $0x100] sm:$0x1] }
 0x1a7   : > { %3108 = vst [vmem:[#allocation3 + $0xb8] sm:$0x1] %v3107_v62 }
 0x1a8   : > { %6759 = vmatmul.mubr.msk.bf16.vlgmr.msra.gmra.mrb[0].mxu0 %vm280_vm1, %v8338_v56 }
 0x1a9   : > { %6791 = vmatpush3.bf16.msra.mxu0 %v2506_v51  ;;  %6762 = vmatprep.mubr.msk.bf16.mxu0 %vm280_vm1, %v8344_v30  ;;  %v9407_v51 = vshrl.u32 %v7965_v16, 16  ;;  %v9410_v16 = vshrl.u32 %v7974_v21, 16  ;;  %v2226_v21 = vshll.u32 %v2042_v35, 16  ;;  %v3103_v35 = vld [vmem:[#allocation3 + $0xa0] sm:$0x1] }
 0x1aa   : > { %7684 = vmatprep.subr.msk.bf16.mxu0 %vm838_vm0, %v8351_v39  ;;  %v3104_v36 = vsel %vm8207_vm7, 0, %v3103_v35 }
 0x1ab   : > { %v2176_v33 = vor.u32 %v2175_v11, %v9407_v51  ;;  %v2188_v50 = vor.u32 %v2187_v26, %v9410_v16  ;;  %v2228_v6 = vrot.slane %v2226_v21, 1  ;;  %v9416_v11 = vshll.u32 %v8039_v8, 16  ;;  %v2046_v8 = vld [vmem:[#allocation2 + $0x190] sm:$0x1]  ;;  %v3097_v26 = vld [vmem:[#allocation3 + $0x70] sm:$0x1] }
 0x1ac   : > { %v3098_v41 = vsel %vm8207_vm7, 0, %v3097_v26  ;;  %v6009_v16 = vld [vmem:[%s9378_s4 + $0x6] sm:$0x3]  ;;  %3105 = vst [vmem:[#allocation3 + $0xa0] sm:$0x1] %v3104_v36  ;;  %v3056_v21 = vsel %vm7783_vm4, 0, %v3055_v59 }
 0x1ad   : > { %v8423_v20 = vsel %vm2049_vm8, %v2176_v33, %v2180_v37  ;;  %v2193_v28 = vsel %vm2049_vm8, %v2188_v50, %v2192_v53  ;;  %v2235_v42 = vrot.slane %v9416_v11, 1  ;;  %v2229_v17 = vsel %vm2049_vm8, %v2224_v46, %v2228_v6  ;;  %3099 = vst [vmem:[#allocation3 + $0x70] sm:$0x1] %v3098_v41  ;;  %7685 = vmatprep.subr.msk.bf16.mxu1 %vm838_vm0, %v6009_v16  ;;  %v3058_v46 = vld [vmem:[#allocation3 + $0xd8] sm:$0x80] }
 0x1ae   : > { %v2719_v33 = vsel %vm838_vm0, %v8351_v39, 0  ;;  %v2496_v39 = vshll.u32 %v2046_v8, 16  ;;  %v3095_v50 = vsel %vm8207_vm7, 0, %v3094_v48  ;;  %v3464_v53 = vsel %vm838_vm0, %v6009_v16, 0  ;;  %3057 = vst [vmem:[#allocation3 + $0xc0] sm:$0x80] %v3056_v21 }
 0x1af   : > { %v2236_v44 = vor.u32 %v2235_v42, %v9417_v2  ;;  %3096 = vst [vmem:[#allocation3 + $0x58] sm:$0x1] %v3095_v50  ;;  %6859 = vmatpush3.bf16.msra.mxu1 %v3464_v53  ;;  %v3062_v6 = vsel %vm7783_vm4, 0, %v3061_v34  ;;  %v3059_v25 = vsel %vm7783_vm4, 0, %v3058_v46  ;;  %v3116_v42 = vsel %vm8207_vm7, 0, %v3115_v32 }
 0x1b0   : > { %6763 = vmatmul.mubr.msk.bf16.gmra.mrb[4].mxu0 %vm280_vm1, %v8364_v27  ;;  %v2498_v43 = vrot.slane %v2496_v39, 1  ;;  %3063 = vst [vmem:[#allocation3 + $0xf0] sm:$0x80] %v3062_v6  ;;  %3060 = vst [vmem:[#allocation3 + $0xd8] sm:$0x80] %v3059_v25  ;;  %v3068_v2 = vsel %vm7783_vm4, 0, %v3067_v31 }
 0x1b1   : > { %6766 = vmatprep.mubr.msk.bf16.mxu0 %vm280_vm1, %v8369_v45  ;;  %v2241_v51 = vsel %vm2049_vm8, %v2236_v44, %v2240_v61  ;;  %3117 = vst [vmem:[#allocation3 + $0x100] sm:$0x1] %v3116_v42  ;;  %3069 = vst [vmem:[#allocation3 + $0x120] sm:$0x80] %v3068_v2  ;;  %v3121_v61 = vld [vmem:[#allocation3 + $0x130] sm:$0x1] }
 0x1b2   : > { %v3070_v39 = vld [vmem:[#allocation3 + $0x138] sm:$0x80]  ;;  %v8608_v26 = vld [vmem:[%s9377_s3] ss:$0 sm:$0xff] }
 0x1b8   : > { %6767 = vmatmul.mubr.msk.bf16.gmra.mrb[8].mxu0 %vm280_vm1, %v8382_v5 }
 0x1b9   : > { %6770 = vmatprep.mubr.msk.bf16.mxu0 %vm280_vm1, %v8387_v55 }
 0x1c0   : > { %6771 = vmatmul.mubr.msk.bf16.gmra.mrb[12].mxu0 %vm280_vm1, %v8400_v60 }
 0x1c1   : > { %6774 = vmatprep.mubr.msk.bf16.mxu0 %vm280_vm1, %v8405_v38 }
 0x1c8   : > { %6775 = vmatmul.mubr.msk.bf16.gmra.mrb[16].mxu0 %vm280_vm1, %v8418_v58 }
 0x1c9   : > { %6778 = vmatprep.mubr.msk.bf16.mxu0 %vm280_vm1, %v8423_v20 }
 0x1d0   : > { %6779 = vmatmul.mubr.msk.bf16.gmra.mrb[20].mxu0 %vm280_vm1, %v2193_v28 }
 0x1d1   : > { %6782 = vmatprep.mubr.msk.bf16.mxu0 %vm280_vm1, %v2205_v0 }
 0x1d8   : > { %6783 = vmatmul.mubr.msk.bf16.gmra.mrb[24].mxu0 %vm280_vm1, %v2217_v10 }
 0x1d9   : > { %6786 = vmatprep.mubr.msk.bf16.mxu0 %vm280_vm1, %v2229_v17 }
 0x1e0   : > { %6787 = vmatmul.mubr.msk.bf16.gmra.mrb[28].mxu0 %vm280_vm1, %v2241_v51 }
 0x1e1   : > { %6792 = vmatprep.mubr.msk.bf16.mxu0 %vm280_vm1, %v8338_v56  ;;  %v2493_v56 = vrot.slane %v784_v24, 1  ;;  %v2048_v24 = vld [vmem:[#allocation2 + $0x1a8] sm:$0x1] }
 0x1e3   : > { %v2494_v37 = vor.u32 %v2493_v56, %v781_v23  ;;  %v2709_v23 = vshll.u32 %v2048_v24, 16  ;;  %v3073_v56 = vld [vmem:[#allocation3 + $0x150] sm:$0x80]  ;;  %v3124_v24 = vld [vmem:[#allocation3 + $0x148] sm:$0x1] }
 0x1e5   : > { %v2499_v49 = vsel %vm2049_vm8, %v2494_v37, %v2498_v43  ;;  %v3074_v37 = vsel %vm7783_vm4, 0, %v3073_v56  ;;  %v3071_v43 = vsel %vm7783_vm4, 0, %v3070_v39 }
 0x1e6   : > { %3075 = vst [vmem:[#allocation3 + $0x150] sm:$0x80] %v3074_v37  ;;  %3072 = vst [vmem:[#allocation3 + $0x138] sm:$0x80] %v3071_v43 }
 0x1e8   : > { %6793 = vmatmul.mubr.msk.bf16.vlgmr.msra.gmra.mrb[0].mxu0 %vm280_vm1, %v8344_v30 }
 0x1e9   : > { %6825 = vmatpush3.bf16.msra.mxu0 %v2719_v33  ;;  %6796 = vmatprep.mubr.msk.bf16.mxu0 %vm280_vm1, %v8364_v27  ;;  %v3122_v33 = vsel %vm8207_vm7, 0, %v3121_v61 }
 0x1ea   : > { %3123 = vst [vmem:[#allocation3 + $0x130] sm:$0x1] %v3122_v33 }
 0x1f0   : > { %6797 = vmatmul.mubr.msk.bf16.gmra.mrb[4].mxu0 %vm280_vm1, %v8369_v45 }
 0x1f1   : > { %6800 = vmatprep.mubr.msk.bf16.mxu0 %vm280_vm1, %v8382_v5 }
 0x1f8   : > { %6801 = vmatmul.mubr.msk.bf16.gmra.mrb[8].mxu0 %vm280_vm1, %v8387_v55 }
 0x1f9   : > { %6804 = vmatprep.mubr.msk.bf16.mxu0 %vm280_vm1, %v8400_v60 }
 0x200   : > { %6805 = vmatmul.mubr.msk.bf16.gmra.mrb[12].mxu0 %vm280_vm1, %v8405_v38 }
 0x201   : > { %6808 = vmatprep.mubr.msk.bf16.mxu0 %vm280_vm1, %v8418_v58 }
 0x208   : > { %6809 = vmatmul.mubr.msk.bf16.gmra.mrb[16].mxu0 %vm280_vm1, %v8423_v20 }
 0x209   : > { %6812 = vmatprep.mubr.msk.bf16.mxu0 %vm280_vm1, %v2193_v28 }
 0x210   : > { %6813 = vmatmul.mubr.msk.bf16.gmra.mrb[20].mxu0 %vm280_vm1, %v2205_v0 }
 0x211   : > { %6816 = vmatprep.mubr.msk.bf16.mxu0 %vm280_vm1, %v2217_v10 }
 0x218   : > { %6817 = vmatmul.mubr.msk.bf16.gmra.mrb[24].mxu0 %vm280_vm1, %v2229_v17 }
 0x219   : > { %6820 = vmatprep.mubr.msk.bf16.mxu0 %vm280_vm1, %v2241_v51 }
 0x220   : > { %6821 = vmatmul.mubr.msk.bf16.gmra.mrb[28].mxu0 %vm280_vm1, %v2499_v49 }
 0x221   : > { %6826 = vmatprep.mubr.msk.bf16.mxu0 %vm280_vm1, %v8344_v30  ;;  %v2707_v30 = vor.u32 %v2706_v47, %v1175_v13  ;;  %v3043_v13 = vld [vmem:[#allocation3 + $0x60] sm:$0x80] }
 0x228   : > { %6827 = vmatmul.mubr.msk.bf16.vlgmr.msra.gmra.mrb[0].mxu0 %vm280_vm1, %v8364_v27  ;;  %v2711_v27 = vrot.slane %v2709_v23, 1  ;;  %v3125_v23 = vsel %vm8207_vm7, 0, %v3124_v24 }
 0x229   : > { %6830 = vmatprep.mubr.msk.bf16.mxu0 %vm280_vm1, %v8369_v45  ;;  %3126 = vst [vmem:[#allocation3 + $0x148] sm:$0x1] %v3125_v23 }
 0x22a   : > { %v2712_v45 = vsel %vm2049_vm8, %v2707_v30, %v2711_v27  ;;  %v3079_v30 = vld [vmem:[#allocation3 + $0x180] sm:$0x80]  ;;  %v3076_v27 = vld [vmem:[#allocation3 + $0x168] sm:$0x80] }
 0x230   : > { %6831 = vmatmul.mubr.msk.bf16.gmra.mrb[4].mxu0 %vm280_vm1, %v8382_v5  ;;  %v3037_v5 = vld [vmem:[#allocation3 + $0x30] sm:$0x80] }
 0x231   : > { %6834 = vmatprep.mubr.msk.bf16.mxu0 %vm280_vm1, %v8387_v55  ;;  %v3091_v55 = vld [vmem:[#allocation3 + $0x40] sm:$0x1] }
 0x238   : > { %6835 = vmatmul.mubr.msk.bf16.gmra.mrb[8].mxu0 %vm280_vm1, %v8400_v60  ;;  %v3034_v60 = vld [vmem:[#allocation3 + $0x18] sm:$0x80] }
 0x239   : > { %6838 = vmatprep.mubr.msk.bf16.mxu0 %vm280_vm1, %v8405_v38  ;;  %v3038_v38 = vsel %vm7783_vm4, 0, %v3037_v5  ;;  %v3035_v19 = vsel %vm7783_vm4, 0, %v3034_v60  ;;  %v3077_v5 = vsel %vm7783_vm4, 0, %v3076_v27  ;;  %v3130_v60 = vld [vmem:[#allocation3 + $0x178] sm:$0x1] }
 0x23a   : > { %3039 = vst [vmem:[#allocation3 + $0x30] sm:$0x80] %v3038_v38  ;;  %3036 = vst [vmem:[#allocation3 + $0x18] sm:$0x80] %v3035_v19  ;;  %v3131_v18 = vsel %vm8207_vm7, 0, %v3130_v60 }
 0x23b   : > { %3078 = vst [vmem:[#allocation3 + $0x168] sm:$0x80] %v3077_v5  ;;  %3132 = vst [vmem:[#allocation3 + $0x178] sm:$0x1] %v3131_v18 }
 0x240   : > { %6839 = vmatmul.mubr.msk.bf16.gmra.mrb[12].mxu0 %vm280_vm1, %v8418_v58  ;;  %v3092_v58 = vsel %vm8207_vm7, 0, %v3091_v55  ;;  %v3133_v55 = vld [vmem:[#allocation3 + $0x190] sm:$0x1] }
 0x241   : > { %6842 = vmatprep.mubr.msk.bf16.mxu0 %vm280_vm1, %v8423_v20  ;;  %3093 = vst [vmem:[#allocation3 + $0x40] sm:$0x1] %v3092_v58  ;;  %v3044_v20 = vsel %vm7783_vm4, 0, %v3043_v13  ;;  %v3134_v38 = vsel %vm8207_vm7, 0, %v3133_v55  ;;  %v3031_v58 = vld [vmem:[#allocation3] sm:$0x80] }
 0x242   : > { %3045 = vst [vmem:[#allocation3 + $0x60] sm:$0x80] %v3044_v20  ;;  %3135 = vst [vmem:[#allocation3 + $0x190] sm:$0x1] %v3134_v38  ;;  %v3032_v19 = vsel %vm7783_vm4, 0, %v3031_v58 }
 0x243   : > { %3033 = vst [vmem:[#allocation3] sm:$0x80] %v3032_v19  ;;  %v3176_v46 = vld [vmem:[#allocation3 + $0x30] sm:$0x80] }
 0x244   : > { %v3233_v42 = vshrl.u32 %v3176_v46, 16 }
 0x246   : > { %v3235_v24 = vrot.slane %v3233_v42, 7 }
 0x248   : > { %6843 = vmatmul.mubr.msk.bf16.gmra.mrb[16].mxu0 %vm280_vm1, %v2193_v28  ;;  %v3100_v28 = vld [vmem:[#allocation3 + $0x88] sm:$0x1] }
 0x249   : > { %6846 = vmatprep.mubr.msk.bf16.mxu0 %vm280_vm1, %v2205_v0  ;;  %v3101_v54 = vsel %vm8207_vm7, 0, %v3100_v28  ;;  %v8554_v0 = vld [vmem:[%s9378_s4] sm:$0x3]  ;;  %v3180_v55 = vld [vmem:[#allocation3 + $0x60] sm:$0x80] }
 0x24a   : > { %3102 = vst [vmem:[#allocation3 + $0x88] sm:$0x1] %v3101_v54  ;;  %7686 = vmatprep.subr.msk.bf16.mxu1 %vm838_vm0, %v8554_v0 }
 0x250   : > { %6847 = vmatmul.mubr.msk.bf16.gmra.mrb[20].mxu0 %vm280_vm1, %v2217_v10  ;;  %v3112_v10 = vld [vmem:[#allocation3 + $0xe8] sm:$0x1] }
 0x251   : > { %6850 = vmatprep.mubr.msk.bf16.mxu0 %vm280_vm1, %v2229_v17  ;;  %v3113_v11 = vsel %vm8207_vm7, 0, %v3112_v10  ;;  %v3064_v17 = vld [vmem:[#allocation3 + $0x108] sm:$0x80] }
 0x252   : > { %3114 = vst [vmem:[#allocation3 + $0xe8] sm:$0x1] %v3113_v11  ;;  %v3065_v44 = vsel %vm7783_vm4, 0, %v3064_v17  ;;  %v3174_v11 = vld [vmem:[#allocation3 + $0x18] sm:$0x80] }
 0x253   : > { %3066 = vst [vmem:[#allocation3 + $0x108] sm:$0x80] %v3065_v44  ;;  %v3221_v56 = vshrl.u32 %v3174_v11, 16 }
 0x258   : > { %6851 = vmatmul.mubr.msk.bf16.gmra.mrb[24].mxu0 %vm280_vm1, %v2241_v51  ;;  %v3118_v51 = vld [vmem:[#allocation3 + $0x118] sm:$0x1] }
 0x259   : > { %6854 = vmatprep.mubr.msk.bf16.mxu0 %vm280_vm1, %v2499_v49  ;;  %v3119_v8 = vsel %vm8207_vm7, 0, %v3118_v51  ;;  %v3127_v49 = vld [vmem:[#allocation3 + $0x160] sm:$0x1] }
 0x25a   : > { %3120 = vst [vmem:[#allocation3 + $0x118] sm:$0x1] %v3119_v8  ;;  %v3128_v47 = vsel %vm8207_vm7, 0, %v3127_v49 }
 0x25b   : > { %3129 = vst [vmem:[#allocation3 + $0x160] sm:$0x1] %v3128_v47 }
 0x260   : > { %6855 = vmatmul.mubr.msk.bf16.gmra.mrb[28].mxu0 %vm280_vm1, %v2712_v45  ;;  %v3080_v45 = vsel %vm7783_vm4, 0, %v3079_v30 }
 0x261   : > { %3081 = vst [vmem:[#allocation3 + $0x180] sm:$0x80] %v3080_v45 }
 0x2fb   : > { %v6828_v13 = vpop.f32.mrb[0].mxu0 }
 0x2fc   : > { %v2923_v15 = vmul.f32 %v6828_v13, %v8603_v9  ;;  %v2755_v20 = vpop.f32.mrb[1].mxu0  ;;  %v3223_v13 = vrot.slane %v3221_v56, 7 }
 0x2fd   : > { %v2921_v41 = vmul.f32 %v8603_v9, %v2755_v20  ;;  %v6829_v57 = vpop.f32.mrb[2].mxu0 }
 0x2fe   : > { %v2962_v48 = vadd.f32 %v8608_v26, %v2923_v15  ;;  %v2924_v16 = vmul.f32 %v6829_v57, %v8603_v9  ;;  %v2758_v50 = vpop.f32.mrb[3].mxu0 }
 0x2ff   : > { %v2960_v53 = vadd.f32 %v8608_v26, %v2921_v41  ;;  %v2922_v4 = vmul.f32 %v8603_v9, %v2758_v50 }
 0x300   : > { %v2963_v7 = vadd.f32 %v8608_v26, %v2924_v16  ;;  %v2994_v29 = vmax.f32 %v2962_v48, 0.0  ;;  %v3178_v48 = vld [vmem:[#allocation3 + $0x48] sm:$0x80]  ;;  %v3257_v16 = vshrl.u32 %v3180_v55, 16 }
 0x301   : > { %v2961_v22 = vadd.f32 %v8608_v26, %v2922_v4  ;;  %v2992_v28 = vmax.f32 %v2960_v53, 0.0 }
 0x302   : > { %v2995_v35 = vmax.f32 %v2963_v7, 0.0  ;;  %v3259_v56 = vrot.slane %v3257_v16, 7 }
 0x303   : > { %v2993_v36 = vmax.f32 %v2961_v22, 0.0  ;;  %v6832_v54 = vpop.f32.mrb[4].mxu0 }
 0x304   : > { %v3140_v59 = vpack.c.bf16 %v2995_v35, %v2994_v29  ;;  %v2927_v14 = vmul.f32 %v6832_v54, %v8603_v9  ;;  %v2771_v63 = vpop.f32.mrb[5].mxu0 }
 0x305   : > { %v3139_v21 = vpack.c.bf16 %v2993_v36, %v2992_v28  ;;  %v2925_v12 = vmul.f32 %v8603_v9, %v2771_v63  ;;  %v6833_v40 = vpop.f32.mrb[6].mxu0 }
 0x306   : > { %3157 = vst.msk [vmem:[#allocation3 + $0x38] sm:$0xff] %vm280_vm1, %v3140_v59  ;;  %v2966_v1 = vadd.f32 %v8608_v26, %v2927_v14  ;;  %v2928_v62 = vmul.f32 %v6833_v40, %v8603_v9  ;;  %v2774_v34 = vpop.f32.mrb[7].mxu0 }
 0x307   : > { %3156 = vst.msk [vmem:[#allocation3 + $0x20] sm:$0xff] %vm280_vm1, %v3139_v21  ;;  %v2964_v6 = vadd.f32 %v8608_v26, %v2925_v12  ;;  %v2926_v25 = vmul.f32 %v8603_v9, %v2774_v34  ;;  %v3631_v21 = vsel %vm838_vm0, %v8554_v0, 0  ;;  %v3245_v12 = vshrl.u32 %v3178_v48, 16 }
 0x308   : > { %v2967_v32 = vadd.f32 %v8608_v26, %v2928_v62  ;;  %v2998_v31 = vmax.f32 %v2966_v1, 0.0 }
 0x309   : > { %v2965_v10 = vadd.f32 %v8608_v26, %v2926_v25  ;;  %v2996_v2 = vmax.f32 %v2964_v6, 0.0  ;;  %v8662_v25 = vld [vmem:[#allocation3 + $0x90] sm:$0x80] }
 0x30a   : > { %v2999_v17 = vmax.f32 %v2967_v32, 0.0 }
 0x30b   : > { %v2997_v44 = vmax.f32 %v2965_v10, 0.0  ;;  %v6836_v61 = vpop.f32.mrb[8].mxu0 }
 0x30c   : > { %v3142_v51 = vpack.c.bf16 %v2999_v17, %v2998_v31  ;;  %v2931_v33 = vmul.f32 %v6836_v61, %v8603_v9  ;;  %v2787_v8 = vpop.f32.mrb[9].mxu0  ;;  %v8676_v17 = vld [vmem:[%s9378_s4 + $0xc] sm:$0x3] }
 0x30d   : > { %v3141_v39 = vpack.c.bf16 %v2997_v44, %v2996_v2  ;;  %v2929_v37 = vmul.f32 %v8603_v9, %v2787_v8  ;;  %v6837_v43 = vpop.f32.mrb[10].mxu0  ;;  %v8630_v49 = vld [vmem:[#allocation3 + $0x38] sm:$0xff]  ;;  %v3247_v8 = vrot.slane %v3245_v12, 7 }
 0x30e   : > { %3159 = vst.msk [vmem:[#allocation3 + $0x68] sm:$0xff] %vm280_vm1, %v3142_v51  ;;  %v2970_v47 = vadd.f32 %v8608_v26, %v2931_v33  ;;  %v2932_v23 = vmul.f32 %v6837_v43, %v8603_v9  ;;  %v2790_v30 = vpop.f32.mrb[11].mxu0  ;;  %v8635_v27 = vld [vmem:[#allocation3 + $0x20] sm:$0xff]  ;;  %v3237_v45 = vshrl.u32 %v8630_v49, 16  ;;  %v3240_v5 = vshll.u32 %v8630_v49, 16 }
 0x30f   : > { %3158 = vst.msk [vmem:[#allocation3 + $0x50] sm:$0xff] %vm280_vm1, %v3141_v39  ;;  %v2968_v60 = vadd.f32 %v8608_v26, %v2929_v37  ;;  %v2930_v38 = vmul.f32 %v8603_v9, %v2790_v30  ;;  %v3225_v18 = vshrl.u32 %v8635_v27, 16  ;;  %v3228_v58 = vshll.u32 %v8635_v27, 16 }
 0x310   : > { %v2971_v19 = vadd.f32 %v8608_v26, %v2932_v23  ;;  %v3239_v15 = vrot.slane %v3237_v45, 7  ;;  %v4702_v20 = vrot.slane %v3240_v5, 1  ;;  %v3002_v53 = vmax.f32 %v2970_v47, 0.0 }
 0x311   : > { %v2969_v41 = vadd.f32 %v8608_v26, %v2930_v38  ;;  %v3227_v57 = vrot.slane %v3225_v18, 7  ;;  %v4690_v50 = vrot.slane %v3228_v58, 1  ;;  %v3000_v29 = vmax.f32 %v2968_v60, 0.0 }
 0x312   : > { %v3003_v4 = vmax.f32 %v2971_v19, 0.0  ;;  %v3242_v7 = vor.u32 %v3240_v5, %v3239_v15  ;;  %v8646_v22 = vor.u32 %v4702_v20, %v3237_v45  ;;  %v3281_v47 = vshrl.u32 %v8662_v25, 16 }
 0x313   : > { %v3001_v35 = vmax.f32 %v2969_v41, 0.0  ;;  %v6840_v28 = vpop.f32.mrb[12].mxu0  ;;  %v3230_v36 = vor.u32 %v3228_v58, %v3227_v57  ;;  %v8648_v54 = vor.u32 %v4690_v50, %v3225_v18 }
 0x314   : > { %v3144_v59 = vpack.c.bf16 %v3003_v4, %v3002_v53  ;;  %v2935_v14 = vmul.f32 %v6840_v28, %v8603_v9  ;;  %v2803_v63 = vpop.f32.mrb[13].mxu0  ;;  %v8658_v46 = vsel %vm346_vm5, %v3235_v24, %v3242_v7  ;;  %v3182_v24 = vld [vmem:[#allocation3 + $0x78] sm:$0x80] }
 0x315   : > { %v3143_v40 = vpack.c.bf16 %v3001_v35, %v3000_v29  ;;  %v2933_v1 = vmul.f32 %v8603_v9, %v2803_v63  ;;  %v6841_v62 = vpop.f32.mrb[14].mxu0  ;;  %v8655_v34 = vsel %vm346_vm5, %v3223_v13, %v3230_v36  ;;  %v8660_v6 = vld [vmem:[#allocation3 + $0x68] sm:$0xff]  ;;  %v3269_v41 = vshrl.u32 %v3182_v24, 16 }
 0x316   : > { %3161 = vst.msk [vmem:[#allocation3 + $0x98] sm:$0xff] %vm280_vm1, %v3144_v59  ;;  %v2974_v32 = vadd.f32 %v8608_v26, %v2935_v14  ;;  %v2936_v0 = vmul.f32 %v6841_v62, %v8603_v9  ;;  %v2806_v10 = vpop.f32.mrb[15].mxu0  ;;  %6860 = vmatprep.mubr.msk.bf16.mxu1 %vm280_vm1, %v8655_v34  ;;  %v8669_v11 = vld [vmem:[#allocation3 + $0x50] sm:$0xff]  ;;  %v3261_v42 = vshrl.u32 %v8660_v6, 16  ;;  %v3264_v31 = vshll.u32 %v8660_v6, 16 }
 0x317   : > { %3160 = vst.msk [vmem:[#allocation3 + $0x80] sm:$0xff] %vm280_vm1, %v3143_v40  ;;  %v2972_v2 = vadd.f32 %v8608_v26, %v2933_v1  ;;  %v2934_v44 = vmul.f32 %v8603_v9, %v2806_v10  ;;  %6861 = vmatmul.mubr.msk.bf16.vlgmr.msra.gmra.mrb[0].mxu1 %vm280_vm1, %v8658_v46  ;;  %v3249_v61 = vshrl.u32 %v8669_v11, 16  ;;  %v3252_v51 = vshll.u32 %v8669_v11, 16  ;;  %v3186_v63 = vld [vmem:[#allocation3 + $0xa8] sm:$0x80] }
 0x318   : > { %v2975_v33 = vadd.f32 %v8608_v26, %v2936_v0  ;;  %6893 = vmatpush3.bf16.msra.mxu1 %v3631_v21  ;;  %v3263_v39 = vrot.slane %v3261_v42, 7  ;;  %v3006_v30 = vmax.f32 %v2974_v32, 0.0  ;;  %v4726_v55 = vrot.slane %v3264_v31, 1 }
 0x319   : > { %v2973_v37 = vadd.f32 %v8608_v26, %v2934_v44  ;;  %v3251_v43 = vrot.slane %v3249_v61, 7  ;;  %7687 = vmatprep.subr.msk.bf16.mxu1 %vm838_vm0, %v8676_v17  ;;  %v4714_v23 = vrot.slane %v3252_v51, 1  ;;  %v3004_v60 = vmax.f32 %v2972_v2, 0.0  ;;  %v3188_v2 = vld [vmem:[#allocation3 + $0xc0] sm:$0x80] }
 0x31a   : > { %v3007_v45 = vmax.f32 %v2975_v33, 0.0  ;;  %v3266_v5 = vor.u32 %v3264_v31, %v3263_v39  ;;  %v8693_v57 = vor.u32 %v4726_v55, %v3261_v42  ;;  %v3271_v25 = vrot.slane %v3269_v41, 7 }
 0x31b   : > { %v3005_v38 = vmax.f32 %v2973_v37, 0.0  ;;  %v6844_v18 = vpop.f32.mrb[16].mxu0  ;;  %v3254_v58 = vor.u32 %v3252_v51, %v3251_v43  ;;  %v8690_v19 = vor.u32 %v4714_v23, %v3249_v61  ;;  %v3283_v32 = vrot.slane %v3281_v47, 7 }
 0x31c   : > { %v3146_v13 = vpack.c.bf16 %v3007_v45, %v3006_v30  ;;  %v2939_v15 = vmul.f32 %v6844_v18, %v8603_v9  ;;  %v2819_v20 = vpop.f32.mrb[17].mxu0  ;;  %v8700_v4 = vsel %vm346_vm5, %v3259_v56, %v3266_v5  ;;  %v3293_v31 = vshrl.u32 %v3186_v63, 16 }
 0x31d   : > { %v3145_v48 = vpack.c.bf16 %v3005_v38, %v3004_v60  ;;  %v2937_v16 = vmul.f32 %v8603_v9, %v2819_v20  ;;  %v6845_v50 = vpop.f32.mrb[18].mxu0  ;;  %v8697_v53 = vsel %vm346_vm5, %v3247_v8, %v3254_v58  ;;  %v8702_v7 = vld [vmem:[#allocation3 + $0x98] sm:$0xff]  ;;  %v3305_v45 = vshrl.u32 %v3188_v2, 16 }
 0x31e   : > { %3163 = vst.msk [vmem:[#allocation3 + $0xc8] sm:$0xff] %vm280_vm1, %v3146_v13  ;;  %v2978_v29 = vadd.f32 %v8608_v26, %v2939_v15  ;;  %v2940_v35 = vmul.f32 %v6845_v50, %v8603_v9  ;;  %v2822_v28 = vpop.f32.mrb[19].mxu0  ;;  %6864 = vmatprep.mubr.msk.bf16.mxu1 %vm280_vm1, %v8697_v53  ;;  %v8709_v36 = vld [vmem:[#allocation3 + $0x80] sm:$0xff]  ;;  %v3285_v59 = vshrl.u32 %v8702_v7, 16  ;;  %v3288_v14 = vshll.u32 %v8702_v7, 16 }
 0x31f   : > { %3162 = vst.msk [vmem:[#allocation3 + $0xb0] sm:$0xff] %vm280_vm1, %v3145_v48  ;;  %v2976_v21 = vadd.f32 %v8608_v26, %v2937_v16  ;;  %v2938_v12 = vmul.f32 %v8603_v9, %v2822_v28  ;;  %6865 = vmatmul.mubr.msk.bf16.gmra.mrb[4].mxu1 %vm280_vm1, %v8700_v4  ;;  %v3273_v40 = vshrl.u32 %v8709_v36, 16  ;;  %v3276_v1 = vshll.u32 %v8709_v36, 16 }
 0x320   : > { %v2979_v62 = vadd.f32 %v8608_v26, %v2940_v35  ;;  %v3287_v0 = vrot.slane %v3285_v59, 7  ;;  %v3010_v61 = vmax.f32 %v2978_v29, 0.0  ;;  %v4750_v8 = vrot.slane %v3288_v14, 1  ;;  %v3192_v29 = vld [vmem:[#allocation3 + $0xf0] sm:$0x80] }
 0x321   : > { %v2977_v10 = vadd.f32 %v8608_v26, %v2938_v12  ;;  %v3275_v42 = vrot.slane %v3273_v40, 7  ;;  %v4738_v44 = vrot.slane %v3276_v1, 1  ;;  %v3008_v56 = vmax.f32 %v2976_v21, 0.0 }
 0x322   : > { %v3011_v51 = vmax.f32 %v2979_v62, 0.0  ;;  %v3290_v33 = vor.u32 %v3288_v14, %v3287_v0  ;;  %v8725_v5 = vor.u32 %v4750_v8, %v3285_v59  ;;  %v3295_v21 = vrot.slane %v3293_v31, 7 }
 0x323   : > { %v3009_v39 = vmax.f32 %v2977_v10, 0.0  ;;  %v6848_v37 = vpop.f32.mrb[20].mxu0  ;;  %v3278_v43 = vor.u32 %v3276_v1, %v3275_v42  ;;  %v8722_v24 = vor.u32 %v4738_v44, %v3273_v40  ;;  %v3307_v12 = vrot.slane %v3305_v45, 7 }
 0x324   : > { %v3148_v23 = vpack.c.bf16 %v3011_v51, %v3010_v61  ;;  %v2943_v47 = vmul.f32 %v6848_v37, %v8603_v9  ;;  %v2835_v30 = vpop.f32.mrb[21].mxu0  ;;  %v8732_v58 = vsel %vm346_vm5, %v3283_v32, %v3290_v33  ;;  %v3329_v32 = vshrl.u32 %v3192_v29, 16 }
 0x325   : > { %v3147_v55 = vpack.c.bf16 %v3009_v39, %v3008_v56  ;;  %v2941_v60 = vmul.f32 %v8603_v9, %v2835_v30  ;;  %v6849_v38 = vpop.f32.mrb[22].mxu0  ;;  %v8729_v18 = vsel %vm346_vm5, %v3271_v25, %v3278_v43  ;;  %v8734_v13 = vld [vmem:[#allocation3 + $0xc8] sm:$0xff]  ;;  %v3190_v25 = vld [vmem:[#allocation3 + $0xd8] sm:$0x80] }
 0x326   : > { %3165 = vst.msk [vmem:[#allocation3 + $0xf8] sm:$0xff] %vm280_vm1, %v3148_v23  ;;  %v2982_v15 = vadd.f32 %v8608_v26, %v2943_v47  ;;  %v2944_v20 = vmul.f32 %v6849_v38, %v8603_v9  ;;  %v2838_v41 = vpop.f32.mrb[23].mxu0  ;;  %6868 = vmatprep.mubr.msk.bf16.mxu1 %vm280_vm1, %v8729_v18  ;;  %v8741_v48 = vld [vmem:[#allocation3 + $0xb0] sm:$0xff]  ;;  %v3309_v16 = vshrl.u32 %v8734_v13, 16  ;;  %v3312_v50 = vshll.u32 %v8734_v13, 16 }
 0x327   : > { %3164 = vst.msk [vmem:[#allocation3 + $0xe0] sm:$0xff] %vm280_vm1, %v3147_v55  ;;  %v2980_v35 = vadd.f32 %v8608_v26, %v2941_v60  ;;  %v2942_v28 = vmul.f32 %v8603_v9, %v2838_v41  ;;  %6869 = vmatmul.mubr.msk.bf16.gmra.mrb[8].mxu1 %vm280_vm1, %v8732_v58  ;;  %v3297_v59 = vshrl.u32 %v8741_v48, 16  ;;  %v3300_v14 = vshll.u32 %v8741_v48, 16 }
 0x328   : > { %v2983_v63 = vadd.f32 %v8608_v26, %v2944_v20  ;;  %v3311_v40 = vrot.slane %v3309_v16, 7  ;;  %v3014_v10 = vmax.f32 %v2982_v15, 0.0  ;;  %v4774_v44 = vrot.slane %v3312_v50, 1 }
 0x329   : > { %v2981_v1 = vadd.f32 %v8608_v26, %v2942_v28  ;;  %v3299_v62 = vrot.slane %v3297_v59, 7  ;;  %v4762_v0 = vrot.slane %v3300_v14, 1  ;;  %v3012_v61 = vmax.f32 %v2980_v35, 0.0  ;;  %v3196_v35 = vld [vmem:[#allocation3 + $0x120] sm:$0x80] }
 0x32a   : > { %v3015_v42 = vmax.f32 %v2983_v63, 0.0  ;;  %v3314_v2 = vor.u32 %v3312_v50, %v3311_v40  ;;  %v3317_v43 = vshrl.u32 %v3190_v25, 16  ;;  %v8757_v23 = vor.u32 %v4774_v44, %v3309_v16 }
 0x32b   : > { %v3013_v51 = vmax.f32 %v2981_v1, 0.0  ;;  %v6852_v33 = vpop.f32.mrb[24].mxu0  ;;  %v3302_v8 = vor.u32 %v3300_v14, %v3299_v62  ;;  %v8754_v56 = vor.u32 %v4762_v0, %v3297_v59  ;;  %v3331_v40 = vrot.slane %v3329_v32, 7  ;;  %v3194_v0 = vld [vmem:[#allocation3 + $0x108] sm:$0x80] }
 0x32c   : > { %v3150_v39 = vpack.c.bf16 %v3015_v42, %v3014_v10  ;;  %v2947_v31 = vmul.f32 %v6852_v33, %v8603_v9  ;;  %v2851_v37 = vpop.f32.mrb[25].mxu0  ;;  %v8764_v60 = vsel %vm346_vm5, %v3307_v12, %v3314_v2  ;;  %v3319_v12 = vrot.slane %v3317_v43, 7 }
 0x32d   : > { %v3149_v47 = vpack.c.bf16 %v3013_v51, %v3012_v61  ;;  %v2945_v30 = vmul.f32 %v8603_v9, %v2851_v37  ;;  %v6853_v45 = vpop.f32.mrb[26].mxu0  ;;  %v8761_v55 = vsel %vm346_vm5, %v3295_v21, %v3302_v8  ;;  %v8766_v38 = vld [vmem:[#allocation3 + $0xf8] sm:$0xff]  ;;  %v3353_v10 = vshrl.u32 %v3196_v35, 16 }
 0x32e   : > { %3167 = vst.msk [vmem:[#allocation3 + $0x128] sm:$0xff] %vm280_vm1, %v3150_v39  ;;  %v2986_v15 = vadd.f32 %v8608_v26, %v2947_v31  ;;  %v2948_v20 = vmul.f32 %v6853_v45, %v8603_v9  ;;  %v2854_v41 = vpop.f32.mrb[27].mxu0  ;;  %6872 = vmatprep.mubr.msk.bf16.mxu1 %vm280_vm1, %v8761_v55  ;;  %v8773_v16 = vld [vmem:[#allocation3 + $0xe0] sm:$0xff]  ;;  %v3333_v50 = vshrl.u32 %v8766_v38, 16  ;;  %v3336_v29 = vshll.u32 %v8766_v38, 16 }
 0x32f   : > { %3166 = vst.msk [vmem:[#allocation3 + $0x110] sm:$0xff] %vm280_vm1, %v3149_v47  ;;  %v2984_v28 = vadd.f32 %v8608_v26, %v2945_v30  ;;  %v2946_v59 = vmul.f32 %v8603_v9, %v2854_v41  ;;  %6873 = vmatmul.mubr.msk.bf16.gmra.mrb[12].mxu1 %vm280_vm1, %v8764_v60  ;;  %v3321_v14 = vshrl.u32 %v8773_v16, 16  ;;  %v3324_v63 = vshll.u32 %v8773_v16, 16 }
 0x330   : > { %v2987_v21 = vadd.f32 %v8608_v26, %v2948_v20  ;;  %v3335_v1 = vrot.slane %v3333_v50, 7  ;;  %v3018_v2 = vmax.f32 %v2986_v15, 0.0  ;;  %v4798_v51 = vrot.slane %v3336_v29, 1 }
 0x331   : > { %v2985_v62 = vadd.f32 %v8608_v26, %v2946_v59  ;;  %v3323_v25 = vrot.slane %v3321_v14, 7  ;;  %v4786_v42 = vrot.slane %v3324_v63, 1  ;;  %v3016_v33 = vmax.f32 %v2984_v28, 0.0 }
 0x332   : > { %v3019_v44 = vmax.f32 %v2987_v21, 0.0  ;;  %v3338_v61 = vor.u32 %v3336_v29, %v3335_v1  ;;  %v3341_v30 = vshrl.u32 %v3194_v0, 16  ;;  %v8789_v45 = vor.u32 %v4798_v51, %v3333_v50 }
 0x333   : > { %v3017_v8 = vmax.f32 %v2985_v62, 0.0  ;;  %v6856_v39 = vpop.f32.mrb[28].mxu0  ;;  %v3326_v31 = vor.u32 %v3324_v63, %v3323_v25  ;;  %v8786_v37 = vor.u32 %v4786_v42, %v3321_v14  ;;  %v3355_v42 = vrot.slane %v3353_v10, 7 }
 0x334   : > { %v3152_v47 = vpack.c.bf16 %v3019_v44, %v3018_v2  ;;  %v2951_v32 = vmul.f32 %v6856_v39, %v8603_v9  ;;  %v2867_v43 = vpop.f32.mrb[29].mxu0  ;;  %9419 = vst [vmem:[#allocation5_spill] sm:$0xff] %v8789_v45  ;;  %v8796_v29 = vsel %vm346_vm5, %v3331_v40, %v3338_v61  ;;  %v3343_v61 = vrot.slane %v3341_v30, 7 }
 0x335   : > { %9418 = vst [vmem:[#allocation4_spill] sm:$0xff] %v8786_v37  ;;  %v3151_v20 = vpack.c.bf16 %v3017_v8, %v3016_v33  ;;  %v2949_v41 = vmul.f32 %v8603_v9, %v2867_v43  ;;  %v6857_v15 = vpop.f32.mrb[30].mxu0  ;;  %v8793_v35 = vsel %vm346_vm5, %v3319_v12, %v3326_v31  ;;  %v8798_v28 = vld [vmem:[#allocation3 + $0x128] sm:$0xff]  ;;  %v3198_v33 = vld [vmem:[#allocation3 + $0x138] sm:$0x80] }
 0x336   : > { %3169 = vst.msk [vmem:[#allocation3 + $0x158] sm:$0xff] %vm280_vm1, %v3152_v47  ;;  %v2990_v59 = vadd.f32 %v8608_v26, %v2951_v32  ;;  %v2952_v14 = vmul.f32 %v6857_v15, %v8603_v9  ;;  %v2870_v50 = vpop.f32.mrb[31].mxu0  ;;  %6876 = vmatprep.mubr.msk.bf16.mxu1 %vm280_vm1, %v8793_v35  ;;  %v8805_v63 = vld [vmem:[#allocation3 + $0x110] sm:$0xff]  ;;  %v3357_v21 = vshrl.u32 %v8798_v28, 16  ;;  %v3360_v12 = vshll.u32 %v8798_v28, 16 }
 0x337   : > { %3168 = vst.msk [vmem:[#allocation3 + $0x140] sm:$0xff] %vm280_vm1, %v3151_v20  ;;  %v2988_v40 = vadd.f32 %v8608_v26, %v2949_v41  ;;  %v2950_v1 = vmul.f32 %v8603_v9, %v2870_v50  ;;  %6877 = vmatmul.mubr.msk.bf16.gmra.mrb[16].mxu1 %vm280_vm1, %v8796_v29  ;;  %v3345_v62 = vshrl.u32 %v8805_v63, 16  ;;  %v3348_v25 = vshll.u32 %v8805_v63, 16  ;;  %v3200_v41 = vld [vmem:[#allocation3 + $0x150] sm:$0x80] }
 0x338   : > { %v2991_v0 = vadd.f32 %v8608_v26, %v2952_v14  ;;  %v3359_v2 = vrot.slane %v3357_v21, 7  ;;  %v3022_v39 = vmax.f32 %v2990_v59, 0.0  ;;  %v4822_v47 = vrot.slane %v3360_v12, 1 }
 0x339   : > { %v2989_v44 = vadd.f32 %v8608_v26, %v2950_v1  ;;  %v3347_v51 = vrot.slane %v3345_v62, 7  ;;  %v4810_v8 = vrot.slane %v3348_v25, 1  ;;  %v3020_v32 = vmax.f32 %v2988_v40, 0.0 }
 0x33a   : > { %v3023_v31 = vmax.f32 %v2991_v0, 0.0  ;;  %v3362_v9 = vor.u32 %v3360_v12, %v3359_v2  ;;  %v3365_v14 = vshrl.u32 %v3198_v33, 16  ;;  %v8820_v10 = vor.u32 %v4822_v47, %v3357_v21  ;;  %v3202_v33 = vld [vmem:[#allocation3 + $0x168] sm:$0x80]  ;;  %v3172_v47 = vld [vmem:[#allocation3] sm:$0x80] }
 0x33b   : > { %v3021_v43 = vmax.f32 %v2989_v44, 0.0  ;;  %v3350_v20 = vor.u32 %v3348_v25, %v3347_v51  ;;  %v8818_v15 = vor.u32 %v4810_v8, %v3345_v62  ;;  %v3377_v40 = vshrl.u32 %v3200_v41, 16  ;;  %v8837_v62 = vld [vmem:[#allocation3 + $0x8] sm:$0xff]  ;;  %v3082_v44 = vld [vmem:[#allocation3 + $0x198] sm:$0x80] }
 0x33c   : > { %v3154_v50 = vpack.c.bf16 %v3023_v31, %v3022_v39  ;;  %9421 = vst [vmem:[#allocation7_spill] sm:$0xff] %v8820_v10  ;;  %v8831_v59 = vsel %vm346_vm5, %v3355_v42, %v3362_v9  ;;  %v3367_v42 = vrot.slane %v3365_v14, 7  ;;  %v3083_v39 = vsel %vm7783_vm4, 0, %v3082_v44 }
 0x33d   : > { %9420 = vst [vmem:[#allocation6_spill] sm:$0xff] %v8818_v15  ;;  %v3153_v45 = vpack.c.bf16 %v3021_v43, %v3020_v32  ;;  %v8823_v26 = vsel %vm346_vm5, %v3343_v61, %v3350_v20  ;;  %v8825_v30 = vld [vmem:[#allocation3 + $0x158] sm:$0xff]  ;;  %3084 = vst [vmem:[#allocation3 + $0x198] sm:$0x80] %v3083_v39  ;;  %v3204_v20 = vld [vmem:[#allocation3 + $0x180] sm:$0x80] }
 0x33e   : > { %3171 = vst.msk [vmem:[#allocation3 + $0x188] sm:$0xff] %vm280_vm1, %v3154_v50  ;;  %6880 = vmatprep.mubr.msk.bf16.mxu1 %vm280_vm1, %v8823_v26  ;;  %v8833_v12 = vld [vmem:[#allocation3 + $0x140] sm:$0xff]  ;;  %v3381_v21 = vshrl.u32 %v8825_v30, 16  ;;  %v3384_v1 = vshll.u32 %v8825_v30, 16  ;;  %v3389_v50 = vshrl.u32 %v3202_v33, 16  ;;  %v3209_v8 = vshrl.u32 %v3172_v47, 16 }
 0x33f   : > { %3170 = vst.msk [vmem:[#allocation3 + $0x170] sm:$0xff] %vm280_vm1, %v3153_v45  ;;  %6881 = vmatmul.mubr.msk.bf16.gmra.mrb[20].mxu1 %vm280_vm1, %v8831_v59  ;;  %v3369_v25 = vshrl.u32 %v8833_v12, 16  ;;  %v3372_v0 = vshll.u32 %v8833_v12, 16  ;;  %v3379_v45 = vrot.slane %v3377_v40, 7  ;;  %v9424_v3 = vshrl.u32 %v8837_v62, 16 }
 0x340   : > { %v3383_v2 = vrot.slane %v3381_v21, 7  ;;  %v4846_v61 = vrot.slane %v3384_v1, 1  ;;  %v3216_v40 = vshll.u32 %v8837_v62, 16  ;;  %v3211_v47 = vrot.slane %v3209_v8, 7 }
 0x341   : > { %v3371_v51 = vrot.slane %v3369_v25, 7  ;;  %v4834_v31 = vrot.slane %v3372_v0, 1  ;;  %v3215_v44 = vrot.slane %v9424_v3, 7  ;;  %v3812_v8 = vsel %vm838_vm0, %v8676_v17, 0  ;;  %v6076_v17 = vld [vmem:[%s9378_s4 + $0x8] sm:$0x3] }
 0x342   : > { %v3386_v9 = vor.u32 %v3384_v1, %v3383_v2  ;;  %v8847_v32 = vor.u32 %v4846_v61, %v3381_v21 }
 0x343   : > { %v3374_v43 = vor.u32 %v3372_v0, %v3371_v51  ;;  %v8849_v41 = vor.u32 %v4834_v31, %v3369_v25  ;;  %v3402_v25 = vshrl.u32 %v3204_v20, 16  ;;  %v3391_v51 = vrot.slane %v3389_v50, 7 }
 0x344   : > { %9422 = vst [vmem:[#allocation8_spill] sm:$0xff] %v8847_v32  ;;  %v3387_v21 = vsel %vm346_vm5, %v3379_v45, %v3386_v9  ;;  %v3218_v45 = vor.u32 %v3216_v40, %v3215_v44  ;;  %v6059_v44 = vld [vmem:[%s9378_s4 + $0x2] sm:$0x3] }
 0x345   : > { %9423 = vst [vmem:[#allocation9_spill] sm:$0xff] %v8849_v41  ;;  %v8852_v14 = vsel %vm346_vm5, %v3367_v42, %v3374_v43  ;;  %v8854_v10 = vld [vmem:[#allocation3 + $0x188] sm:$0xff]  ;;  %v3404_v43 = vrot.slane %v3402_v25, 7 }
 0x346   : > { %6884 = vmatprep.mubr.msk.bf16.mxu1 %vm280_vm1, %v8852_v14  ;;  %v8862_v1 = vld [vmem:[#allocation3 + $0x170] sm:$0xff]  ;;  %v3406_v0 = vshrl.u32 %v8854_v10, 16  ;;  %v3409_v42 = vshll.u32 %v8854_v10, 16  ;;  %v3219_v37 = vsel %vm346_vm5, %v3211_v47, %v3218_v45 }
 0x347   : > { %6885 = vmatmul.mubr.msk.bf16.gmra.mrb[24].mxu1 %vm280_vm1, %v3387_v21  ;;  %v3393_v2 = vshrl.u32 %v8862_v1, 16  ;;  %v3396_v61 = vshll.u32 %v8862_v1, 16 }
 0x348   : > { %v3408_v33 = vrot.slane %v3406_v0, 7  ;;  %v5116_v39 = vrot.slane %v3409_v42, 1 }
 0x349   : > { %v3395_v31 = vrot.slane %v3393_v2, 7  ;;  %v4858_v9 = vrot.slane %v3396_v61, 1 }
 0x34a   : > { %v3411_v20 = vor.u32 %v3409_v42, %v3408_v33  ;;  %v8871_v3 = vor.u32 %v5116_v39, %v3406_v0  ;;  %v9084_v0 = vld [vmem:[%s9378_s4 + $0x10] sm:$0x3] }
 0x34b   : > { %v3398_v32 = vor.u32 %v3396_v61, %v3395_v31  ;;  %v8873_v41 = vor.u32 %v4858_v9, %v3393_v2  ;;  %v4650_v33 = vld [vmem:[#allocation3 + $0xa0] sm:$0x1]  ;;  %v5342_v52 = vsel %vm838_vm0, %v9084_v0, 0 }
 0x34c   : > { %v3412_v50 = vsel %vm346_vm5, %v3404_v43, %v3411_v20  ;;  %v4753_v47 = vshll.u32 %v4650_v33, 16  ;;  %v4652_v43 = vld [vmem:[#allocation3 + $0xb8] sm:$0x1]  ;;  %v4654_v20 = vld [vmem:[#allocation3 + $0xd0] sm:$0x1] }
 0x34d   : > { %v3399_v15 = vsel %vm346_vm5, %v3391_v51, %v3398_v32  ;;  %v4648_v51 = vld [vmem:[#allocation3 + $0x88] sm:$0x1] }
 0x34e   : > { %6888 = vmatprep.mubr.msk.bf16.mxu1 %vm280_vm1, %v3399_v15  ;;  %v4741_v31 = vshll.u32 %v4648_v51, 16  ;;  %v4755_v9 = vrot.slane %v4753_v47, 1  ;;  %v6168_v47 = vld [vmem:[%s7813_s10] sm:$0xff]  }
 0x34f   : > { %6889 = vmatmul.mubr.msk.bf16.gmra.mrb[28].mxu1 %vm280_vm1, %v3412_v50 }
 0x350   : > { %6894 = vmatprep.mubr.msk.bf16.mxu1 %vm280_vm1, %v3219_v37  ;;  %v4743_v45 = vrot.slane %v4741_v31, 1 }
 0x357   : > { %6895 = vmatmul.mubr.msk.bf16.vlgmr.msra.gmra.mrb[0].mxu1 %vm280_vm1, %v8655_v34  ;;  %v4042_v34 = vsel %vm838_vm0, %v6059_v44, 0 }
 0x358   : > { %6927 = vmatpush3.bf16.msra.mxu1 %v3812_v8  ;;  %6898 = vmatprep.mubr.msk.bf16.mxu1 %vm280_vm1, %v8658_v46  ;;  %v4777_v8 = vshll.u32 %v4654_v20, 16 }
 0x359   : > { %7688 = vmatprep.subr.msk.bf16.mxu1 %vm838_vm0, %v6059_v44 }
 0x35f   : > { %6899 = vmatmul.mubr.msk.bf16.gmra.mrb[4].mxu1 %vm280_vm1, %v8697_v53 }
 0x360   : > { %6902 = vmatprep.mubr.msk.bf16.mxu1 %vm280_vm1, %v8700_v4 }
 0x367   : > { %6903 = vmatmul.mubr.msk.bf16.gmra.mrb[8].mxu1 %vm280_vm1, %v8729_v18 }
 0x368   : > { %6906 = vmatprep.mubr.msk.bf16.mxu1 %vm280_vm1, %v8732_v58 }
 0x36f   : > { %6907 = vmatmul.mubr.msk.bf16.gmra.mrb[12].mxu1 %vm280_vm1, %v8761_v55 }
 0x370   : > { %6910 = vmatprep.mubr.msk.bf16.mxu1 %vm280_vm1, %v8764_v60 }
 0x377   : > { %6911 = vmatmul.mubr.msk.bf16.gmra.mrb[16].mxu1 %vm280_vm1, %v8793_v35 }
 0x378   : > { %6914 = vmatprep.mubr.msk.bf16.mxu1 %vm280_vm1, %v8796_v29 }
 0x37f   : > { %6915 = vmatmul.mubr.msk.bf16.gmra.mrb[20].mxu1 %vm280_vm1, %v8823_v26 }
 0x380   : > { %6918 = vmatprep.mubr.msk.bf16.mxu1 %vm280_vm1, %v8831_v59 }
 0x387   : > { %6919 = vmatmul.mubr.msk.bf16.gmra.mrb[24].mxu1 %vm280_vm1, %v8852_v14 }
 0x388   : > { %6922 = vmatprep.mubr.msk.bf16.mxu1 %vm280_vm1, %v3387_v21 }
 0x38f   : > { %6923 = vmatmul.mubr.msk.bf16.gmra.mrb[28].mxu1 %vm280_vm1, %v3399_v15 }
 0x390   : > { %6928 = vmatprep.mubr.msk.bf16.mxu1 %vm280_vm1, %v8658_v46  ;;  %v8942_v46 = vld [vmem:[#allocation3 + $0x1a0] sm:$0xff] }
 0x397   : > { %6929 = vmatmul.mubr.msk.bf16.vlgmr.msra.gmra.mrb[0].mxu1 %vm280_vm1, %v8697_v53  ;;  %v3799_v53 = vshrl.u32 %v8942_v46, 16 }
 0x398   : > { %6961 = vmatpush3.bf16.msra.mxu1 %v4042_v34  ;;  %6932 = vmatprep.mubr.msk.bf16.mxu1 %vm280_vm1, %v8700_v4  ;;  %v3206_v4 = vld [vmem:[#allocation3 + $0x198] sm:$0x80]  ;;  %v4779_v34 = vrot.slane %v4777_v8, 1 }
 0x399   : > { %7689 = vmatprep.subr.msk.bf16.mxu1 %vm838_vm0, %v6076_v17 }
 0x39f   : > { %6933 = vmatmul.mubr.msk.bf16.gmra.mrb[4].mxu1 %vm280_vm1, %v8729_v18  ;;  %v3795_v18 = vshrl.u32 %v3206_v4, 16  ;;  %v4658_v4 = vld [vmem:[#allocation3 + $0x100] sm:$0x1] }
 0x3a0   : > { %6936 = vmatprep.mubr.msk.bf16.mxu1 %vm280_vm1, %v8732_v58  ;;  %v3801_v58 = vrot.slane %v3799_v53, 7 }
 0x3a7   : > { %6937 = vmatmul.mubr.msk.bf16.gmra.mrb[8].mxu1 %vm280_vm1, %v8761_v55  ;;  %v3802_v55 = vshll.u32 %v8942_v46, 16 }
 0x3a8   : > { %6940 = vmatprep.mubr.msk.bf16.mxu1 %vm280_vm1, %v8764_v60  ;;  %v3797_v60 = vrot.slane %v3795_v18, 7 }
 0x3a9   : > { %v3804_v37 = vor.u32 %v3802_v55, %v3801_v58  ;;  %v4801_v58 = vshll.u32 %v4658_v4, 16 }
 0x3af   : > { %6941 = vmatmul.mubr.msk.bf16.gmra.mrb[12].mxu1 %vm280_vm1, %v8793_v35  ;;  %v3805_v35 = vsel %vm346_vm5, %v3797_v60, %v3804_v37  ;;  %v4803_v37 = vrot.slane %v4801_v58, 1 }
 0x3b0   : > { %6944 = vmatprep.mubr.msk.bf16.mxu1 %vm280_vm1, %v8796_v29  ;;  %v4242_v29 = vsel %vm838_vm0, %v6076_v17, 0  ;;  %v4656_v17 = vld [vmem:[#allocation3 + $0xe8] sm:$0x1] }
 0x3b1   : > { %v4789_v18 = vshll.u32 %v4656_v17, 16 }
 0x3b3   : > { %v4791_v60 = vrot.slane %v4789_v18, 1 }
 0x3b7   : > { %6945 = vmatmul.mubr.msk.bf16.gmra.mrb[16].mxu1 %vm280_vm1, %v8823_v26  ;;  %v6093_v26 = vld [vmem:[%s9378_s4 + $0xe] sm:$0x3] }
 0x3b8   : > { %6948 = vmatprep.mubr.msk.bf16.mxu1 %vm280_vm1, %v8831_v59  ;;  %v4442_v32 = vsel %vm838_vm0, %v6093_v26, 0 }
 0x3bf   : > { %6949 = vmatmul.mubr.msk.bf16.gmra.mrb[20].mxu1 %vm280_vm1, %v8852_v14  ;;  %v6110_v14 = vld [vmem:[%s9378_s4 + $0x4] sm:$0x3] }
 0x3c0   : > { %6952 = vmatprep.mubr.msk.bf16.mxu1 %vm280_vm1, %v3387_v21  ;;  %v6127_v21 = vld [vmem:[%s9378_s4 + $0xa] sm:$0x3] }
 0x3c7   : > { %6953 = vmatmul.mubr.msk.bf16.gmra.mrb[24].mxu1 %vm280_vm1, %v3399_v15  ;;  %v3085_v15 = vld [vmem:[#allocation3 + $0x10] sm:$0x1] }
 0x3c8   : > { %6956 = vmatprep.mubr.msk.bf16.mxu1 %vm280_vm1, %v3412_v50  ;;  %v3086_v59 = vsel %vm8207_vm7, 0, %v3085_v15  ;;  %v4765_v50 = vshll.u32 %v4652_v43, 16 }
 0x3c9   : > { %3087 = vst [vmem:[#allocation3 + $0x10] sm:$0x1] %v3086_v59  ;;  %v9427_v59 = vld [vmem:[#allocation5_spill] sm:$0xff] }
 0x3ca   : > { %v4767_v44 = vrot.slane %v4765_v50, 1 }
 0x3cf   : > { %6957 = vmatmul.mubr.msk.bf16.gmra.mrb[28].mxu1 %vm280_vm1, %v3805_v35  ;;  %v4660_v35 = vld [vmem:[#allocation3 + $0x118] sm:$0x1] }
 0x3d0   : > { %6962 = vmatprep.mubr.msk.bf16.mxu1 %vm280_vm1, %v8837_v62  ;;  %v4813_v15 = vshll.u32 %v4660_v35, 16 }
 0x3d7   : > { %6963 = vmatmul.mubr.msk.bf16.vlgmr.msra.gmra.mrb[0].mxu1 %vm280_vm1, %v8635_v27 }
 0x3d8   : > { %6995 = vmatpush3.bf16.msra.mxu1 %v4242_v29  ;;  %6966 = vmatprep.mubr.msk.bf16.mxu1 %vm280_vm1, %v8630_v49  ;;  %v4662_v29 = vld [vmem:[#allocation3 + $0x130] sm:$0x1] }
 0x3d9   : > { %7690 = vmatprep.subr.msk.bf16.mxu1 %vm838_vm0, %v6093_v26  ;;  %v9426_v26 = vld [vmem:[#allocation4_spill] sm:$0xff] }
 0x3df   : > { %6967 = vmatmul.mubr.msk.bf16.gmra.mrb[4].mxu1 %vm280_vm1, %v8669_v11 }
 0x3e0   : > { %6970 = vmatprep.mubr.msk.bf16.mxu1 %vm280_vm1, %v8660_v6 }
 0x3e7   : > { %6971 = vmatmul.mubr.msk.bf16.gmra.mrb[8].mxu1 %vm280_vm1, %v8709_v36 }
 0x3e8   : > { %6974 = vmatprep.mubr.msk.bf16.mxu1 %vm280_vm1, %v8702_v7 }
 0x3ef   : > { %6975 = vmatmul.mubr.msk.bf16.gmra.mrb[12].mxu1 %vm280_vm1, %v8741_v48 }
 0x3f0   : > { %6978 = vmatprep.mubr.msk.bf16.mxu1 %vm280_vm1, %v8734_v13 }
 0x3f7   : > { %6979 = vmatmul.mubr.msk.bf16.gmra.mrb[16].mxu1 %vm280_vm1, %v8773_v16 }
 0x3f8   : > { %6982 = vmatprep.mubr.msk.bf16.mxu1 %vm280_vm1, %v8766_v38 }
 0x3ff   : > { %6983 = vmatmul.mubr.msk.bf16.gmra.mrb[20].mxu1 %vm280_vm1, %v8805_v63 }
 0x400   : > { %6986 = vmatprep.mubr.msk.bf16.mxu1 %vm280_vm1, %v8798_v28 }
 0x407   : > { %6987 = vmatmul.mubr.msk.bf16.gmra.mrb[24].mxu1 %vm280_vm1, %v8833_v12 }
 0x408   : > { %6990 = vmatprep.mubr.msk.bf16.mxu1 %vm280_vm1, %v8825_v30 }
 0x40f   : > { %6991 = vmatmul.mubr.msk.bf16.gmra.mrb[28].mxu1 %vm280_vm1, %v8862_v1 }
 0x410   : > { %6996 = vmatprep.mubr.msk.bf16.mxu1 %vm280_vm1, %v8635_v27  ;;  %v4916_v27 = vsel %vm838_vm0, %v6110_v14, 0 }
 0x417   : > { %6997 = vmatmul.mubr.msk.bf16.vlgmr.msra.gmra.mrb[0].mxu1 %vm280_vm1, %v8630_v49 }
 0x418   : > { %7029 = vmatpush3.bf16.msra.mxu1 %v4442_v32  ;;  %7000 = vmatprep.mubr.msk.bf16.mxu1 %vm280_vm1, %v8669_v11  ;;  %v4804_v32 = vsel %vm2049_vm8, %v9427_v59, %v4803_v37  ;;  %v6233_v37 = vld [vmem:[%s7813_s10 + $0x18] sm:$0xff]  }
 0x419   : > { %7691 = vmatprep.subr.msk.bf16.mxu1 %vm838_vm0, %v6110_v14  ;;  %v4825_v14 = vshll.u32 %v4662_v29, 16 }
 0x41f   : > { %7001 = vmatmul.mubr.msk.bf16.gmra.mrb[4].mxu1 %vm280_vm1, %v8660_v6 }
 0x420   : > { %7004 = vmatprep.mubr.msk.bf16.mxu1 %vm280_vm1, %v8709_v36 }
 0x427   : > { %7005 = vmatmul.mubr.msk.bf16.gmra.mrb[8].mxu1 %vm280_vm1, %v8702_v7 }
 0x428   : > { %7008 = vmatprep.mubr.msk.bf16.mxu1 %vm280_vm1, %v8741_v48 }
 0x42f   : > { %7009 = vmatmul.mubr.msk.bf16.gmra.mrb[12].mxu1 %vm280_vm1, %v8734_v13 }
 0x430   : > { %7012 = vmatprep.mubr.msk.bf16.mxu1 %vm280_vm1, %v8773_v16 }
 0x437   : > { %7013 = vmatmul.mubr.msk.bf16.gmra.mrb[16].mxu1 %vm280_vm1, %v8766_v38 }
 0x438   : > { %7016 = vmatprep.mubr.msk.bf16.mxu1 %vm280_vm1, %v8805_v63 }
 0x43f   : > { %7017 = vmatmul.mubr.msk.bf16.gmra.mrb[20].mxu1 %vm280_vm1, %v8798_v28 }
 0x440   : > { %7020 = vmatprep.mubr.msk.bf16.mxu1 %vm280_vm1, %v8833_v12 }
 0x447   : > { %7021 = vmatmul.mubr.msk.bf16.gmra.mrb[24].mxu1 %vm280_vm1, %v8825_v30 }
 0x448   : > { %7024 = vmatprep.mubr.msk.bf16.mxu1 %vm280_vm1, %v8862_v1 }
 0x44f   : > { %7025 = vmatmul.mubr.msk.bf16.gmra.mrb[28].mxu1 %vm280_vm1, %v8854_v10 }
 0x450   : > { %7030 = vmatprep.mubr.msk.bf16.mxu1 %vm280_vm1, %v8630_v49  ;;  %v4638_v49 = vld [vmem:[#allocation3 + $0x10] sm:$0x1] }
 0x457   : > { %7031 = vmatmul.mubr.msk.bf16.vlgmr.msra.gmra.mrb[0].mxu1 %vm280_vm1, %v8669_v11  ;;  %v4681_v11 = vshll.u32 %v4638_v49, 16  ;;  %v4666_v49 = vld [vmem:[#allocation3 + $0x160] sm:$0x1] }
 0x458   : > { %7063 = vmatpush3.bf16.msra.mxu1 %v4916_v27  ;;  %7034 = vmatprep.mubr.msk.bf16.mxu1 %vm280_vm1, %v8660_v6  ;;  %v4678_v6 = vrot.slane %v3216_v40, 1  ;;  %v4644_v40 = vld [vmem:[#allocation3 + $0x58] sm:$0x1]  ;;  %v4827_v27 = vrot.slane %v4825_v14, 1 }
 0x459   : > { %7692 = vmatprep.subr.msk.bf16.mxu1 %vm838_vm0, %v6127_v21  ;;  %v4717_v25 = vshll.u32 %v4644_v40, 16 }
 0x45f   : > { %7035 = vmatmul.mubr.msk.bf16.gmra.mrb[4].mxu1 %vm280_vm1, %v8709_v36 }
 0x460   : > { %7038 = vmatprep.mubr.msk.bf16.mxu1 %vm280_vm1, %v8702_v7  ;;  %v9425_v7 = vshrl.u32 %v8837_v62, 16 }
 0x462   : > { %v4679_v36 = vor.u32 %v4678_v6, %v9425_v7  ;;  %v9428_v6 = vld [vmem:[#allocation6_spill] sm:$0xff] }
 0x467   : > { %7039 = vmatmul.mubr.msk.bf16.gmra.mrb[8].mxu1 %vm280_vm1, %v8741_v48  ;;  %v4640_v48 = vld [vmem:[#allocation3 + $0x28] sm:$0x1] }
 0x468   : > { %7042 = vmatprep.mubr.msk.bf16.mxu1 %vm280_vm1, %v8734_v13  ;;  %v4683_v13 = vrot.slane %v4681_v11, 1 }
 0x46f   : > { %7043 = vmatmul.mubr.msk.bf16.gmra.mrb[12].mxu1 %vm280_vm1, %v8773_v16  ;;  %v4684_v16 = vsel %vm2049_vm8, %v4679_v36, %v4683_v13  ;;  %v9429_v36 = vld [vmem:[#allocation7_spill] sm:$0xff] }
 0x470   : > { %7046 = vmatprep.mubr.msk.bf16.mxu1 %vm280_vm1, %v8766_v38  ;;  %v4642_v38 = vld [vmem:[#allocation3 + $0x40] sm:$0x1]  ;;  %v4828_v13 = vsel %vm2049_vm8, %v9429_v36, %v4827_v27 }
 0x477   : > { %7047 = vmatmul.mubr.msk.bf16.gmra.mrb[16].mxu1 %vm280_vm1, %v8805_v63  ;;  %v4705_v63 = vshll.u32 %v4642_v38, 16 }
 0x478   : > { %7050 = vmatprep.mubr.msk.bf16.mxu1 %vm280_vm1, %v8798_v28  ;;  %v4693_v28 = vshll.u32 %v4640_v48, 16  ;;  %v4849_v48 = vshll.u32 %v4666_v49, 16 }
 0x47f   : > { %7051 = vmatmul.mubr.msk.bf16.gmra.mrb[20].mxu1 %vm280_vm1, %v8833_v12  ;;  %v4707_v12 = vrot.slane %v4705_v63, 1  ;;  %v3136_v63 = vld [vmem:[#allocation3 + $0x1a8] sm:$0x1] }
 0x480   : > { %7054 = vmatprep.mubr.msk.bf16.mxu1 %vm280_vm1, %v8825_v30  ;;  %v4695_v30 = vrot.slane %v4693_v28, 1  ;;  %v4668_v28 = vld [vmem:[#allocation3 + $0x178] sm:$0x1] }
 0x481   : > { %v9090_v42 = vsel %vm2049_vm8, %v8646_v22, %v4707_v12  ;;  %v9430_v12 = vld [vmem:[#allocation9_spill] sm:$0xff] }
 0x482   : > { %v9079_v62 = vsel %vm2049_vm8, %v8648_v54, %v4695_v30  ;;  %v4719_v54 = vrot.slane %v4717_v25, 1  ;;  %v3137_v30 = vsel %vm8207_vm7, 0, %v3136_v63 }
 0x483   : > { %3138 = vst [vmem:[#allocation3 + $0x1a8] sm:$0x1] %v3137_v30 }
 0x484   : > { %v9098_v39 = vsel %vm2049_vm8, %v8690_v19, %v4719_v54  ;;  %v9110_v19 = vsel %vm2049_vm8, %v8722_v24, %v4743_v45  ;;  %v9122_v24 = vsel %vm2049_vm8, %v8754_v56, %v4767_v44  ;;  %v4792_v56 = vsel %vm2049_vm8, %v9426_v26, %v4791_v60  ;;  %v6232_v26 = vld [vmem:[%s7813_s10 + $0x10] sm:$0xff]  }
 0x487   : > { %7055 = vmatmul.mubr.msk.bf16.gmra.mrb[24].mxu1 %vm280_vm1, %v8862_v1  ;;  %v4646_v1 = vld [vmem:[#allocation3 + $0x70] sm:$0x1] }
 0x488   : > { %7058 = vmatprep.mubr.msk.bf16.mxu1 %vm280_vm1, %v8854_v10  ;;  %v5129_v10 = vsel %vm838_vm0, %v6127_v21, 0  ;;  %v4729_v2 = vshll.u32 %v4646_v1, 16  ;;  %v4664_v21 = vld [vmem:[#allocation3 + $0x148] sm:$0x1]  ;;  %v4861_v1 = vshll.u32 %v4668_v28, 16  ;;  %v6178_v28 = vunpack.c.h.bf16 %v6232_v26 }
 0x489   : > { %v4837_v7 = vshll.u32 %v4664_v21, 16 }
 0x48a   : > { %v4731_v61 = vrot.slane %v4729_v2, 1  ;;  %v4863_v2 = vrot.slane %v4861_v1, 1  ;;  %v6235_v1 = vld [vmem:[%s7813_s10 + $0x28] sm:$0xff]  }
 0x48b   : > { %v4839_v38 = vrot.slane %v4837_v7, 1 }
 0x48c   : > { %v9104_v22 = vsel %vm2049_vm8, %v8693_v57, %v4731_v61  ;;  %v9116_v57 = vsel %vm2049_vm8, %v8725_v5, %v4755_v9  ;;  %v9128_v5 = vsel %vm2049_vm8, %v8757_v23, %v4779_v34  ;;  %v4815_v23 = vrot.slane %v4813_v15, 1  ;;  %v9221_v9 = vld [vmem:[%s9380_s6] ss:$0 sm:$0xff] }
 0x48d   : > { %v4840_v40 = vsel %vm2049_vm8, %v9430_v12, %v4839_v38  ;;  %v4864_v54 = vsel %vm2049_vm8, %v8873_v41, %v4863_v2  ;;  %v4670_v41 = vld [vmem:[#allocation3 + $0x190] sm:$0x1] }
 0x48e   : > { %v4816_v11 = vsel %vm2049_vm8, %v9428_v6, %v4815_v23  ;;  %v6181_v23 = vunpack.c.l.bf16 %v6233_v37  ;;  %v6177_v6 = vunpack.c.l.bf16 %v6232_v26  ;;  %v6234_v2 = vld [vmem:[%s7813_s10 + $0x20] sm:$0xff]  }
 0x48f   : > { %7059 = vmatmul.mubr.msk.bf16.gmra.mrb[28].mxu1 %vm280_vm1, %v8942_v46 }
 0x490   : > { %7064 = vmatprep.mubr.msk.bf16.mxu1 %vm280_vm1, %v4684_v16  ;;  %v4851_v16 = vrot.slane %v4849_v48, 1 }
 0x497   : > { %7065 = vmatmul.mubr.msk.bf16.vlgmr.msra.gmra.mrb[0].mxu1 %vm280_vm1, %v9079_v62 }
 0x498   : > { %7097 = vmatpush3.bf16.msra.mxu1 %v5129_v10  ;;  %7068 = vmatprep.mubr.msk.bf16.mxu1 %vm280_vm1, %v9090_v42  ;;  %v9431_v10 = vld [vmem:[#allocation8_spill] sm:$0xff] }
 0x499   : > { %7693 = vmatprep.subr.msk.bf16.mxu1 %vm838_vm0, %v9084_v0  ;;  %v4852_v25 = vsel %vm2049_vm8, %v9431_v10, %v4851_v16 }
 0x49f   : > { %7069 = vmatmul.mubr.msk.bf16.gmra.mrb[4].mxu1 %vm280_vm1, %v9098_v39 }
 0x4a0   : > { %7072 = vmatprep.mubr.msk.bf16.mxu1 %vm280_vm1, %v9104_v22 }
 0x4a7   : > { %7073 = vmatmul.mubr.msk.bf16.gmra.mrb[8].mxu1 %vm280_vm1, %v9110_v19 }
 0x4a8   : > { %7076 = vmatprep.mubr.msk.bf16.mxu1 %vm280_vm1, %v9116_v57 }
 0x4af   : > { %7077 = vmatmul.mubr.msk.bf16.gmra.mrb[12].mxu1 %vm280_vm1, %v9122_v24 }
 0x4b0   : > { %7080 = vmatprep.mubr.msk.bf16.mxu1 %vm280_vm1, %v9128_v5 }
 0x4b7   : > { %7081 = vmatmul.mubr.msk.bf16.gmra.mrb[16].mxu1 %vm280_vm1, %v4792_v56 }
 0x4b8   : > { %7084 = vmatprep.mubr.msk.bf16.mxu1 %vm280_vm1, %v4804_v32 }
 0x4bf   : > { %7085 = vmatmul.mubr.msk.bf16.gmra.mrb[20].mxu1 %vm280_vm1, %v4816_v11 }
 0x4c0   : > { %7088 = vmatprep.mubr.msk.bf16.mxu1 %vm280_vm1, %v4828_v13 }
 0x4c7   : > { %7089 = vmatmul.mubr.msk.bf16.gmra.mrb[24].mxu1 %vm280_vm1, %v4840_v40 }
 0x4c8   : > { %7092 = vmatprep.mubr.msk.bf16.mxu1 %vm280_vm1, %v4852_v25 }
 0x4cf   : > { %7093 = vmatmul.mubr.msk.bf16.gmra.mrb[28].mxu1 %vm280_vm1, %v4864_v54 }
 0x4d0   : > { %7098 = vmatprep.mubr.msk.bf16.mxu1 %vm280_vm1, %v9079_v62  ;;  %v5119_v62 = vshll.u32 %v4670_v41, 16 }
 0x4d2   : > { %v5121_v0 = vrot.slane %v5119_v62, 1 }
 0x4d4   : > { %v5122_v61 = vsel %vm2049_vm8, %v8871_v3, %v5121_v0  ;;  %v4672_v3 = vld [vmem:[#allocation3 + $0x1a8] sm:$0x1] }
 0x4d5   : > { %v5332_v51 = vshll.u32 %v4672_v3, 16 }
 0x4d7   : > { %7099 = vmatmul.mubr.msk.bf16.vlgmr.msra.gmra.mrb[0].mxu1 %vm280_vm1, %v9090_v42 }
 0x4d8   : > { %7131 = vmatpush3.bf16.msra.mxu1 %v5342_v52  ;;  %7102 = vmatprep.mubr.msk.bf16.mxu1 %vm280_vm1, %v9098_v39 }
 0x4df   : > { %7103 = vmatmul.mubr.msk.bf16.gmra.mrb[4].mxu1 %vm280_vm1, %v9104_v22 }
 0x4e0   : > { %7106 = vmatprep.mubr.msk.bf16.mxu1 %vm280_vm1, %v9110_v19 }
 0x4e7   : > { %7107 = vmatmul.mubr.msk.bf16.gmra.mrb[8].mxu1 %vm280_vm1, %v9116_v57 }
 0x4e8   : > { %7110 = vmatprep.mubr.msk.bf16.mxu1 %vm280_vm1, %v9122_v24 }
 0x4ef   : > { %7111 = vmatmul.mubr.msk.bf16.gmra.mrb[12].mxu1 %vm280_vm1, %v9128_v5 }
 0x4f0   : > { %7114 = vmatprep.mubr.msk.bf16.mxu1 %vm280_vm1, %v4792_v56 }
 0x4f7   : > { %7115 = vmatmul.mubr.msk.bf16.gmra.mrb[16].mxu1 %vm280_vm1, %v4804_v32 }
 0x4f8   : > { %7118 = vmatprep.mubr.msk.bf16.mxu1 %vm280_vm1, %v4816_v11 }
 0x4ff   : > { %7119 = vmatmul.mubr.msk.bf16.gmra.mrb[20].mxu1 %vm280_vm1, %v4828_v13 }
 0x500   : > { %7122 = vmatprep.mubr.msk.bf16.mxu1 %vm280_vm1, %v4840_v40 }
 0x507   : > { %7123 = vmatmul.mubr.msk.bf16.gmra.mrb[24].mxu1 %vm280_vm1, %v4852_v25 }
 0x508   : > { %7126 = vmatprep.mubr.msk.bf16.mxu1 %vm280_vm1, %v4864_v54 }
 0x50f   : > { %7127 = vmatmul.mubr.msk.bf16.gmra.mrb[28].mxu1 %vm280_vm1, %v5122_v61 }
 0x510   : > { %7132 = vmatprep.mubr.msk.bf16.mxu1 %vm280_vm1, %v9090_v42  ;;  %v5329_v42 = vrot.slane %v3802_v55, 1  ;;  %v6231_v55 = vld [vmem:[%s7813_s10 + $0x8] sm:$0xff]  }
 0x511   : > { %v6174_v44 = vunpack.c.h.bf16 %v6231_v55 }
 0x512   : > { %v5330_v33 = vor.u32 %v5329_v42, %v3799_v53  ;;  %v6173_v53 = vunpack.c.l.bf16 %v6231_v55 }
 0x517   : > { %7133 = vmatmul.mubr.msk.bf16.vlgmr.msra.gmra.mrb[0].mxu1 %vm280_vm1, %v9098_v39  ;;  %v5334_v39 = vrot.slane %v5332_v51, 1 }
 0x518   : > { %7136 = vmatprep.mubr.msk.bf16.mxu1 %vm280_vm1, %v9104_v22  ;;  %v9214_v22 = vld [vmem:[%s9379_s5] ss:$0 sm:$0xff] }
 0x519   : > { %v5335_v31 = vsel %vm2049_vm8, %v5330_v33, %v5334_v39  ;;  %v6185_v33 = vunpack.c.l.bf16 %v6234_v2 }
 0x51f   : > { %7137 = vmatmul.mubr.msk.bf16.gmra.mrb[4].mxu1 %vm280_vm1, %v9110_v19  ;;  %v6169_v19 = vunpack.c.l.bf16 %v6168_v47 }
 0x520   : > { %7140 = vmatprep.mubr.msk.bf16.mxu1 %vm280_vm1, %v9116_v57 }
 0x527   : > { %7141 = vmatmul.mubr.msk.bf16.gmra.mrb[8].mxu1 %vm280_vm1, %v9122_v24  ;;  %v6170_v24 = vunpack.c.h.bf16 %v6168_v47  ;;  %v6190_v47 = vunpack.c.h.bf16 %v6235_v1 }
 0x528   : > { %7144 = vmatprep.mubr.msk.bf16.mxu1 %vm280_vm1, %v9128_v5 }
 0x52f   : > { %7145 = vmatmul.mubr.msk.bf16.gmra.mrb[12].mxu1 %vm280_vm1, %v4792_v56 }
 0x530   : > { %7148 = vmatprep.mubr.msk.bf16.mxu1 %vm280_vm1, %v4804_v32 }
 0x537   : > { %7149 = vmatmul.mubr.msk.bf16.gmra.mrb[16].mxu1 %vm280_vm1, %v4816_v11 }
 0x538   : > { %7152 = vmatprep.mubr.msk.bf16.mxu1 %vm280_vm1, %v4828_v13  ;;  %v6182_v13 = vunpack.c.h.bf16 %v6233_v37 }
 0x53f   : > { %7153 = vmatmul.mubr.msk.bf16.gmra.mrb[20].mxu1 %vm280_vm1, %v4840_v40 }
 0x540   : > { %7156 = vmatprep.mubr.msk.bf16.mxu1 %vm280_vm1, %v4852_v25 }
 0x547   : > { %7157 = vmatmul.mubr.msk.bf16.gmra.mrb[24].mxu1 %vm280_vm1, %v4864_v54 }
 0x548   : > { %7160 = vmatprep.mubr.msk.bf16.mxu1 %vm280_vm1, %v5122_v61  ;;  %v6189_v61 = vunpack.c.l.bf16 %v6235_v1 }
 0x54f   : > { %7161 = vmatmul.mubr.msk.bf16.gmra.mrb[28].mxu1 %vm280_vm1, %v5335_v31 }
 0x5ea   : > { %v7134_v45 = vpop.f32.mrb[0].mxu1 }
 0x5eb   : > { %v5546_v46 = vmul.f32 %v7134_v45, %v9214_v22  ;;  %v5378_v43 = vpop.f32.mrb[1].mxu1 }
 0x5ec   : > { %v5544_v20 = vmul.f32 %v9214_v22, %v5378_v43  ;;  %v7135_v50 = vpop.f32.mrb[2].mxu1  ;;  %v6186_v43 = vunpack.c.h.bf16 %v6234_v2 }
 0x5ed   : > { %v5585_v57 = vadd.f32 %v9221_v9, %v5546_v46  ;;  %v5547_v8 = vmul.f32 %v7135_v50, %v9214_v22  ;;  %v5381_v34 = vpop.f32.mrb[3].mxu1 }
 0x5ee   : > { %v5583_v17 = vadd.f32 %v9221_v9, %v5544_v20  ;;  %v5545_v4 = vmul.f32 %v9214_v22, %v5381_v34 }
 0x5ef   : > { %v5681_v18 = vadd.f32 %v6173_v53, %v5585_v57  ;;  %v5586_v5 = vadd.f32 %v9221_v9, %v5547_v8  ;;  %v6237_v8 = vld [vmem:[%s7813_s10 + $0x38] sm:$0xff]  }
 0x5f0   : > { %v5679_v58 = vadd.f32 %v6169_v19, %v5583_v17  ;;  %v5584_v60 = vadd.f32 %v9221_v9, %v5545_v4  ;;  %v6236_v17 = vld [vmem:[%s7813_s10 + $0x30] sm:$0xff]  }
 0x5f1   : > { %v5713_v35 = vmax.f32 %v5681_v18, 0.0  ;;  %v5682_v29 = vadd.f32 %v6174_v44, %v5586_v5  ;;  %v6193_v26 = vunpack.c.l.bf16 %v6236_v17 }
 0x5f2   : > { %v5711_v56 = vmax.f32 %v5679_v58, 0.0  ;;  %v5680_v15 = vadd.f32 %v6170_v24, %v5584_v60  ;;  %v7138_v59 = vpop.f32.mrb[4].mxu1  ;;  %v6197_v60 = vunpack.c.l.bf16 %v6237_v8 }
 0x5f3   : > { %5745 = vst.msk [vmem:[%s9234_s14 + $0x10] sm:$0xff] %vm280_vm1, %v5713_v35  ;;  %v5714_v32 = vmax.f32 %v5682_v29, 0.0  ;;  %v5550_v14 = vmul.f32 %v7138_v59, %v9214_v22  ;;  %v5394_v27 = vpop.f32.mrb[5].mxu1 }
 0x5f4   : > { %5743 = vst.msk [vmem:[%s9234_s14] sm:$0xff] %vm280_vm1, %v5711_v56  ;;  %v5712_v21 = vmax.f32 %v5680_v15, 0.0  ;;  %v5548_v49 = vmul.f32 %v9214_v22, %v5394_v27  ;;  %v7139_v11 = vpop.f32.mrb[6].mxu1 }
 0x5f5   : > { %5746 = vst.msk [vmem:[%s9234_s14 + $0x18] sm:$0xff] %vm280_vm1, %v5714_v32  ;;  %v5589_v7 = vadd.f32 %v9221_v9, %v5550_v14  ;;  %v5551_v36 = vmul.f32 %v7139_v11, %v9214_v22  ;;  %v5397_v48 = vpop.f32.mrb[7].mxu1  ;;  %v6198_v32 = vunpack.c.h.bf16 %v6237_v8 }
 0x5f6   : > { %5744 = vst.msk [vmem:[%s9234_s14 + $0x8] sm:$0xff] %vm280_vm1, %v5712_v21  ;;  %v5587_v38 = vadd.f32 %v9221_v9, %v5548_v49  ;;  %v5549_v16 = vmul.f32 %v9214_v22, %v5397_v48  ;;  %v6194_v21 = vunpack.c.h.bf16 %v6236_v17 }
 0x5f7   : > { %v5685_v63 = vadd.f32 %v6181_v23, %v5589_v7  ;;  %v5590_v30 = vadd.f32 %v9221_v9, %v5551_v36  ;;  %v6239_v36 = vld [vmem:[%s7813_s10 + $0x48] sm:$0xff]  }
 0x5f8   : > { %v5683_v12 = vadd.f32 %v6177_v6, %v5587_v38  ;;  %v5588_v40 = vadd.f32 %v9221_v9, %v5549_v16  ;;  %v6238_v38 = vld [vmem:[%s7813_s10 + $0x40] sm:$0xff]  }
 0x5f9   : > { %v5717_v10 = vmax.f32 %v5685_v63, 0.0  ;;  %v5686_v25 = vadd.f32 %v6182_v13, %v5590_v30  ;;  %v6201_v2 = vunpack.c.l.bf16 %v6238_v38 }
 0x5fa   : > { %v5715_v54 = vmax.f32 %v5683_v12, 0.0  ;;  %v5684_v52 = vadd.f32 %v6178_v28, %v5588_v40  ;;  %v7142_v41 = vpop.f32.mrb[8].mxu1  ;;  %v6205_v40 = vunpack.c.l.bf16 %v6239_v36 }
 0x5fb   : > { %5749 = vst.msk [vmem:[%s9234_s14 + $0x30] sm:$0xff] %vm280_vm1, %v5717_v10  ;;  %v5718_v62 = vmax.f32 %v5686_v25, 0.0  ;;  %v5554_v0 = vmul.f32 %v7142_v41, %v9214_v22  ;;  %v5410_v3 = vpop.f32.mrb[9].mxu1 }
 0x5fc   : > { %5747 = vst.msk [vmem:[%s9234_s14 + $0x20] sm:$0xff] %vm280_vm1, %v5715_v54  ;;  %v5716_v42 = vmax.f32 %v5684_v52, 0.0  ;;  %v5552_v51 = vmul.f32 %v9214_v22, %v5410_v3  ;;  %v7143_v39 = vpop.f32.mrb[10].mxu1 }
 0x5fd   : > { %5750 = vst.msk [vmem:[%s9234_s14 + $0x38] sm:$0xff] %vm280_vm1, %v5718_v62  ;;  %v5593_v31 = vadd.f32 %v9221_v9, %v5554_v0  ;;  %v5555_v55 = vmul.f32 %v7143_v39, %v9214_v22  ;;  %v5413_v45 = vpop.f32.mrb[11].mxu1  ;;  %v6206_v62 = vunpack.c.h.bf16 %v6239_v36 }
 0x5fe   : > { %5748 = vst.msk [vmem:[%s9234_s14 + $0x28] sm:$0xff] %vm280_vm1, %v5716_v42  ;;  %v5591_v46 = vadd.f32 %v9221_v9, %v5552_v51  ;;  %v5553_v53 = vmul.f32 %v9214_v22, %v5413_v45  ;;  %v6202_v42 = vunpack.c.h.bf16 %v6238_v38 }
 0x5ff   : > { %v5689_v20 = vadd.f32 %v6189_v61, %v5593_v31  ;;  %v5594_v19 = vadd.f32 %v9221_v9, %v5555_v55  ;;  %v6241_v55 = vld [vmem:[%s7813_s10 + $0x58] sm:$0xff]  }
 0x600   : > { %v5687_v50 = vadd.f32 %v6185_v33, %v5591_v46  ;;  %v5592_v57 = vadd.f32 %v9221_v9, %v5553_v53  ;;  %v6240_v46 = vld [vmem:[%s7813_s10 + $0x50] sm:$0xff]  }
 0x601   : > { %v5721_v44 = vmax.f32 %v5689_v20, 0.0  ;;  %v5690_v34 = vadd.f32 %v6190_v47, %v5594_v19  ;;  %v6209_v17 = vunpack.c.l.bf16 %v6240_v46 }
 0x602   : > { %v5719_v4 = vmax.f32 %v5687_v50, 0.0  ;;  %v5688_v24 = vadd.f32 %v6186_v43, %v5592_v57  ;;  %v7146_v18 = vpop.f32.mrb[12].mxu1  ;;  %v6213_v57 = vunpack.c.l.bf16 %v6241_v55 }
 0x603   : > { %5753 = vst.msk [vmem:[%s9234_s14 + $0x50] sm:$0xff] %vm280_vm1, %v5721_v44  ;;  %v5722_v5 = vmax.f32 %v5690_v34, 0.0  ;;  %v5558_v58 = vmul.f32 %v7146_v18, %v9214_v22  ;;  %v5426_v37 = vpop.f32.mrb[13].mxu1 }
 0x604   : > { %5751 = vst.msk [vmem:[%s9234_s14 + $0x40] sm:$0xff] %vm280_vm1, %v5719_v4  ;;  %v5720_v35 = vmax.f32 %v5688_v24, 0.0  ;;  %v5556_v29 = vmul.f32 %v9214_v22, %v5426_v37  ;;  %v7147_v56 = vpop.f32.mrb[14].mxu1 }
 0x605   : > { %5754 = vst.msk [vmem:[%s9234_s14 + $0x58] sm:$0xff] %vm280_vm1, %v5722_v5  ;;  %v5597_v15 = vadd.f32 %v9221_v9, %v5558_v58  ;;  %v5559_v59 = vmul.f32 %v7147_v56, %v9214_v22  ;;  %v5429_v14 = vpop.f32.mrb[15].mxu1  ;;  %v6214_v5 = vunpack.c.h.bf16 %v6241_v55 }
 0x606   : > { %5752 = vst.msk [vmem:[%s9234_s14 + $0x48] sm:$0xff] %vm280_vm1, %v5720_v35  ;;  %v5595_v23 = vadd.f32 %v9221_v9, %v5556_v29  ;;  %v5557_v27 = vmul.f32 %v9214_v22, %v5429_v14  ;;  %v6210_v35 = vunpack.c.h.bf16 %v6240_v46 }
 0x607   : > { %v5693_v49 = vadd.f32 %v6197_v60, %v5597_v15  ;;  %v5598_v6 = vadd.f32 %v9221_v9, %v5559_v59  ;;  %v6243_v59 = vld [vmem:[%s7813_s10 + $0x68] sm:$0xff]  }
 0x608   : > { %v5691_v11 = vadd.f32 %v6193_v26, %v5595_v23  ;;  %v5596_v7 = vadd.f32 %v9221_v9, %v5557_v27  ;;  %v6242_v23 = vld [vmem:[%s7813_s10 + $0x60] sm:$0xff]  }
 0x609   : > { %v5725_v13 = vmax.f32 %v5693_v49, 0.0  ;;  %v5694_v48 = vadd.f32 %v6198_v32, %v5598_v6  ;;  %v6217_v38 = vunpack.c.l.bf16 %v6242_v23 }
 0x60a   : > { %v5723_v16 = vmax.f32 %v5691_v11, 0.0  ;;  %v5692_v28 = vadd.f32 %v6194_v21, %v5596_v7  ;;  %v7150_v63 = vpop.f32.mrb[16].mxu1  ;;  %v6221_v7 = vunpack.c.l.bf16 %v6243_v59 }
 0x60b   : > { %5757 = vst.msk [vmem:[%s9234_s14 + $0x70] sm:$0xff] %vm280_vm1, %v5725_v13  ;;  %v5726_v30 = vmax.f32 %v5694_v48, 0.0  ;;  %v5562_v12 = vmul.f32 %v7150_v63, %v9214_v22  ;;  %v5442_v1 = vpop.f32.mrb[17].mxu1 }
 0x60c   : > { %5755 = vst.msk [vmem:[%s9234_s14 + $0x60] sm:$0xff] %vm280_vm1, %v5723_v16  ;;  %v5724_v10 = vmax.f32 %v5692_v28, 0.0  ;;  %v5560_v25 = vmul.f32 %v9214_v22, %v5442_v1  ;;  %v7151_v54 = vpop.f32.mrb[18].mxu1 }
 0x60d   : > { %5758 = vst.msk [vmem:[%s9234_s14 + $0x78] sm:$0xff] %vm280_vm1, %v5726_v30  ;;  %v5601_v52 = vadd.f32 %v9221_v9, %v5562_v12  ;;  %v5563_v41 = vmul.f32 %v7151_v54, %v9214_v22  ;;  %v5445_v0 = vpop.f32.mrb[19].mxu1  ;;  %v6222_v30 = vunpack.c.h.bf16 %v6243_v59 }
 0x60e   : > { %5756 = vst.msk [vmem:[%s9234_s14 + $0x68] sm:$0xff] %vm280_vm1, %v5724_v10  ;;  %v5599_v61 = vadd.f32 %v9221_v9, %v5560_v25  ;;  %v5561_v3 = vmul.f32 %v9214_v22, %v5445_v0  ;;  %v6218_v10 = vunpack.c.h.bf16 %v6242_v23 }
 0x60f   : > { %v5697_v51 = vadd.f32 %v6205_v40, %v5601_v52  ;;  %v5602_v33 = vadd.f32 %v9221_v9, %v5563_v41  ;;  %v6245_v41 = vld [vmem:[%s7813_s10 + $0x78] sm:$0xff]  }
 0x610   : > { %v5695_v39 = vadd.f32 %v6201_v2, %v5599_v61  ;;  %v5600_v31 = vadd.f32 %v9221_v9, %v5561_v3  ;;  %v6244_v61 = vld [vmem:[%s7813_s10 + $0x70] sm:$0xff]  }
 0x611   : > { %v5729_v47 = vmax.f32 %v5697_v51, 0.0  ;;  %v5698_v45 = vadd.f32 %v6206_v62, %v5602_v33  ;;  %v6225_v46 = vunpack.c.l.bf16 %v6244_v61 }
 0x612   : > { %v5727_v53 = vmax.f32 %v5695_v39, 0.0  ;;  %v5696_v43 = vadd.f32 %v6202_v42, %v5600_v31  ;;  %v7154_v20 = vpop.f32.mrb[20].mxu1  ;;  %v6229_v31 = vunpack.c.l.bf16 %v6245_v41 }
 0x613   : > { %5761 = vst.msk [vmem:[%s9234_s14 + $0x90] sm:$0xff] %vm280_vm1, %v5729_v47  ;;  %v5730_v19 = vmax.f32 %v5698_v45, 0.0  ;;  %v5566_v50 = vmul.f32 %v7154_v20, %v9214_v22  ;;  %v5458_v8 = vpop.f32.mrb[21].mxu1 }
 0x614   : > { %5759 = vst.msk [vmem:[%s9234_s14 + $0x80] sm:$0xff] %vm280_vm1, %v5727_v53  ;;  %v5728_v44 = vmax.f32 %v5696_v43, 0.0  ;;  %v5564_v34 = vmul.f32 %v9214_v22, %v5458_v8  ;;  %v7155_v4 = vpop.f32.mrb[22].mxu1 }
 0x615   : > { %5762 = vst.msk [vmem:[%s9234_s14 + $0x98] sm:$0xff] %vm280_vm1, %v5730_v19  ;;  %v5605_v24 = vadd.f32 %v9221_v9, %v5566_v50  ;;  %v5567_v18 = vmul.f32 %v7155_v4, %v9214_v22  ;;  %v5461_v58 = vpop.f32.mrb[23].mxu1  ;;  %v6230_v19 = vunpack.c.h.bf16 %v6245_v41 }
 0x616   : > { %5760 = vst.msk [vmem:[%s9234_s14 + $0x88] sm:$0xff] %vm280_vm1, %v5728_v44  ;;  %v5603_v60 = vadd.f32 %v9221_v9, %v5564_v34  ;;  %v5565_v37 = vmul.f32 %v9214_v22, %v5461_v58  ;;  %v6226_v44 = vunpack.c.h.bf16 %v6244_v61 }
 0x617   : > { %v5701_v29 = vadd.f32 %v6213_v57, %v5605_v24  ;;  %v5606_v26 = vadd.f32 %v9221_v9, %v5567_v18 }
 0x618   : > { %v5699_v56 = vadd.f32 %v6209_v17, %v5603_v60  ;;  %v5604_v15 = vadd.f32 %v9221_v9, %v5565_v37 }
 0x619   : > { %v5733_v32 = vmax.f32 %v5701_v29, 0.0  ;;  %v5702_v14 = vadd.f32 %v6214_v5, %v5606_v26 }
 0x61a   : > { %v5731_v27 = vmax.f32 %v5699_v56, 0.0  ;;  %v5700_v21 = vadd.f32 %v6210_v35, %v5604_v15  ;;  %v7158_v49 = vpop.f32.mrb[24].mxu1 }
 0x61b   : > { %5765 = vst.msk [vmem:[%s9234_s14 + $0xb0] sm:$0xff] %vm280_vm1, %v5733_v32  ;;  %v5734_v6 = vmax.f32 %v5702_v14, 0.0  ;;  %v5570_v11 = vmul.f32 %v7158_v49, %v9214_v22  ;;  %v5474_v36 = vpop.f32.mrb[25].mxu1 }
 0x61c   : > { %5763 = vst.msk [vmem:[%s9234_s14 + $0xa0] sm:$0xff] %vm280_vm1, %v5731_v27  ;;  %v5732_v13 = vmax.f32 %v5700_v21, 0.0  ;;  %v5568_v48 = vmul.f32 %v9214_v22, %v5474_v36  ;;  %v7159_v16 = vpop.f32.mrb[26].mxu1 }
 0x61d   : > { %5766 = vst.msk [vmem:[%s9234_s14 + $0xb8] sm:$0xff] %vm280_vm1, %v5734_v6  ;;  %v5609_v28 = vadd.f32 %v9221_v9, %v5570_v11  ;;  %v5571_v63 = vmul.f32 %v7159_v16, %v9214_v22  ;;  %v5477_v12 = vpop.f32.mrb[27].mxu1 }
 0x61e   : > { %5764 = vst.msk [vmem:[%s9234_s14 + $0xa8] sm:$0xff] %vm280_vm1, %v5732_v13  ;;  %v5607_v40 = vadd.f32 %v9221_v9, %v5568_v48  ;;  %v5569_v1 = vmul.f32 %v9214_v22, %v5477_v12 }
 0x61f   : > { %v5705_v25 = vadd.f32 %v6221_v7, %v5609_v28  ;;  %v5610_v2 = vadd.f32 %v9221_v9, %v5571_v63 }
 0x620   : > { %v5703_v54 = vadd.f32 %v6217_v38, %v5607_v40  ;;  %v5608_v52 = vadd.f32 %v9221_v9, %v5569_v1 }
 0x621   : > { %v5737_v62 = vmax.f32 %v5705_v25, 0.0  ;;  %v5706_v0 = vadd.f32 %v6222_v30, %v5610_v2 }
 0x622   : > { %v5735_v3 = vmax.f32 %v5703_v54, 0.0  ;;  %v5704_v42 = vadd.f32 %v6218_v10, %v5608_v52  ;;  %v7162_v51 = vpop.f32.mrb[28].mxu1 }
 0x623   : > { %5769 = vst.msk [vmem:[%s9234_s14 + $0xd0] sm:$0xff] %vm280_vm1, %v5737_v62  ;;  %v5738_v33 = vmax.f32 %v5706_v0, 0.0  ;;  %v5574_v39 = vmul.f32 %v7162_v51, %v9214_v22  ;;  %v5490_v55 = vpop.f32.mrb[29].mxu1 }
 0x624   : > { %5767 = vst.msk [vmem:[%s9234_s14 + $0xc0] sm:$0xff] %vm280_vm1, %v5735_v3  ;;  %v5736_v47 = vmax.f32 %v5704_v42, 0.0  ;;  %v5572_v45 = vmul.f32 %v9214_v22, %v5490_v55  ;;  %v7163_v53 = vpop.f32.mrb[30].mxu1 }
 0x625   : > { %5770 = vst.msk [vmem:[%s9234_s14 + $0xd8] sm:$0xff] %vm280_vm1, %v5738_v33  ;;  %v5613_v43 = vadd.f32 %v9221_v9, %v5574_v39  ;;  %v5575_v20 = vmul.f32 %v7163_v53, %v9214_v22  ;;  %v5493_v50 = vpop.f32.mrb[31].mxu1 }
 0x626   : > { %5768 = vst.msk [vmem:[%s9234_s14 + $0xc8] sm:$0xff] %vm280_vm1, %v5736_v47  ;;  %v5611_v57 = vadd.f32 %v9221_v9, %v5572_v45  ;;  %v5573_v8 = vmul.f32 %v9214_v22, %v5493_v50 }
 0x627   : > { %v5709_v34 = vadd.f32 %v6229_v31, %v5613_v43  ;;  %v5614_v17 = vadd.f32 %v9221_v9, %v5575_v20 }
 0x628   : > { %v5707_v4 = vadd.f32 %v6225_v46, %v5611_v57  ;;  %v5612_v24 = vadd.f32 %v9221_v9, %v5573_v8 }
 0x629   : > { %v5741_v18 = vmax.f32 %v5709_v34, 0.0  ;;  %v5710_v5 = vadd.f32 %v6230_v19, %v5614_v17 }
 0x62a   : > { %v5739_v58 = vmax.f32 %v5707_v4, 0.0  ;;  %v5708_v60 = vadd.f32 %v6226_v44, %v5612_v24 }
 0x62b   : > { %5773 = vst.msk [vmem:[%s9234_s14 + $0xf0] sm:$0xff] %vm280_vm1, %v5741_v18  ;;  %v5742_v37 = vmax.f32 %v5710_v5, 0.0 }
 0x62c   : > { %5771 = vst.msk [vmem:[%s9234_s14 + $0xe0] sm:$0xff] %vm280_vm1, %v5739_v58  ;;  %v5740_v35 = vmax.f32 %v5708_v60, 0.0 }
 0x62d   : > { %5774 = vst.msk [vmem:[%s9234_s14 + $0xf8] sm:$0xff] %vm280_vm1, %v5742_v37 }
 0x62e   : > { %5772 = vst.msk [vmem:[%s9234_s14 + $0xe8] sm:$0xff] %vm280_vm1, %v5740_v35 }
 0x62f PF: > { %s17_s24 = sadd.s32 1, %s7725_s24  }
 0x630   : > { %p14_p4 = scmp.ge.s32.totalorder %s17_s24, 4  }
 0x632   :  { %16 = sbr.rel (!%p14_p4) target bundleno = 1 (0x1), region = 98 }

</bundles_post_ra>
